<compile_context>
chip_gen: v6e
topology: v6e:2x2x1
jax: 0.10.0
libtpu: 0.0.40
codegen_flags: <defaults>
</compile_context>

<pallas_src>
import numpy as np
import jax
import jax.numpy as jnp
from jax import lax
from jax.experimental import pallas as pl
from jax.experimental.pallas import tpu as pltpu

KSIZE = 11
SIGMA = 1.5
K1 = 0.01
K2 = 0.03


def _gaussian_1d(kernel_size: int, sigma: float) -> np.ndarray:
    # matches torchmetrics _gaussian(): normalized 1D gaussian.
    dist = np.arange((1 - kernel_size) / 2.0, (1 + kernel_size) / 2.0, 1.0,
                     dtype=np.float64)
    g = np.exp(-((dist / sigma) ** 2) / 2.0)
    return (g / g.sum()).astype(np.float32)


def _band_matrices(h: int, w: int):
    """Banded matrices so the separable valid conv becomes GhT @ img @ Gw."""
    g = _gaussian_1d(KSIZE, SIGMA)
    ho, wo = h - KSIZE + 1, w - KSIZE + 1
    ght = np.zeros((ho, h), np.float32)   # GhT[i, i+k] = g[k]
    gw = np.zeros((w, wo), np.float32)    # Gw[j+k, j]  = g[k]
    for k in range(KSIZE):
        ght[np.arange(ho), np.arange(ho) + k] = g[k]
        gw[np.arange(wo) + k, np.arange(wo)] = g[k]
    return ght, gw


def _pick_tile_nc(nc: int, h: int, w: int,
                  budget_bytes: int = 8 * 1024 * 1024, max_tile: int = 4) -> int:
    """Largest divisor of nc (<= max_tile) whose double-buffered inputs fit."""
    tile = 1
    for d in range(1, min(nc, max_tile) + 1):
        # 2 inputs * 2 pipeline buffers * d*h*w * 4 bytes
        if nc % d == 0 and 16 * d * h * w <= budget_bytes:
            tile = d
    return tile


def _sdim_kernel(cc_ref, ght_ref, gw_ref, x_ref, y_ref, o_ref):
    # cc_ref : SMEM (2,) f32 = [c1, c2] (data_range hoisted to the wrapper)
    # ght_ref: VMEM (Ho, H) f32 banded gaussian (row direction), grid-resident
    # gw_ref : VMEM (W, Wo) f32 banded gaussian (col direction), grid-resident
    # x_ref, y_ref: VMEM (T, H, W) f32 tiles of the folded (N*C, H, W) inputs
    # o_ref  : VMEM (1, 8, 128) f32 per-tile partial SSIM sum (lane-dense)
    c1 = cc_ref[0]
    c2 = cc_ref[1]
    ght = ght_ref[...]
    gw = gw_ref[...]
    t_imgs, h, w = x_ref.shape
    ho = ght.shape[0]
    wo = gw.shape[1]

    def mm(a, b):  # small MXU matmul, f32 accumulate
        return jnp.dot(a, b, precision=lax.Precision.HIGHEST,
                       preferred_element_type=jnp.float32)

    def ssim_map(mu_x, mu_y, e_xx, e_yy, e_xy):
        s_xx = e_xx - mu_x * mu_x
        s_yy = e_yy - mu_y * mu_y
        s_xy = e_xy - mu_x * mu_y
        num = (2.0 * mu_x * mu_y + c1) * (2.0 * s_xy + c2)
        den = (mu_x * mu_x + mu_y * mu_y + c1) * (s_xx + s_yy + c2)
        return num / den

    acc = jnp.zeros((ho, wo), jnp.float32)

    if h % 8 == 0:
        # Column (lane-direction) gaussian conv batched over all T images and
        # all 5 quantities: 5 matmuls of shape (T*H, W) @ (W, Wo).
        x2 = x_ref[...].reshape(t_imgs * h, w)
        y2 = y_ref[...].reshape(t_imgs * h, w)
        xw = mm(x2, gw)
        yw = mm(y2, gw)
        xxw = mm(x2 * x2, gw)
        yyw = mm(y2 * y2, gw)
        xyw = mm(x2 * y2, gw)
        for t in range(t_imgs):  # static unroll; T is small by construction
            lo, hi = t * h, (t + 1) * h   # 8-aligned static sublane slices
            acc = acc + ssim_map(mm(ght, xw[lo:hi]),
                                 mm(ght, yw[lo:hi]),
                                 mm(ght, xxw[lo:hi]),
                                 mm(ght, yyw[lo:hi]),
                                 mm(ght, xyw[lo:hi]))
    else:
        # Fallback for H not a multiple of 8: per-image separable conv.
        for t in range(t_imgs):
            xi = x_ref[t]
            yi = y_ref[t]

            def gconv(a):
                return mm(mm(ght, a), gw)

            acc = acc + ssim_map(gconv(xi), gconv(yi), gconv(xi * xi),
                                 gconv(yi * yi), gconv(xi * yi))

    o_ref[...] = jnp.full(o_ref.shape, jnp.sum(acc), jnp.float32)


def sdim_loss(x, y):
    """x, y: (N, C, H, W). Returns scalar (1 - SSIM(x, y)) / 2."""
    N, C, H, W = x.shape
    assert H > KSIZE - 1 and W > KSIZE - 1, "spatial dims must exceed kernel_size-1"
    NC = N * C
    Ho, Wo = H - KSIZE + 1, W - KSIZE + 1

    xr = x.reshape(NC, H, W).astype(jnp.float32)
    yr = y.reshape(NC, H, W).astype(jnp.float32)

    # data_range (torchmetrics data_range=None) hoisted out of the kernel.
    dr = jnp.maximum(jnp.max(xr) - jnp.min(xr), jnp.max(yr) - jnp.min(yr))
    cc = jnp.stack([(K1 * dr) ** 2, (K2 * dr) ** 2]).astype(jnp.float32)

    ght_np, gw_np = _band_matrices(H, W)
    ght = jnp.asarray(ght_np)
    gw = jnp.asarray(gw_np)

    T = _pick_tile_nc(NC, H, W)
    G = NC // T

    partial = pl.pallas_call(
        _sdim_kernel,
        out_shape=jax.ShapeDtypeStruct((G, 8, 128), jnp.float32),
        grid_spec=pltpu.PrefetchScalarGridSpec(
            num_scalar_prefetch=0,
            grid=(G,),
            in_specs=[
                pl.BlockSpec(memory_space=pltpu.MemorySpace.SMEM),  # [c1, c2]
                pl.BlockSpec((Ho, H), lambda i: (0, 0)),            # GhT (resident)
                pl.BlockSpec((W, Wo), lambda i: (0, 0)),            # Gw  (resident)
                pl.BlockSpec((T, H, W), lambda i: (i, 0, 0)),       # x tile
                pl.BlockSpec((T, H, W), lambda i: (i, 0, 0)),       # y tile
            ],
            out_specs=pl.BlockSpec((1, 8, 128), lambda i: (i, 0, 0)),
        ),
        compiler_params=pltpu.CompilerParams(
            dimension_semantics=("parallel",),
            vmem_limit_bytes=64 * 1024 * 1024,
        ),
    )(cc, ght, gw, xr, yr)

    ssim_mean = jnp.sum(partial[:, 0, 0]) / jnp.float32(NC * Ho * Wo)
    return (1.0 - ssim_mean) / 2.0


def _reference_loss(x, y):
    """Pure-JAX (XLA) reference mirroring torchmetrics SSIM, for a sanity check."""
    N, C, H, W = x.shape
    Ho, Wo = H - KSIZE + 1, W - KSIZE + 1
    xr = x.reshape(N * C, H, W).astype(jnp.float32)
    yr = y.reshape(N * C, H, W).astype(jnp.float32)
    g = jnp.asarray(_gaussian_1d(KSIZE, SIGMA))
    dr = jnp.maximum(jnp.max(xr) - jnp.min(xr), jnp.max(yr) - jnp.min(yr))
    c1 = (K1 * dr) ** 2
    c2 = (K2 * dr) ** 2

    def conv_w(a):
        return sum(g[k] * a[:, :, k:k + Wo] for k in range(KSIZE))

    def conv_h(a):
        return sum(g[k] * a[:, k:k + Ho, :] for k in range(KSIZE))

    def gconv(a):
        return conv_h(conv_w(a))

    mu_x, mu_y = gconv(xr), gconv(yr)
    e_xx, e_yy, e_xy = gconv(xr * xr), gconv(yr * yr), gconv(xr * yr)
    s_xx, s_yy, s_xy = e_xx - mu_x * mu_x, e_yy - mu_y * mu_y, e_xy - mu_x * mu_y
    ssim = jnp.mean(((2 * mu_x * mu_y + c1) * (2 * s_xy + c2)) /
                    ((mu_x * mu_x + mu_y * mu_y + c1) * (s_xx + s_yy + c2)))
    return (1.0 - ssim) / 2.0


if __name__ == "__main__":
    key = jax.random.PRNGKey(0)
    k_in, k_tgt = jax.random.split(key)
    N, C, H, W = 2, 4, 16, 16
    inp = jax.random.uniform(k_in, (N, C, H, W), dtype=jnp.float32)
    tgt = jax.random.uniform(k_tgt, (N, C, H, W), dtype=jnp.float32)

    loss = jax.jit(sdim_loss)(inp, tgt)
    loss = jax.block_until_ready(loss)

    ref = jax.block_until_ready(_reference_loss(inp, tgt))
    np.testing.assert_allclose(float(loss), float(ref), rtol=1e-2, atol=1e-3)

    print("KERNEL_OK")
</pallas_src>

<mosaic_0001>
module attributes {stable_mosaic.version = 11 : i64} {
  func.func @_sdim_kernel(%arg0: i32, %arg1: memref<2xf32, #tpu.memory_space<smem>>, %arg2: memref<6x16xf32, #tpu.memory_space<vmem>>, %arg3: memref<16x6xf32, #tpu.memory_space<vmem>>, %arg4: memref<4x16x16xf32, #tpu.memory_space<vmem>>, %arg5: memref<4x16x16xf32, #tpu.memory_space<vmem>>, %arg6: memref<1x8x128xf32, #tpu.memory_space<vmem>>) attributes {dimension_semantics = [#tpu.dimension_semantics<parallel>], iteration_bounds = array<i64: 2>, scalar_prefetch = 0 : i64, scratch_operands = 0 : i64, tpu.core_type = #tpu.core_type<tc>, window_params = [{transform_indices = @transform_0, window_bounds = array<i64: 2>}, {pipeline_mode = #tpu.pipeline_mode<synchronous>, transform_indices = @transform_1, window_bounds = array<i64: 6, 16>}, {pipeline_mode = #tpu.pipeline_mode<synchronous>, transform_indices = @transform_2, window_bounds = array<i64: 16, 6>}, {transform_indices = @transform_3, window_bounds = array<i64: 4, 16, 16>}, {transform_indices = @transform_4, window_bounds = array<i64: 4, 16, 16>}, {transform_indices = @transform_5, window_bounds = array<i64: 1, 8, 128>}]} {
    %c0 = arith.constant 0 : index
    %0 = memref.load %arg1[%c0] : memref<2xf32, #tpu.memory_space<smem>>
    %c1 = arith.constant 1 : index
    %1 = memref.load %arg1[%c1] : memref<2xf32, #tpu.memory_space<smem>>
    %c0_0 = arith.constant 0 : index
    %c0_1 = arith.constant 0 : index
    %2 = vector.load %arg2[%c0_0, %c0_1] : memref<6x16xf32, #tpu.memory_space<vmem>>, vector<6x16xf32>
    %c0_2 = arith.constant 0 : index
    %c0_3 = arith.constant 0 : index
    %3 = vector.load %arg3[%c0_2, %c0_3] : memref<16x6xf32, #tpu.memory_space<vmem>>, vector<16x6xf32>
    %cst = arith.constant 0.000000e+00 : f32
    %4 = vector.broadcast %cst : f32 to vector<6x6xf32>
    %c0_4 = arith.constant 0 : index
    %c0_5 = arith.constant 0 : index
    %c0_6 = arith.constant 0 : index
    %5 = vector.load %arg4[%c0_4, %c0_5, %c0_6] : memref<4x16x16xf32, #tpu.memory_space<vmem>>, vector<4x16x16xf32>
    %6 = vector.shape_cast %5 : vector<4x16x16xf32> to vector<64x16xf32>
    %c0_7 = arith.constant 0 : index
    %c0_8 = arith.constant 0 : index
    %c0_9 = arith.constant 0 : index
    %7 = vector.load %arg5[%c0_7, %c0_8, %c0_9] : memref<4x16x16xf32, #tpu.memory_space<vmem>>, vector<4x16x16xf32>
    %8 = vector.shape_cast %7 : vector<4x16x16xf32> to vector<64x16xf32>
    %cst_10 = arith.constant dense<0.000000e+00> : vector<64x6xf32>
    %9 = tpu.matmul %6, %3, %cst_10 {dimension_numbers = #tpu.dot_dimension_numbers<[1], [0], [0], [1], [0, 0, 1, 1], [], []>, precision = #tpu.contract_precision<fp32>} : vector<64x16xf32>, vector<16x6xf32>, vector<64x6xf32> -> vector<64x6xf32>
    %cst_11 = arith.constant dense<0.000000e+00> : vector<64x6xf32>
    %10 = tpu.matmul %8, %3, %cst_11 {dimension_numbers = #tpu.dot_dimension_numbers<[1], [0], [0], [1], [0, 0, 1, 1], [], []>, precision = #tpu.contract_precision<fp32>} : vector<64x16xf32>, vector<16x6xf32>, vector<64x6xf32> -> vector<64x6xf32>
    %11 = arith.mulf %6, %6 : vector<64x16xf32>
    %cst_12 = arith.constant dense<0.000000e+00> : vector<64x6xf32>
    %12 = tpu.matmul %11, %3, %cst_12 {dimension_numbers = #tpu.dot_dimension_numbers<[1], [0], [0], [1], [0, 0, 1, 1], [], []>, precision = #tpu.contract_precision<fp32>} : vector<64x16xf32>, vector<16x6xf32>, vector<64x6xf32> -> vector<64x6xf32>
    %13 = arith.mulf %8, %8 : vector<64x16xf32>
    %cst_13 = arith.constant dense<0.000000e+00> : vector<64x6xf32>
    %14 = tpu.matmul %13, %3, %cst_13 {dimension_numbers = #tpu.dot_dimension_numbers<[1], [0], [0], [1], [0, 0, 1, 1], [], []>, precision = #tpu.contract_precision<fp32>} : vector<64x16xf32>, vector<16x6xf32>, vector<64x6xf32> -> vector<64x6xf32>
    %15 = arith.mulf %6, %8 : vector<64x16xf32>
    %cst_14 = arith.constant dense<0.000000e+00> : vector<64x6xf32>
    %16 = tpu.matmul %15, %3, %cst_14 {dimension_numbers = #tpu.dot_dimension_numbers<[1], [0], [0], [1], [0, 0, 1, 1], [], []>, precision = #tpu.contract_precision<fp32>} : vector<64x16xf32>, vector<16x6xf32>, vector<64x6xf32> -> vector<64x6xf32>
    %17 = vector.extract_strided_slice %9 {offsets = [0, 0], sizes = [16, 6], strides = [1, 1]} : vector<64x6xf32> to vector<16x6xf32>
    %cst_15 = arith.constant dense<0.000000e+00> : vector<6x6xf32>
    %18 = tpu.matmul %2, %17, %cst_15 {dimension_numbers = #tpu.dot_dimension_numbers<[1], [0], [0], [1], [0, 0, 1, 1], [], []>, precision = #tpu.contract_precision<fp32>} : vector<6x16xf32>, vector<16x6xf32>, vector<6x6xf32> -> vector<6x6xf32>
    %19 = vector.extract_strided_slice %10 {offsets = [0, 0], sizes = [16, 6], strides = [1, 1]} : vector<64x6xf32> to vector<16x6xf32>
    %cst_16 = arith.constant dense<0.000000e+00> : vector<6x6xf32>
    %20 = tpu.matmul %2, %19, %cst_16 {dimension_numbers = #tpu.dot_dimension_numbers<[1], [0], [0], [1], [0, 0, 1, 1], [], []>, precision = #tpu.contract_precision<fp32>} : vector<6x16xf32>, vector<16x6xf32>, vector<6x6xf32> -> vector<6x6xf32>
    %21 = vector.extract_strided_slice %12 {offsets = [0, 0], sizes = [16, 6], strides = [1, 1]} : vector<64x6xf32> to vector<16x6xf32>
    %cst_17 = arith.constant dense<0.000000e+00> : vector<6x6xf32>
    %22 = tpu.matmul %2, %21, %cst_17 {dimension_numbers = #tpu.dot_dimension_numbers<[1], [0], [0], [1], [0, 0, 1, 1], [], []>, precision = #tpu.contract_precision<fp32>} : vector<6x16xf32>, vector<16x6xf32>, vector<6x6xf32> -> vector<6x6xf32>
    %23 = vector.extract_strided_slice %14 {offsets = [0, 0], sizes = [16, 6], strides = [1, 1]} : vector<64x6xf32> to vector<16x6xf32>
    %cst_18 = arith.constant dense<0.000000e+00> : vector<6x6xf32>
    %24 = tpu.matmul %2, %23, %cst_18 {dimension_numbers = #tpu.dot_dimension_numbers<[1], [0], [0], [1], [0, 0, 1, 1], [], []>, precision = #tpu.contract_precision<fp32>} : vector<6x16xf32>, vector<16x6xf32>, vector<6x6xf32> -> vector<6x6xf32>
    %25 = vector.extract_strided_slice %16 {offsets = [0, 0], sizes = [16, 6], strides = [1, 1]} : vector<64x6xf32> to vector<16x6xf32>
    %cst_19 = arith.constant dense<0.000000e+00> : vector<6x6xf32>
    %26 = tpu.matmul %2, %25, %cst_19 {dimension_numbers = #tpu.dot_dimension_numbers<[1], [0], [0], [1], [0, 0, 1, 1], [], []>, precision = #tpu.contract_precision<fp32>} : vector<6x16xf32>, vector<16x6xf32>, vector<6x6xf32> -> vector<6x6xf32>
    %27 = arith.mulf %18, %18 : vector<6x6xf32>
    %28 = arith.subf %22, %27 : vector<6x6xf32>
    %29 = arith.mulf %20, %20 : vector<6x6xf32>
    %30 = arith.subf %24, %29 : vector<6x6xf32>
    %31 = arith.mulf %18, %20 : vector<6x6xf32>
    %32 = arith.subf %26, %31 : vector<6x6xf32>
    %cst_20 = arith.constant 2.000000e+00 : f32
    %33 = vector.broadcast %cst_20 : f32 to vector<6x6xf32>
    %34 = arith.mulf %33, %18 : vector<6x6xf32>
    %35 = arith.mulf %34, %20 : vector<6x6xf32>
    %36 = vector.broadcast %0 : f32 to vector<6x6xf32>
    %37 = arith.addf %35, %36 : vector<6x6xf32>
    %cst_21 = arith.constant 2.000000e+00 : f32
    %38 = vector.broadcast %cst_21 : f32 to vector<6x6xf32>
    %39 = arith.mulf %38, %32 : vector<6x6xf32>
    %40 = vector.broadcast %1 : f32 to vector<6x6xf32>
    %41 = arith.addf %39, %40 : vector<6x6xf32>
    %42 = arith.mulf %37, %41 : vector<6x6xf32>
    %43 = arith.mulf %18, %18 : vector<6x6xf32>
    %44 = arith.mulf %20, %20 : vector<6x6xf32>
    %45 = arith.addf %43, %44 : vector<6x6xf32>
    %46 = vector.broadcast %0 : f32 to vector<6x6xf32>
    %47 = arith.addf %45, %46 : vector<6x6xf32>
    %48 = arith.addf %28, %30 : vector<6x6xf32>
    %49 = vector.broadcast %1 : f32 to vector<6x6xf32>
    %50 = arith.addf %48, %49 : vector<6x6xf32>
    %51 = arith.mulf %47, %50 : vector<6x6xf32>
    %52 = arith.divf %42, %51 : vector<6x6xf32>
    %53 = arith.addf %4, %52 : vector<6x6xf32>
    %54 = vector.extract_strided_slice %9 {offsets = [16, 0], sizes = [16, 6], strides = [1, 1]} : vector<64x6xf32> to vector<16x6xf32>
    %cst_22 = arith.constant dense<0.000000e+00> : vector<6x6xf32>
    %55 = tpu.matmul %2, %54, %cst_22 {dimension_numbers = #tpu.dot_dimension_numbers<[1], [0], [0], [1], [0, 0, 1, 1], [], []>, precision = #tpu.contract_precision<fp32>} : vector<6x16xf32>, vector<16x6xf32>, vector<6x6xf32> -> vector<6x6xf32>
    %56 = vector.extract_strided_slice %10 {offsets = [16, 0], sizes = [16, 6], strides = [1, 1]} : vector<64x6xf32> to vector<16x6xf32>
    %cst_23 = arith.constant dense<0.000000e+00> : vector<6x6xf32>
    %57 = tpu.matmul %2, %56, %cst_23 {dimension_numbers = #tpu.dot_dimension_numbers<[1], [0], [0], [1], [0, 0, 1, 1], [], []>, precision = #tpu.contract_precision<fp32>} : vector<6x16xf32>, vector<16x6xf32>, vector<6x6xf32> -> vector<6x6xf32>
    %58 = vector.extract_strided_slice %12 {offsets = [16, 0], sizes = [16, 6], strides = [1, 1]} : vector<64x6xf32> to vector<16x6xf32>
    %cst_24 = arith.constant dense<0.000000e+00> : vector<6x6xf32>
    %59 = tpu.matmul %2, %58, %cst_24 {dimension_numbers = #tpu.dot_dimension_numbers<[1], [0], [0], [1], [0, 0, 1, 1], [], []>, precision = #tpu.contract_precision<fp32>} : vector<6x16xf32>, vector<16x6xf32>, vector<6x6xf32> -> vector<6x6xf32>
    %60 = vector.extract_strided_slice %14 {offsets = [16, 0], sizes = [16, 6], strides = [1, 1]} : vector<64x6xf32> to vector<16x6xf32>
    %cst_25 = arith.constant dense<0.000000e+00> : vector<6x6xf32>
    %61 = tpu.matmul %2, %60, %cst_25 {dimension_numbers = #tpu.dot_dimension_numbers<[1], [0], [0], [1], [0, 0, 1, 1], [], []>, precision = #tpu.contract_precision<fp32>} : vector<6x16xf32>, vector<16x6xf32>, vector<6x6xf32> -> vector<6x6xf32>
    %62 = vector.extract_strided_slice %16 {offsets = [16, 0], sizes = [16, 6], strides = [1, 1]} : vector<64x6xf32> to vector<16x6xf32>
    %cst_26 = arith.constant dense<0.000000e+00> : vector<6x6xf32>
    %63 = tpu.matmul %2, %62, %cst_26 {dimension_numbers = #tpu.dot_dimension_numbers<[1], [0], [0], [1], [0, 0, 1, 1], [], []>, precision = #tpu.contract_precision<fp32>} : vector<6x16xf32>, vector<16x6xf32>, vector<6x6xf32> -> vector<6x6xf32>
    %64 = arith.mulf %55, %55 : vector<6x6xf32>
    %65 = arith.subf %59, %64 : vector<6x6xf32>
    %66 = arith.mulf %57, %57 : vector<6x6xf32>
    %67 = arith.subf %61, %66 : vector<6x6xf32>
    %68 = arith.mulf %55, %57 : vector<6x6xf32>
    %69 = arith.subf %63, %68 : vector<6x6xf32>
    %cst_27 = arith.constant 2.000000e+00 : f32
    %70 = vector.broadcast %cst_27 : f32 to vector<6x6xf32>
    %71 = arith.mulf %70, %55 : vector<6x6xf32>
    %72 = arith.mulf %71, %57 : vector<6x6xf32>
    %73 = vector.broadcast %0 : f32 to vector<6x6xf32>
    %74 = arith.addf %72, %73 : vector<6x6xf32>
    %cst_28 = arith.constant 2.000000e+00 : f32
    %75 = vector.broadcast %cst_28 : f32 to vector<6x6xf32>
    %76 = arith.mulf %75, %69 : vector<6x6xf32>
    %77 = vector.broadcast %1 : f32 to vector<6x6xf32>
    %78 = arith.addf %76, %77 : vector<6x6xf32>
    %79 = arith.mulf %74, %78 : vector<6x6xf32>
    %80 = arith.mulf %55, %55 : vector<6x6xf32>
    %81 = arith.mulf %57, %57 : vector<6x6xf32>
    %82 = arith.addf %80, %81 : vector<6x6xf32>
    %83 = vector.broadcast %0 : f32 to vector<6x6xf32>
    %84 = arith.addf %82, %83 : vector<6x6xf32>
    %85 = arith.addf %65, %67 : vector<6x6xf32>
    %86 = vector.broadcast %1 : f32 to vector<6x6xf32>
    %87 = arith.addf %85, %86 : vector<6x6xf32>
    %88 = arith.mulf %84, %87 : vector<6x6xf32>
    %89 = arith.divf %79, %88 : vector<6x6xf32>
    %90 = arith.addf %53, %89 : vector<6x6xf32>
    %91 = vector.extract_strided_slice %9 {offsets = [32, 0], sizes = [16, 6], strides = [1, 1]} : vector<64x6xf32> to vector<16x6xf32>
    %cst_29 = arith.constant dense<0.000000e+00> : vector<6x6xf32>
    %92 = tpu.matmul %2, %91, %cst_29 {dimension_numbers = #tpu.dot_dimension_numbers<[1], [0], [0], [1], [0, 0, 1, 1], [], []>, precision = #tpu.contract_precision<fp32>} : vector<6x16xf32>, vector<16x6xf32>, vector<6x6xf32> -> vector<6x6xf32>
    %93 = vector.extract_strided_slice %10 {offsets = [32, 0], sizes = [16, 6], strides = [1, 1]} : vector<64x6xf32> to vector<16x6xf32>
    %cst_30 = arith.constant dense<0.000000e+00> : vector<6x6xf32>
    %94 = tpu.matmul %2, %93, %cst_30 {dimension_numbers = #tpu.dot_dimension_numbers<[1], [0], [0], [1], [0, 0, 1, 1], [], []>, precision = #tpu.contract_precision<fp32>} : vector<6x16xf32>, vector<16x6xf32>, vector<6x6xf32> -> vector<6x6xf32>
    %95 = vector.extract_strided_slice %12 {offsets = [32, 0], sizes = [16, 6], strides = [1, 1]} : vector<64x6xf32> to vector<16x6xf32>
    %cst_31 = arith.constant dense<0.000000e+00> : vector<6x6xf32>
    %96 = tpu.matmul %2, %95, %cst_31 {dimension_numbers = #tpu.dot_dimension_numbers<[1], [0], [0], [1], [0, 0, 1, 1], [], []>, precision = #tpu.contract_precision<fp32>} : vector<6x16xf32>, vector<16x6xf32>, vector<6x6xf32> -> vector<6x6xf32>
    %97 = vector.extract_strided_slice %14 {offsets = [32, 0], sizes = [16, 6], strides = [1, 1]} : vector<64x6xf32> to vector<16x6xf32>
    %cst_32 = arith.constant dense<0.000000e+00> : vector<6x6xf32>
    %98 = tpu.matmul %2, %97, %cst_32 {dimension_numbers = #tpu.dot_dimension_numbers<[1], [0], [0], [1], [0, 0, 1, 1], [], []>, precision = #tpu.contract_precision<fp32>} : vector<6x16xf32>, vector<16x6xf32>, vector<6x6xf32> -> vector<6x6xf32>
    %99 = vector.extract_strided_slice %16 {offsets = [32, 0], sizes = [16, 6], strides = [1, 1]} : vector<64x6xf32> to vector<16x6xf32>
    %cst_33 = arith.constant dense<0.000000e+00> : vector<6x6xf32>
    %100 = tpu.matmul %2, %99, %cst_33 {dimension_numbers = #tpu.dot_dimension_numbers<[1], [0], [0], [1], [0, 0, 1, 1], [], []>, precision = #tpu.contract_precision<fp32>} : vector<6x16xf32>, vector<16x6xf32>, vector<6x6xf32> -> vector<6x6xf32>
    %101 = arith.mulf %92, %92 : vector<6x6xf32>
    %102 = arith.subf %96, %101 : vector<6x6xf32>
    %103 = arith.mulf %94, %94 : vector<6x6xf32>
    %104 = arith.subf %98, %103 : vector<6x6xf32>
    %105 = arith.mulf %92, %94 : vector<6x6xf32>
    %106 = arith.subf %100, %105 : vector<6x6xf32>
    %cst_34 = arith.constant 2.000000e+00 : f32
    %107 = vector.broadcast %cst_34 : f32 to vector<6x6xf32>
    %108 = arith.mulf %107, %92 : vector<6x6xf32>
    %109 = arith.mulf %108, %94 : vector<6x6xf32>
    %110 = vector.broadcast %0 : f32 to vector<6x6xf32>
    %111 = arith.addf %109, %110 : vector<6x6xf32>
    %cst_35 = arith.constant 2.000000e+00 : f32
    %112 = vector.broadcast %cst_35 : f32 to vector<6x6xf32>
    %113 = arith.mulf %112, %106 : vector<6x6xf32>
    %114 = vector.broadcast %1 : f32 to vector<6x6xf32>
    %115 = arith.addf %113, %114 : vector<6x6xf32>
    %116 = arith.mulf %111, %115 : vector<6x6xf32>
    %117 = arith.mulf %92, %92 : vector<6x6xf32>
    %118 = arith.mulf %94, %94 : vector<6x6xf32>
    %119 = arith.addf %117, %118 : vector<6x6xf32>
    %120 = vector.broadcast %0 : f32 to vector<6x6xf32>
    %121 = arith.addf %119, %120 : vector<6x6xf32>
    %122 = arith.addf %102, %104 : vector<6x6xf32>
    %123 = vector.broadcast %1 : f32 to vector<6x6xf32>
    %124 = arith.addf %122, %123 : vector<6x6xf32>
    %125 = arith.mulf %121, %124 : vector<6x6xf32>
    %126 = arith.divf %116, %125 : vector<6x6xf32>
    %127 = arith.addf %90, %126 : vector<6x6xf32>
    %128 = vector.extract_strided_slice %9 {offsets = [48, 0], sizes = [16, 6], strides = [1, 1]} : vector<64x6xf32> to vector<16x6xf32>
    %cst_36 = arith.constant dense<0.000000e+00> : vector<6x6xf32>
    %129 = tpu.matmul %2, %128, %cst_36 {dimension_numbers = #tpu.dot_dimension_numbers<[1], [0], [0], [1], [0, 0, 1, 1], [], []>, precision = #tpu.contract_precision<fp32>} : vector<6x16xf32>, vector<16x6xf32>, vector<6x6xf32> -> vector<6x6xf32>
    %130 = vector.extract_strided_slice %10 {offsets = [48, 0], sizes = [16, 6], strides = [1, 1]} : vector<64x6xf32> to vector<16x6xf32>
    %cst_37 = arith.constant dense<0.000000e+00> : vector<6x6xf32>
    %131 = tpu.matmul %2, %130, %cst_37 {dimension_numbers = #tpu.dot_dimension_numbers<[1], [0], [0], [1], [0, 0, 1, 1], [], []>, precision = #tpu.contract_precision<fp32>} : vector<6x16xf32>, vector<16x6xf32>, vector<6x6xf32> -> vector<6x6xf32>
    %132 = vector.extract_strided_slice %12 {offsets = [48, 0], sizes = [16, 6], strides = [1, 1]} : vector<64x6xf32> to vector<16x6xf32>
    %cst_38 = arith.constant dense<0.000000e+00> : vector<6x6xf32>
    %133 = tpu.matmul %2, %132, %cst_38 {dimension_numbers = #tpu.dot_dimension_numbers<[1], [0], [0], [1], [0, 0, 1, 1], [], []>, precision = #tpu.contract_precision<fp32>} : vector<6x16xf32>, vector<16x6xf32>, vector<6x6xf32> -> vector<6x6xf32>
    %134 = vector.extract_strided_slice %14 {offsets = [48, 0], sizes = [16, 6], strides = [1, 1]} : vector<64x6xf32> to vector<16x6xf32>
    %cst_39 = arith.constant dense<0.000000e+00> : vector<6x6xf32>
    %135 = tpu.matmul %2, %134, %cst_39 {dimension_numbers = #tpu.dot_dimension_numbers<[1], [0], [0], [1], [0, 0, 1, 1], [], []>, precision = #tpu.contract_precision<fp32>} : vector<6x16xf32>, vector<16x6xf32>, vector<6x6xf32> -> vector<6x6xf32>
    %136 = vector.extract_strided_slice %16 {offsets = [48, 0], sizes = [16, 6], strides = [1, 1]} : vector<64x6xf32> to vector<16x6xf32>
    %cst_40 = arith.constant dense<0.000000e+00> : vector<6x6xf32>
    %137 = tpu.matmul %2, %136, %cst_40 {dimension_numbers = #tpu.dot_dimension_numbers<[1], [0], [0], [1], [0, 0, 1, 1], [], []>, precision = #tpu.contract_precision<fp32>} : vector<6x16xf32>, vector<16x6xf32>, vector<6x6xf32> -> vector<6x6xf32>
    %138 = arith.mulf %129, %129 : vector<6x6xf32>
    %139 = arith.subf %133, %138 : vector<6x6xf32>
    %140 = arith.mulf %131, %131 : vector<6x6xf32>
    %141 = arith.subf %135, %140 : vector<6x6xf32>
    %142 = arith.mulf %129, %131 : vector<6x6xf32>
    %143 = arith.subf %137, %142 : vector<6x6xf32>
    %cst_41 = arith.constant 2.000000e+00 : f32
    %144 = vector.broadcast %cst_41 : f32 to vector<6x6xf32>
    %145 = arith.mulf %144, %129 : vector<6x6xf32>
    %146 = arith.mulf %145, %131 : vector<6x6xf32>
    %147 = vector.broadcast %0 : f32 to vector<6x6xf32>
    %148 = arith.addf %146, %147 : vector<6x6xf32>
    %cst_42 = arith.constant 2.000000e+00 : f32
    %149 = vector.broadcast %cst_42 : f32 to vector<6x6xf32>
    %150 = arith.mulf %149, %143 : vector<6x6xf32>
    %151 = vector.broadcast %1 : f32 to vector<6x6xf32>
    %152 = arith.addf %150, %151 : vector<6x6xf32>
    %153 = arith.mulf %148, %152 : vector<6x6xf32>
    %154 = arith.mulf %129, %129 : vector<6x6xf32>
    %155 = arith.mulf %131, %131 : vector<6x6xf32>
    %156 = arith.addf %154, %155 : vector<6x6xf32>
    %157 = vector.broadcast %0 : f32 to vector<6x6xf32>
    %158 = arith.addf %156, %157 : vector<6x6xf32>
    %159 = arith.addf %139, %141 : vector<6x6xf32>
    %160 = vector.broadcast %1 : f32 to vector<6x6xf32>
    %161 = arith.addf %159, %160 : vector<6x6xf32>
    %162 = arith.mulf %158, %161 : vector<6x6xf32>
    %163 = arith.divf %153, %162 : vector<6x6xf32>
    %164 = arith.addf %127, %163 : vector<6x6xf32>
    %165 = vector.shape_cast %164 : vector<6x6xf32> to vector<1x6x6xf32>
    %cst_43 = arith.constant dense<0.000000e+00> : vector<1xf32>
    %166 = vector.multi_reduction <add>, %165, %cst_43 [1, 2] : vector<1x6x6xf32> to vector<1xf32>
    %167 = vector.shape_cast %166 : vector<1xf32> to vector<1x1x1xf32>
    %168 = vector.extract %167[0, 0, 0] : f32 from vector<1x1x1xf32>
    %169 = vector.broadcast %168 : f32 to vector<1x8x128xf32>
    %c0_44 = arith.constant 0 : index
    %c0_45 = arith.constant 0 : index
    %c0_46 = arith.constant 0 : index
    %170 = vector.load %arg6[%c0_44, %c0_45, %c0_46] : memref<1x8x128xf32, #tpu.memory_space<vmem>>, vector<1x8x128xf32>
    tpu.vector_store %arg6[%c0_44, %c0_45, %c0_46], %169 {strides = array<i32>} : memref<1x8x128xf32, #tpu.memory_space<vmem>>, vector<1x8x128xf32>,
    return
  }
  func.func @transform_0(%arg0: i32) -> i32 {
    %c0_i32 = arith.constant 0 : i32
    %c0_i32_0 = arith.constant 0 : i32
    return %c0_i32 : i32
  }
  func.func @transform_1(%arg0: i32) -> (i32, i32) {
    %c0_i32 = arith.constant 0 : i32
    %c0_i32_0 = arith.constant 0 : i32
    %c0_i32_1 = arith.constant 0 : i32
    return %c0_i32, %c0_i32_0 : i32, i32
  }
  func.func @transform_2(%arg0: i32) -> (i32, i32) {
    %c0_i32 = arith.constant 0 : i32
    %c0_i32_0 = arith.constant 0 : i32
    %c0_i32_1 = arith.constant 0 : i32
    return %c0_i32, %c0_i32_0 : i32, i32
  }
  func.func @transform_3(%arg0: i32) -> (i32, i32, i32) {
    %c0_i32 = arith.constant 0 : i32
    %c0_i32_0 = arith.constant 0 : i32
    %c0_i32_1 = arith.constant 0 : i32
    return %arg0, %c0_i32, %c0_i32_0 : i32, i32, i32
  }
  func.func @transform_4(%arg0: i32) -> (i32, i32, i32) {
    %c0_i32 = arith.constant 0 : i32
    %c0_i32_0 = arith.constant 0 : i32
    %c0_i32_1 = arith.constant 0 : i32
    return %arg0, %c0_i32, %c0_i32_0 : i32, i32, i32
  }
  func.func @transform_5(%arg0: i32) -> (i32, i32, i32) {
    %c0_i32 = arith.constant 0 : i32
    %c0_i32_0 = arith.constant 0 : i32
    %c0_i32_1 = arith.constant 0 : i32
    return %arg0, %c0_i32, %c0_i32_0 : i32, i32, i32
  }
}

</mosaic_0001>

<bundles_post_ra>
// kernel: sdim_loss.1
= control target key start
LH: loop header
LB: loop body
LE: loop exit
PB: predicated region body
PF: predicated region fallthrough
CT: control target
= control target key end

     0   :  { %10 = vsyncpa [#allocation3], 0  ;;  %s15678_s18 = smov 0   ;;  %s17850_s0 = inlined_call_operand.vmem [shape: f32[2], index: 0, kind: input, shape index: {}]   ;;  %s17851_s1 = inlined_call_operand.vmem [shape: f32[6,16], index: 1, kind: input, shape index: {}]   ;;  %s17852_s2 = inlined_call_operand.vmem [shape: f32[16,6], index: 2, kind: input, shape index: {}]   ;;  %s17853_s3 = inlined_call_operand.vmem [shape: f32[8,16,16], index: 3, kind: input, shape index: {}]   ;;  %s17854_s4 = inlined_call_operand.vmem [shape: f32[8,16,16], index: 4, kind: input, shape index: {}]   ;;  %s17855_s5 = inlined_call_operand.vmem [shape: f32[2,8,128], index: 5, kind: output, shape index: {}]  }
   0x1 LB: > { %s15684_s19 = sadd.s32 4294967295, %s15643_s18   ;;  %p13590_p0 = scmp.ge.s32.totalorder %s15643_s18, 1  ;;  %s15643_s18 = sphi %s15678_s18, %s16_s18  }
   0x2   : > { %p162_p1 = scmp.lt.s32.totalorder %s15643_s18, 3  ;;  %s175_s22 = sshll.u32 %s17850_s0, 4  ;;  %s176_s22 = int_to_ptr.vmem [resolvable:$true] %s175_s22 }
   0x3   : > { %p15597_p3 = scmp.eq.s32.totalorder %s15684_s19, 0  ;;  %s15618_s24 = scalar_lea.vmem %s176_s22, 16 }
   0x4   : > { %p15691_p2 = pnand %p13590_p0, %p162_p1  ;;  %p15619_p6 = scmp.ne.s32.totalorder %s176_s22, %s15618_s24 }
   0x5   : > { %p15626_p10 = scmp.lt.s32.totalorder %s176_s22, %s176_s22  ;;  %p15627_p11 = scmp.lt.s32.totalorder %s15618_s24, %s15618_s24 }
   0x6   : > { %p15593_p4 = pneg %p15691_p2 }
   0x7   : > { %p15628_p12 = por %p15627_p11, %p15626_p10 }
   0x8   : > { %p15594_p5 = pnand %p15597_p3, %p15593_p4 }
   0xa   : > { %p15620_p7 = pneg %p15594_p5 }
   0xc   : > { %p15621_p8 = pnand %p15620_p7, %p15619_p6 }
   0xe   : > { %p15622_p9 = pneg %p15621_p8 }
  0x10   : > { %p15629_p13 = pnand %p15628_p12, %p15622_p9 }
  0x12   : > { %15632 = shalt.err (!%p15629_p13)
}
  0x13   : > { %s15645_s25 = smov [#allocation2]   ;;  %214 = sbr.rel (%p15691_p2) target bundleno = 1169 (0x491), region = 40 }
  0x14   : > { %15596 = dma.vmem_to_smem (!%p15594_p5), %s176_s22, 16, %s15645_s25, [#allocation3]  }
  0x18   : > { %15638 = dma.done.wait (%p15597_p3), [#allocation3], 16  }
  0x19   : > { %15640 = vsyncadd (%p15597_p3), [#allocation3], 4294967280 }
  0x1a   : > { %220 = sfence }
  0x1b   : > { %v271_v0 = vld [vmem:[%s17852_s2 + $0x8] sm:$0xff]  ;;  %v270_v1 = vld [vmem:[%s17852_s2] sm:$0xff]  ;;  %s13595_s30 = sshll.u32 %s15684_s19, 2  ;;  %vm288_vm0 = vcmask 130048   ;;  %vm15647_vm1 = vmmov 0   ;;  %s17405_s15 = sld [smem:[#allocation2]] }
  0x1c   : > { %v15713_v2 = vand.u32 4294901760, %v271_v0  ;;  %v15715_v3 = vand.u32 4294901760, %v270_v1  ;;  %p250_p0 = scmp.lt.s32.totalorder %s13595_s30, 7  ;;  %s17410_s16 = sld [smem:[#allocation2 + $0x1]]  ;;  %vm13498_vm2 = vcmask 46080  }
  0x1d   : > { %p263_p1 = scmp.lt.s32.totalorder %s15684_s19, 1 }
  0x1e   : > { %14267 = vmatprep.subr.mxu0 %v15713_v2  ;;  %v15719_v4 = vsub.f32 %v271_v0, %v15713_v2  ;;  %v15722_v5 = vsub.f32 %v270_v1, %v15715_v3  ;;  %s17981_s30 = smov (!%p250_p0, %s13595_s30), 7 }
  0x1f   : > { %14268 = vmatpush3.msra.mxu0 %v15713_v2  ;;  %s13605_s6 = sshll.u32 %s17981_s30, 4  ;;  %s17983_s19 = smov (!%p263_p1, %s15684_s19), 1 }
  0x20   : > { %v15726_v6 = vand.u32 4294901760, %v15719_v4  ;;  %14269 = vmatprep.subr.mxu0 %v15715_v3  ;;  %v15730_v7 = vand.u32 4294901760, %v15722_v5  ;;  %s15736_s9 = scalar_lea.vmem %s17853_s3, %s13605_s6  ;;  %s15741_s12 = scalar_lea.vmem %s17854_s4, %s13605_s6 }
  0x21   : > { %14270 = vmatpush3.msra.mxu0 %v15715_v3  ;;  %v15748_v10 = vld [vmem:[%s15736_s9] sm:$0xff]  ;;  %v15754_v12 = vld [vmem:[%s15736_s9 + $0x8] sm:$0xff]  ;;  %v15766_v16 = vld [vmem:[%s15736_s9 + $0x10] sm:$0xff]  ;;  %s13601_s17 = sshll.u32 %s17983_s19, 3 }
  0x22   : > { %v492_v8 = vsub.f32 %v15719_v4, %v15726_v6  ;;  %v499_v9 = vsub.f32 %v15722_v5, %v15730_v7  ;;  %v15751_v11 = vld [vmem:[%s15741_s12] sm:$0xff]  ;;  %14299 = vmatprep.subr.mxu0 %v15719_v4  ;;  %v290_v13 = vsel %vm288_vm0, %v15748_v10, 0  ;;  %v293_v15 = vsel %vm288_vm0, %v15754_v12, 0  ;;  %v15769_v17 = vld [vmem:[%s15736_s9 + $0x18] sm:$0xff]  ;;  %v15778_v21 = vld [vmem:[%s15741_s12 + $0x8] sm:$0xff]  ;;  %s266_s22 = scalar_lea.vmem %s17855_s5, %s13601_s17 }
  0x23   : > { %v15761_v14 = vmul.f32 %v15751_v11, %v15748_v10  ;;  %v15775_v20 = vand.u32 4294901760, %v290_v13  ;;  %v15780_v22 = vand.u32 4294901760, %v293_v15  ;;  %v15783_v23 = vld [vmem:[%s15736_s9 + $0x20] sm:$0xff]  ;;  %v15787_v24 = vmul.f32 %v15778_v21, %v15754_v12  ;;  %v15804_v30 = vld [vmem:[%s15736_s9 + $0x28] sm:$0xff]  ;;  %v15812_v33 = vld [vmem:[%s15736_s9 + $0x30] sm:$0xff] }
  0x24   : > { %v15771_v18 = vand.u32 4294901760, %v492_v8  ;;  %v15773_v19 = vand.u32 4294901760, %v499_v9  ;;  %v296_v25 = vsel %vm288_vm0, %v15766_v16, 0  ;;  %v299_v29 = vsel %vm288_vm0, %v15769_v17, 0  ;;  %v15829_v40 = vld [vmem:[%s15736_s9 + $0x38] sm:$0xff] }
  0x25   : > { %v15793_v26 = vsub.f32 %v290_v13, %v15775_v20  ;;  %14287 = vmatprep.mubr.f32.mxu1 %v15775_v20  ;;  %v15797_v27 = vsub.f32 %v293_v15, %v15780_v22  ;;  %v15799_v28 = vand.u32 4294901760, %v296_v25  ;;  %v15807_v31 = vand.u32 4294901760, %v299_v29 }
  0x26   : > { %14283 = vmatprep.subr.mxu1 %v15771_v18  ;;  %v302_v32 = vsel %vm288_vm0, %v15783_v23, 0  ;;  %v305_v39 = vsel %vm288_vm0, %v15804_v30, 0  ;;  %v308_v44 = vsel %vm288_vm0, %v15812_v33, 0  ;;  %v311_v52 = vsel %vm288_vm0, %v15829_v40, 0 }
  0x27   : > { %14284 = vmatpush3.msra.mxu1 %v15771_v18  ;;  %v382_v34 = vand.u32 4294901760, %v15793_v26  ;;  %v392_v35 = vand.u32 4294901760, %v15797_v27  ;;  %v15819_v36 = vsub.f32 %v296_v25, %v15799_v28  ;;  %v15822_v37 = vsub.f32 %v299_v29, %v15807_v31 }
  0x28   : > { %14285 = vmatprep.subr.mxu1 %v15773_v19  ;;  %v15824_v38 = vand.u32 4294901760, %v302_v32  ;;  %v15835_v43 = vand.u32 4294901760, %v305_v39  ;;  %v15844_v48 = vand.u32 4294901760, %v308_v44  ;;  %v15858_v58 = vand.u32 4294901760, %v311_v52 }
  0x29   : > { %14286 = vmatpush3.msra.mxu1 %v15773_v19  ;;  %v383_v41 = vsub.f32 %v15793_v26, %v382_v34  ;;  %v393_v42 = vsub.f32 %v15797_v27, %v392_v35  ;;  %v402_v45 = vand.u32 4294901760, %v15819_v36  ;;  %v412_v46 = vand.u32 4294901760, %v15822_v37 }
  0x2a   : > { %14288 = vmatmul.mubr.f32.vlgmr.msra.gmra.mxu1 %v15780_v22  ;;  %14315 = vmatprep.subr.mxu1 %v15713_v2  ;;  %v421_v47 = vsub.f32 %v302_v32, %v15824_v38  ;;  %v15847_v51 = vsub.f32 %v305_v39, %v15835_v43  ;;  %v441_v56 = vsub.f32 %v308_v44, %v15844_v48 }
  0x2b   : > { %14290 = vmatprep.mubr.f32.mxu1 %v15799_v28  ;;  %14316 = vmatpush3.msra.mxu1 %v15713_v2  ;;  %v384_v49 = vand.u32 4294901760, %v383_v41  ;;  %v394_v50 = vand.u32 4294901760, %v393_v42  ;;  %v403_v53 = vsub.f32 %v15819_v36, %v402_v45  ;;  %v413_v54 = vsub.f32 %v15822_v37, %v412_v46 }
  0x2c   : > { %14317 = vmatprep.subr.mxu1 %v15715_v3  ;;  %v422_v55 = vand.u32 4294901760, %v421_v47  ;;  %v432_v57 = vand.u32 4294901760, %v15847_v51  ;;  %v442_v62 = vand.u32 4294901760, %v441_v56  ;;  %v451_v0 = vsub.f32 %v311_v52, %v15858_v58 }
  0x2d   : > { %14318 = vmatpush3.msra.mxu1 %v15715_v3  ;;  %14271 = vmatprep.mubr.f32.mxu0 %v384_v49  ;;  %v404_v59 = vand.u32 4294901760, %v403_v53  ;;  %v414_v60 = vand.u32 4294901760, %v413_v54  ;;  %v15947_v54 = vld [vmem:[%s15741_s12 + $0x38] sm:$0xff] }
  0x2e   : > { %14291 = vmatmul.mubr.f32.gmra.mxu1 %v15807_v31  ;;  %14272 = vmatmul.mubr.f32.vlgmr.msra.gmra.mxu0 %v394_v50  ;;  %v423_v61 = vsub.f32 %v421_v47, %v422_v55  ;;  %v433_v63 = vsub.f32 %v15847_v51, %v432_v57  ;;  %v443_v8 = vsub.f32 %v441_v56, %v442_v62  ;;  %v452_v9 = vand.u32 4294901760, %v451_v0 }
  0x2f   : > { %14293 = vmatprep.mubr.f32.mxu1 %v15824_v38  ;;  %14300 = vmatpush3.msra.mxu0 %v15719_v4 }
  0x30   : > { %14347 = vmatprep.subr.mxu1 %v15713_v2  ;;  %14274 = vmatprep.mubr.f32.mxu0 %v404_v59  ;;  %v424_v1 = vand.u32 4294901760, %v423_v61  ;;  %v434_v13 = vand.u32 4294901760, %v433_v63  ;;  %v444_v15 = vand.u32 4294901760, %v443_v8  ;;  %v453_v25 = vsub.f32 %v451_v0, %v452_v9 }
  0x31   : > { %14301 = vmatprep.subr.mxu0 %v15722_v5  ;;  %v1095_v61 = vsel %vm288_vm0, %v15947_v54, 0 }
  0x32   : > { %14294 = vmatmul.mubr.f32.gmra.mxu1 %v15835_v43  ;;  %14302 = vmatpush3.msra.mxu0 %v15722_v5  ;;  %v454_v29 = vand.u32 4294901760, %v453_v25 }
  0x33   : > { %14275 = vmatmul.mubr.f32.gmra.mxu0 %v414_v60  ;;  %14296 = vmatprep.mubr.f32.mxu1 %v15844_v48 }
  0x34   : > { %14277 = vmatprep.mubr.f32.mxu0 %v424_v1  ;;  %14331 = vmatprep.subr.mxu0 %v15726_v6 }
  0x36   : > { %14297 = vmatmul.mubr.f32.gmra.mxu1 %v15858_v58 }
  0x37   : > { %14278 = vmatmul.mubr.f32.gmra.mxu0 %v434_v13  ;;  %14319 = vmatprep.mubr.f32.mxu1 %v382_v34  ;;  %v1077_v34 = vsel %vm288_vm0, %v15778_v21, 0 }
  0x38   : > { %14280 = vmatprep.mubr.f32.mxu0 %v444_v15  ;;  %v15907_v41 = vand.u32 4294901760, %v1077_v34 }
  0x3a   : > { %14320 = vmatmul.mubr.f32.vlgmr.msra.gmra.mxu1 %v392_v35  ;;  %v15929_v49 = vsub.f32 %v1077_v34, %v15907_v41 }
  0x3b   : > { %14281 = vmatmul.mubr.f32.gmra.mxu0 %v454_v29  ;;  %14322 = vmatprep.mubr.f32.mxu1 %v402_v45 }
  0x3c   : > { %14303 = vmatprep.mubr.f32.mxu0 %v15793_v26  ;;  %14348 = vmatpush3.msra.mxu1 %v15713_v2  ;;  %v1074_v26 = vsel %vm288_vm0, %v15751_v11, 0 }
  0x3d   : > { %14349 = vmatprep.subr.mxu1 %v15715_v3  ;;  %v15890_v32 = vand.u32 4294901760, %v1074_v26 }
  0x3e   : > { %14323 = vmatmul.mubr.f32.gmra.mxu1 %v412_v46  ;;  %v15919_v46 = vld [vmem:[%s15741_s12 + $0x28] sm:$0xff] }
  0x3f   : > { %14304 = vmatmul.mubr.f32.vlgmr.msra.gmra.mxu0 %v15797_v27  ;;  %14325 = vmatprep.mubr.f32.mxu1 %v422_v55  ;;  %v15886_v27 = vld [vmem:[%s15741_s12 + $0x10] sm:$0xff]  ;;  %v15905_v39 = vsub.f32 %v1074_v26, %v15890_v32  ;;  %v1176_v55 = vand.u32 4294901760, %v15929_v49 }
  0x40   : > { %14332 = vmatpush3.msra.mxu0 %v15726_v6  ;;  %14306 = vmatprep.mubr.f32.mxu0 %v15819_v36  ;;  %v1080_v35 = vsel %vm288_vm0, %v15886_v27, 0  ;;  %v15897_v36 = vld [vmem:[%s15741_s12 + $0x18] sm:$0xff] }
  0x41   : > { %14333 = vmatprep.subr.mxu0 %v15730_v7  ;;  %14350 = vmatpush3.msra.mxu1 %v15715_v3  ;;  %v15911_v42 = vand.u32 4294901760, %v1080_v35  ;;  %v1083_v44 = vsel %vm288_vm0, %v15897_v36, 0 }
  0x42   : > { %14326 = vmatmul.mubr.f32.gmra.mxu1 %v432_v57  ;;  %14334 = vmatpush3.msra.mxu0 %v15730_v7  ;;  %v15931_v50 = vand.u32 4294901760, %v1083_v44 }
  0x43   : > { %14307 = vmatmul.mubr.f32.gmra.mxu0 %v15822_v37  ;;  %14328 = vmatprep.mubr.f32.mxu1 %v442_v62  ;;  %v15901_v37 = vld [vmem:[%s15741_s12 + $0x20] sm:$0xff] }
  0x44   : > { %14309 = vmatprep.mubr.f32.mxu0 %v421_v47  ;;  %14363 = vmatprep.subr.mxu0 %v15713_v2  ;;  %v1086_v45 = vsel %vm288_vm0, %v15901_v37, 0  ;;  %v15923_v47 = vld [vmem:[%s15741_s12 + $0x30] sm:$0xff] }
  0x45   : > { %14379 = vmatprep.subr.mxu1 %v15771_v18  ;;  %v15938_v52 = vand.u32 4294901760, %v1086_v45  ;;  %v1092_v53 = vsel %vm288_vm0, %v15923_v47, 0 }
  0x46   : > { %14329 = vmatmul.mubr.f32.gmra.mxu1 %v452_v9  ;;  %v15968_v60 = vand.u32 4294901760, %v1092_v53 }
  0x47   : > { %14310 = vmatmul.mubr.f32.gmra.mxu0 %v15847_v51  ;;  %14351 = vmatprep.mubr.f32.mxu1 %v15775_v20  ;;  %v15936_v51 = vsub.f32 %v1080_v35, %v15911_v42 }
  0x48   : > { %14312 = vmatprep.mubr.f32.mxu0 %v441_v56  ;;  %v15958_v56 = vsub.f32 %v1083_v44, %v15931_v50  ;;  %v15989_v9 = vsub.f32 %v1092_v53, %v15968_v60 }
  0x49   : > { %v1186_v59 = vand.u32 4294901760, %v15936_v51 }
  0x4a   : > { %14352 = vmatmul.mubr.f32.vlgmr.msra.gmra.mxu1 %v15780_v22  ;;  %v1196_v62 = vand.u32 4294901760, %v15958_v56  ;;  %v1226_v34 = vand.u32 4294901760, %v15989_v9 }
  0x4b   : > { %14313 = vmatmul.mubr.f32.gmra.mxu0 %v451_v0  ;;  %14354 = vmatprep.mubr.f32.mxu1 %v15799_v28  ;;  %v15983_v0 = vand.u32 4294901760, %v1095_v61  ;;  %v1187_v8 = vsub.f32 %v15936_v51, %v1186_v59 }
  0x4c   : > { %14335 = vmatprep.mubr.f32.mxu0 %v15775_v20  ;;  %14380 = vmatpush3.msra.mxu1 %v15771_v18  ;;  %v1166_v20 = vand.u32 4294901760, %v15905_v39  ;;  %v1197_v15 = vsub.f32 %v15958_v56, %v1196_v62 }
  0x4d   : > { %14381 = vmatprep.subr.mxu1 %v15773_v19  ;;  %v1188_v29 = vand.u32 4294901760, %v1187_v8 }
  0x4e   : > { %14355 = vmatmul.mubr.f32.gmra.mxu1 %v15807_v31 }
  0x4f   : > { %14336 = vmatmul.mubr.f32.vlgmr.msra.gmra.mxu0 %v15780_v22  ;;  %14357 = vmatprep.mubr.f32.mxu1 %v15824_v38  ;;  %v1089_v22 = vsel %vm288_vm0, %v15919_v46, 0 }
  0x50   : > { %14364 = vmatpush3.msra.mxu0 %v15713_v2  ;;  %14338 = vmatprep.mubr.f32.mxu0 %v15799_v28  ;;  %v1167_v28 = vsub.f32 %v15905_v39, %v1166_v20  ;;  %v15960_v57 = vand.u32 4294901760, %v1089_v22 }
  0x51   : > { %14365 = vmatprep.subr.mxu0 %v15715_v3  ;;  %14382 = vmatpush3.msra.mxu1 %v15773_v19 }
  0x52   : > { %14358 = vmatmul.mubr.f32.gmra.mxu1 %v15835_v43  ;;  %14366 = vmatpush3.msra.mxu0 %v15715_v3  ;;  %v15981_v63 = vsub.f32 %v1089_v22, %v15960_v57  ;;  %v1168_v1 = vand.u32 4294901760, %v1167_v28  ;;  %v1227_v22 = vsub.f32 %v15989_v9, %v1226_v34 }
  0x53   : > { %14339 = vmatmul.mubr.f32.gmra.mxu0 %v15807_v31  ;;  %14360 = vmatprep.mubr.f32.mxu1 %v15844_v48  ;;  %v15966_v31 = vsub.f32 %v1086_v45, %v15938_v52 }
  0x54   : > { %14341 = vmatprep.mubr.f32.mxu0 %v15824_v38  ;;  %14395 = vmatprep.subr.mxu0 %v15719_v4  ;;  %v1177_v38 = vsub.f32 %v15929_v49, %v1176_v55  ;;  %v1216_v25 = vand.u32 4294901760, %v15981_v63 }
  0x55   : > { %14411 = vmatprep.subr.mxu1 %v15713_v2 }
  0x56   : > { %14361 = vmatmul.mubr.f32.gmra.mxu1 %v15858_v58  ;;  %v1178_v13 = vand.u32 4294901760, %v1177_v38  ;;  %v1217_v35 = vsub.f32 %v15981_v63, %v1216_v25  ;;  %v16019_v38 = vmul.f32 %v15886_v27, %v15766_v16 }
  0x57   : > { %14342 = vmatmul.mubr.f32.gmra.mxu0 %v15835_v43  ;;  %14383 = vmatprep.mubr.f32.mxu1 %v15890_v32  ;;  %v1206_v43 = vand.u32 4294901760, %v15966_v31 }
  0x58   : > { %14344 = vmatprep.mubr.f32.mxu0 %v15844_v48  ;;  %v15997_v48 = vsub.f32 %v1095_v61, %v15983_v0  ;;  %v1218_v53 = vand.u32 4294901760, %v1217_v35  ;;  %v1228_v61 = vand.u32 4294901760, %v1227_v22 }
  0x59   : > { %v1207_v26 = vsub.f32 %v15966_v31, %v1206_v43 }
  0x5a   : > { %14384 = vmatmul.mubr.f32.vlgmr.msra.gmra.mxu1 %v15907_v41  ;;  %v1236_v44 = vand.u32 4294901760, %v15997_v48 }
  0x5b   : > { %14345 = vmatmul.mubr.f32.gmra.mxu0 %v15858_v58  ;;  %14386 = vmatprep.mubr.f32.mxu1 %v15911_v42  ;;  %v1198_v58 = vand.u32 4294901760, %v1197_v15  ;;  %v1208_v45 = vand.u32 4294901760, %v1207_v26 }
  0x5c   : > { %14367 = vmatprep.mubr.f32.mxu0 %v1168_v1  ;;  %14412 = vmatpush3.msra.mxu1 %v15713_v2  ;;  %v1237_v28 = vsub.f32 %v15997_v48, %v1236_v44  ;;  %v16024_v1 = vmul.f32 %v15897_v36, %v15769_v17 }
  0x5d   : > { %14413 = vmatprep.subr.mxu1 %v15715_v3 }
  0x5e   : > { %14387 = vmatmul.mubr.f32.gmra.mxu1 %v15931_v50  ;;  %v1238_v8 = vand.u32 4294901760, %v1237_v28 }
  0x5f   : > { %14368 = vmatmul.mubr.f32.vlgmr.msra.gmra.mxu0 %v1178_v13  ;;  %14389 = vmatprep.mubr.f32.mxu1 %v15938_v52  ;;  %v1857_v13 = vmul.f32 %v15748_v10, %v15748_v10 }
  0x60   : > { %14396 = vmatpush3.msra.mxu0 %v15719_v4  ;;  %14370 = vmatprep.mubr.f32.mxu0 %v1188_v29  ;;  %v1864_v29 = vmul.f32 %v15829_v40, %v15829_v40 }
  0x61   : > { %14397 = vmatprep.subr.mxu0 %v15722_v5  ;;  %14414 = vmatpush3.msra.mxu1 %v15715_v3  ;;  %v1866_v10 = vsel %vm288_vm0, %v1857_v13, 0 }
  0x62   : > { %14390 = vmatmul.mubr.f32.gmra.mxu1 %v15960_v57  ;;  %14398 = vmatpush3.msra.mxu0 %v15722_v5  ;;  %v1887_v22 = vsel %vm288_vm0, %v1864_v29, 0 }
  0x63   : > { %14371 = vmatmul.mubr.f32.gmra.mxu0 %v1198_v58  ;;  %14392 = vmatprep.mubr.f32.mxu1 %v15968_v60 }
  0x64   : > { %14373 = vmatprep.mubr.f32.mxu0 %v1208_v45  ;;  %14427 = vmatprep.subr.mxu0 %v15726_v6 }
  0x65   : > { %14443 = vmatprep.subr.mxu1 %v15713_v2 }
  0x66   : > { %14393 = vmatmul.mubr.f32.gmra.mxu1 %v15983_v0 }
  0x67   : > { %14374 = vmatmul.mubr.f32.gmra.mxu0 %v1218_v53  ;;  %14415 = vmatprep.mubr.f32.mxu1 %v1166_v20  ;;  %v1859_v20 = vmul.f32 %v15766_v16, %v15766_v16 }
  0x68   : > { %14376 = vmatprep.mubr.f32.mxu0 %v1228_v61  ;;  %v16133_v61 = vand.u32 4294901760, %v1887_v22 }
  0x6a   : > { %14416 = vmatmul.mubr.f32.vlgmr.msra.gmra.mxu1 %v1176_v55  ;;  %v1872_v55 = vsel %vm288_vm0, %v1859_v20, 0 }
  0x6b   : > { %14377 = vmatmul.mubr.f32.gmra.mxu0 %v1238_v8  ;;  %14418 = vmatprep.mubr.f32.mxu1 %v1186_v59 }
  0x6c   : > { %14399 = vmatprep.mubr.f32.mxu0 %v15905_v39  ;;  %14444 = vmatpush3.msra.mxu1 %v15713_v2  ;;  %v1858_v39 = vmul.f32 %v15754_v12, %v15754_v12 }
  0x6d   : > { %14445 = vmatprep.subr.mxu1 %v15715_v3 }
  0x6e   : > { %14419 = vmatmul.mubr.f32.gmra.mxu1 %v1196_v62  ;;  %v1869_v12 = vsel %vm288_vm0, %v1858_v39, 0  ;;  %v1862_v62 = vmul.f32 %v15804_v30, %v15804_v30 }
  0x6f   : > { %14400 = vmatmul.mubr.f32.vlgmr.msra.gmra.mxu0 %v15929_v49  ;;  %14421 = vmatprep.mubr.f32.mxu1 %v1206_v43  ;;  %v16052_v49 = vand.u32 4294901760, %v1866_v10  ;;  %v16062_v16 = vand.u32 4294901760, %v1869_v12  ;;  %v1863_v43 = vmul.f32 %v15812_v33, %v15812_v33 }
  0x70   : > { %14428 = vmatpush3.msra.mxu0 %v15726_v6  ;;  %14402 = vmatprep.mubr.f32.mxu0 %v15936_v51  ;;  %v1860_v51 = vmul.f32 %v15769_v17, %v15769_v17  ;;  %v16071_v17 = vand.u32 4294901760, %v1872_v55 }
  0x71   : > { %14429 = vmatprep.subr.mxu0 %v15730_v7  ;;  %14446 = vmatpush3.msra.mxu1 %v15715_v3  ;;  %v16067_v59 = vsub.f32 %v1866_v10, %v16052_v49  ;;  %v1884_v26 = vsel %vm288_vm0, %v1863_v43, 0 }
  0x72   : > { %14422 = vmatmul.mubr.f32.gmra.mxu1 %v1216_v25  ;;  %14430 = vmatpush3.msra.mxu0 %v15730_v7  ;;  %v16092_v25 = vsub.f32 %v1872_v55, %v16071_v17  ;;  %v16121_v45 = vand.u32 4294901760, %v1884_v26 }
  0x73   : > { %14403 = vmatmul.mubr.f32.gmra.mxu0 %v15958_v56  ;;  %14424 = vmatprep.mubr.f32.mxu1 %v1226_v34  ;;  %v1861_v56 = vmul.f32 %v15783_v23, %v15783_v23 }
  0x74   : > { %14405 = vmatprep.mubr.f32.mxu0 %v15966_v31  ;;  %14459 = vmatprep.subr.mxu0 %v15713_v2  ;;  %v1875_v31 = vsel %vm288_vm0, %v1860_v51, 0 }
  0x75   : > { %14475 = vmatprep.subr.mxu1 %v15771_v18  ;;  %v16087_v15 = vand.u32 4294901760, %v1875_v31 }
  0x76   : > { %14425 = vmatmul.mubr.f32.gmra.mxu1 %v1236_v44  ;;  %v1978_v44 = vand.u32 4294901760, %v16092_v25 }
  0x77   : > { %14406 = vmatmul.mubr.f32.gmra.mxu0 %v15981_v63  ;;  %14447 = vmatprep.mubr.f32.mxu1 %v15890_v32  ;;  %v1878_v63 = vsel %vm288_vm0, %v1861_v56, 0  ;;  %v16111_v58 = vsub.f32 %v1875_v31, %v16087_v15 }
  0x78   : > { %14408 = vmatprep.mubr.f32.mxu0 %v15989_v9  ;;  %v16085_v9 = vsub.f32 %v1869_v12, %v16062_v16  ;;  %v1979_v13 = vsub.f32 %v16092_v25, %v1978_v44 }
  0x79   : > { %v1988_v53 = vand.u32 4294901760, %v16111_v58 }
  0x7a   : > { %14448 = vmatmul.mubr.f32.vlgmr.msra.gmra.mxu1 %v15907_v41  ;;  %v1968_v34 = vand.u32 4294901760, %v16085_v9  ;;  %v1980_v51 = vand.u32 4294901760, %v1979_v13 }
  0x7b   : > { %14409 = vmatmul.mubr.f32.gmra.mxu0 %v15997_v48  ;;  %14450 = vmatprep.mubr.f32.mxu1 %v15911_v42  ;;  %v16094_v48 = vand.u32 4294901760, %v1878_v63  ;;  %v1989_v20 = vsub.f32 %v16111_v58, %v1988_v53 }
  0x7c   : > { %14431 = vmatprep.mubr.f32.mxu0 %v15890_v32  ;;  %14476 = vmatpush3.msra.mxu1 %v15771_v18  ;;  %v1958_v32 = vand.u32 4294901760, %v16067_v59 }
  0x7d   : > { %14477 = vmatprep.subr.mxu1 %v15773_v19 }
  0x7e   : > { %14451 = vmatmul.mubr.f32.gmra.mxu1 %v15931_v50 }
  0x7f   : > { %14432 = vmatmul.mubr.f32.vlgmr.msra.gmra.mxu0 %v15907_v41  ;;  %14453 = vmatprep.mubr.f32.mxu1 %v15938_v52  ;;  %v1881_v41 = vsel %vm288_vm0, %v1862_v62, 0 }
  0x80   : > { %14460 = vmatpush3.msra.mxu0 %v15713_v2  ;;  %14434 = vmatprep.mubr.f32.mxu0 %v15911_v42  ;;  %v1959_v42 = vsub.f32 %v16067_v59, %v1958_v32  ;;  %v16113_v35 = vand.u32 4294901760, %v1881_v41 }
  0x81   : > { %14461 = vmatprep.subr.mxu0 %v15715_v3  ;;  %14478 = vmatpush3.msra.mxu1 %v15773_v19 }
  0x82   : > { %14454 = vmatmul.mubr.f32.gmra.mxu1 %v15960_v57  ;;  %14462 = vmatpush3.msra.mxu0 %v15715_v3  ;;  %v16131_v28 = vsub.f32 %v1881_v41, %v16113_v35  ;;  %v1960_v8 = vand.u32 4294901760, %v1959_v42 }
  0x83   : > { %14435 = vmatmul.mubr.f32.gmra.mxu0 %v15931_v50  ;;  %14456 = vmatprep.mubr.f32.mxu1 %v15968_v60  ;;  %v16119_v50 = vsub.f32 %v1878_v63, %v16094_v48 }
  0x84   : > { %14437 = vmatprep.mubr.f32.mxu0 %v15938_v52  ;;  %14491 = vmatprep.subr.mxu0 %v15719_v4  ;;  %v1969_v52 = vsub.f32 %v16085_v9, %v1968_v34  ;;  %v2008_v12 = vand.u32 4294901760, %v16131_v28 }
  0x85   : > { %14507 = vmatprep.subr.mxu1 %v15713_v2  ;;  %v1998_v39 = vand.u32 4294901760, %v16119_v50 }
  0x86   : > { %14457 = vmatmul.mubr.f32.gmra.mxu1 %v15983_v0  ;;  %v1970_v10 = vand.u32 4294901760, %v1969_v52  ;;  %v2009_v31 = vsub.f32 %v16131_v28, %v2008_v12  ;;  %v2654_v52 = vmul.f32 %v15919_v46, %v15919_v46 }
  0x87   : > { %14438 = vmatmul.mubr.f32.gmra.mxu0 %v15960_v57  ;;  %14479 = vmatprep.mubr.f32.mxu1 %v16052_v49  ;;  %v16139_v57 = vsub.f32 %v1884_v26, %v16121_v45  ;;  %v1999_v55 = vsub.f32 %v16119_v50, %v1998_v39 }
  0x88   : > { %14440 = vmatprep.mubr.f32.mxu0 %v15968_v60  ;;  %v16147_v60 = vsub.f32 %v1887_v22, %v16133_v61  ;;  %v2010_v41 = vand.u32 4294901760, %v2009_v31 }
  0x89   : > { %v2018_v56 = vand.u32 4294901760, %v16139_v57  ;;  %v2000_v63 = vand.u32 4294901760, %v1999_v55 }
  0x8a   : > { %14480 = vmatmul.mubr.f32.vlgmr.msra.gmra.mxu1 %v16062_v16  ;;  %v2028_v62 = vand.u32 4294901760, %v16147_v60 }
  0x8b   : > { %14441 = vmatmul.mubr.f32.gmra.mxu0 %v15983_v0  ;;  %14482 = vmatprep.mubr.f32.mxu1 %v16071_v17  ;;  %v1990_v0 = vand.u32 4294901760, %v1989_v20  ;;  %v2019_v43 = vsub.f32 %v16139_v57, %v2018_v56 }
  0x8c   : > { %14463 = vmatprep.mubr.f32.mxu0 %v1960_v8  ;;  %14508 = vmatpush3.msra.mxu1 %v15713_v2  ;;  %v2029_v29 = vsub.f32 %v16147_v60, %v2028_v62 }
  0x8d   : > { %14509 = vmatprep.subr.mxu1 %v15715_v3  ;;  %v2020_v26 = vand.u32 4294901760, %v2019_v43 }
  0x8e   : > { %14483 = vmatmul.mubr.f32.gmra.mxu1 %v16087_v15  ;;  %v2030_v42 = vand.u32 4294901760, %v2029_v29 }
  0x8f   : > { %14464 = vmatmul.mubr.f32.vlgmr.msra.gmra.mxu0 %v1970_v10  ;;  %14485 = vmatprep.mubr.f32.mxu1 %v16094_v48  ;;  %v2656_v10 = vmul.f32 %v15947_v54, %v15947_v54 }
  0x90   : > { %14492 = vmatpush3.msra.mxu0 %v15719_v4  ;;  %14466 = vmatprep.mubr.f32.mxu0 %v1980_v51 }
  0x91   : > { %14493 = vmatprep.subr.mxu0 %v15722_v5  ;;  %14510 = vmatpush3.msra.mxu1 %v15715_v3 }
  0x92   : > { %14486 = vmatmul.mubr.f32.gmra.mxu1 %v16113_v35  ;;  %14494 = vmatpush3.msra.mxu0 %v15722_v5 }
  0x93   : > { %14467 = vmatmul.mubr.f32.gmra.mxu0 %v1990_v0  ;;  %14488 = vmatprep.mubr.f32.mxu1 %v16121_v45  ;;  %v2679_v0 = vsel %vm288_vm0, %v2656_v10, 0 }
  0x94   : > { %14469 = vmatprep.mubr.f32.mxu0 %v2000_v63  ;;  %14523 = vmatprep.subr.mxu0 %v15726_v6  ;;  %v16273_v63 = vand.u32 4294901760, %v2679_v0 }
  0x95   : > { %14539 = vmatprep.subr.mxu1 %v15713_v2 }
  0x96   : > { %14489 = vmatmul.mubr.f32.gmra.mxu1 %v16133_v61 }
  0x97   : > { %14470 = vmatmul.mubr.f32.gmra.mxu0 %v2010_v41  ;;  %14511 = vmatprep.mubr.f32.mxu1 %v1958_v32  ;;  %v2649_v32 = vmul.f32 %v15751_v11, %v15751_v11  ;;  %v2651_v11 = vmul.f32 %v15886_v27, %v15886_v27 }
  0x98   : > { %14472 = vmatprep.mubr.f32.mxu0 %v2020_v26 }
  0x9a   : > { %14512 = vmatmul.mubr.f32.vlgmr.msra.gmra.mxu1 %v1968_v34  ;;  %v2652_v34 = vmul.f32 %v15897_v36, %v15897_v36 }
  0x9b   : > { %14473 = vmatmul.mubr.f32.gmra.mxu0 %v2030_v42  ;;  %14514 = vmatprep.mubr.f32.mxu1 %v1978_v44  ;;  %v2653_v44 = vmul.f32 %v15901_v37, %v15901_v37 }
  0x9c   : > { %14495 = vmatprep.mubr.f32.mxu0 %v16067_v59  ;;  %14540 = vmatpush3.msra.mxu1 %v15713_v2  ;;  %v2650_v59 = vmul.f32 %v15778_v21, %v15778_v21  ;;  %v2667_v22 = vsel %vm288_vm0, %v2652_v34, 0 }
  0x9d   : > { %14541 = vmatprep.subr.mxu1 %v15715_v3  ;;  %v16227_v13 = vand.u32 4294901760, %v2667_v22 }
  0x9e   : > { %14515 = vmatmul.mubr.f32.gmra.mxu1 %v1988_v53  ;;  %v2661_v21 = vsel %vm288_vm0, %v2650_v59, 0  ;;  %v2670_v53 = vsel %vm288_vm0, %v2653_v44, 0 }
  0x9f   : > { %14496 = vmatmul.mubr.f32.vlgmr.msra.gmra.mxu0 %v16085_v9  ;;  %14517 = vmatprep.mubr.f32.mxu1 %v1998_v39  ;;  %v2658_v9 = vsel %vm288_vm0, %v2649_v32, 0 }
  0xa0   : > { %14524 = vmatpush3.msra.mxu0 %v15726_v6  ;;  %14498 = vmatprep.mubr.f32.mxu0 %v16092_v25  ;;  %v16192_v25 = vand.u32 4294901760, %v2658_v9 }
  0xa1   : > { %14525 = vmatprep.subr.mxu0 %v15730_v7  ;;  %14542 = vmatpush3.msra.mxu1 %v15715_v3 }
  0xa2   : > { %14518 = vmatmul.mubr.f32.gmra.mxu1 %v2008_v12  ;;  %14526 = vmatpush3.msra.mxu0 %v15730_v7  ;;  %v16205_v27 = vsub.f32 %v2658_v9, %v16192_v25 }
  0xa3   : > { %14499 = vmatmul.mubr.f32.gmra.mxu0 %v16111_v58  ;;  %14520 = vmatprep.mubr.f32.mxu1 %v2018_v56  ;;  %v2664_v58 = vsel %vm288_vm0, %v2651_v11, 0 }
  0xa4   : > { %14501 = vmatprep.mubr.f32.mxu0 %v16119_v50  ;;  %14555 = vmatprep.subr.mxu0 %v15713_v2  ;;  %v16207_v50 = vand.u32 4294901760, %v2661_v21  ;;  %v16211_v36 = vand.u32 4294901760, %v2664_v58 }
  0xa5   : > { %14571 = vmatprep.subr.mxu1 %v15771_v18 }
  0xa6   : > { %14521 = vmatmul.mubr.f32.gmra.mxu1 %v2028_v62  ;;  %v16225_v8 = vsub.f32 %v2661_v21, %v16207_v50  ;;  %v16232_v39 = vsub.f32 %v2664_v58, %v16211_v36 }
  0xa7   : > { %14502 = vmatmul.mubr.f32.gmra.mxu0 %v16131_v28  ;;  %14543 = vmatprep.mubr.f32.mxu1 %v16052_v49  ;;  %v2655_v28 = vmul.f32 %v15923_v47, %v15923_v47 }
  0xa8   : > { %14504 = vmatprep.mubr.f32.mxu0 %v16139_v57  ;;  %v16234_v57 = vand.u32 4294901760, %v2670_v53  ;;  %v2760_v12 = vand.u32 4294901760, %v16225_v8  ;;  %v2770_v55 = vand.u32 4294901760, %v16232_v39 }
  0xa9   : > { %v2676_v20 = vsel %vm288_vm0, %v2655_v28, 0 }
  0xaa   : > { %14544 = vmatmul.mubr.f32.vlgmr.msra.gmra.mxu1 %v16062_v16  ;;  %v16261_v56 = vand.u32 4294901760, %v2676_v20  ;;  %v2771_v41 = vsub.f32 %v16232_v39, %v2770_v55 }
  0xab   : > { %14505 = vmatmul.mubr.f32.gmra.mxu0 %v16147_v60  ;;  %14546 = vmatprep.mubr.f32.mxu1 %v16071_v17  ;;  %v16251_v60 = vsub.f32 %v2667_v22, %v16227_v13 }
  0xac   : > { %14527 = vmatprep.mubr.f32.mxu0 %v16052_v49  ;;  %14572 = vmatpush3.msra.mxu1 %v15771_v18  ;;  %v2750_v49 = vand.u32 4294901760, %v16205_v27  ;;  %v2772_v59 = vand.u32 4294901760, %v2771_v41 }
  0xad   : > { %14573 = vmatprep.subr.mxu1 %v15773_v19  ;;  %v2780_v31 = vand.u32 4294901760, %v16251_v60 }
  0xae   : > { %14547 = vmatmul.mubr.f32.gmra.mxu1 %v16087_v15 }
  0xaf   : > { %14528 = vmatmul.mubr.f32.vlgmr.msra.gmra.mxu0 %v16062_v16  ;;  %14549 = vmatprep.mubr.f32.mxu1 %v16094_v48  ;;  %v2673_v16 = vsel %vm288_vm0, %v2654_v52, 0  ;;  %v2781_v42 = vsub.f32 %v16251_v60, %v2780_v31 }
  0xb0   : > { %14556 = vmatpush3.msra.mxu0 %v15713_v2  ;;  %14530 = vmatprep.mubr.f32.mxu0 %v16071_v17  ;;  %v2751_v17 = vsub.f32 %v16205_v27, %v2750_v49  ;;  %v16253_v51 = vand.u32 4294901760, %v2673_v16 }
  0xb1   : > { %14557 = vmatprep.subr.mxu0 %v15715_v3  ;;  %14574 = vmatpush3.msra.mxu1 %v15773_v19 }
  0xb2   : > { %14550 = vmatmul.mubr.f32.gmra.mxu1 %v16113_v35  ;;  %14558 = vmatpush3.msra.mxu0 %v15715_v3  ;;  %v16271_v62 = vsub.f32 %v2673_v16, %v16253_v51  ;;  %v2752_v43 = vand.u32 4294901760, %v2751_v17 }
  0xb3   : > { %14531 = vmatmul.mubr.f32.gmra.mxu0 %v16087_v15  ;;  %14552 = vmatprep.mubr.f32.mxu1 %v16121_v45  ;;  %v16259_v15 = vsub.f32 %v2670_v53, %v16234_v57 }
  0xb4   : > { %14533 = vmatprep.mubr.f32.mxu0 %v16094_v48  ;;  %14587 = vmatprep.subr.mxu0 %v15719_v4  ;;  %v2761_v48 = vsub.f32 %v16225_v8, %v2760_v12  ;;  %v2800_v32 = vand.u32 4294901760, %v16271_v62 }
  0xb5   : > { %14603 = vmatprep.subr.mxu1 %v15713_v2  ;;  %v2790_v29 = vand.u32 4294901760, %v16259_v15 }
  0xb6   : > { %14553 = vmatmul.mubr.f32.gmra.mxu1 %v16133_v61  ;;  %v2762_v26 = vand.u32 4294901760, %v2761_v48  ;;  %v2801_v21 = vsub.f32 %v16271_v62, %v2800_v32 }
  0xb7   : > { %14534 = vmatmul.mubr.f32.gmra.mxu0 %v16113_v35  ;;  %14575 = vmatprep.mubr.f32.mxu1 %v16192_v25  ;;  %v16279_v35 = vsub.f32 %v2676_v20, %v16261_v56  ;;  %v2791_v9 = vsub.f32 %v16259_v15, %v2790_v29  ;;  %v3447_v20 = vmul.f32 %v15923_v47, %v15812_v33 }
  0xb8   : > { %14536 = vmatprep.mubr.f32.mxu0 %v16121_v45  ;;  %v16287_v45 = vsub.f32 %v2679_v0, %v16273_v63  ;;  %v2802_v22 = vand.u32 4294901760, %v2801_v21  ;;  %v3448_v47 = vmul.f32 %v15947_v54, %v15829_v40 }
  0xb9   : > { %v2810_v11 = vand.u32 4294901760, %v16279_v35  ;;  %v2792_v58 = vand.u32 4294901760, %v2791_v9 }
  0xba   : > { %14576 = vmatmul.mubr.f32.vlgmr.msra.gmra.mxu1 %v16207_v50  ;;  %v2820_v34 = vand.u32 4294901760, %v16287_v45 }
  0xbb   : > { %14537 = vmatmul.mubr.f32.gmra.mxu0 %v16133_v61  ;;  %14578 = vmatprep.mubr.f32.mxu1 %v16211_v36  ;;  %v2782_v61 = vand.u32 4294901760, %v2781_v42  ;;  %v2811_v44 = vsub.f32 %v16279_v35, %v2810_v11 }
  0xbc   : > { %14559 = vmatprep.mubr.f32.mxu0 %v2752_v43  ;;  %14604 = vmatpush3.msra.mxu1 %v15713_v2  ;;  %v2821_v52 = vsub.f32 %v16287_v45, %v2820_v34 }
  0xbd   : > { %14605 = vmatprep.subr.mxu1 %v15715_v3  ;;  %v2812_v53 = vand.u32 4294901760, %v2811_v44 }
  0xbe   : > { %14579 = vmatmul.mubr.f32.gmra.mxu1 %v16227_v13  ;;  %v2822_v28 = vand.u32 4294901760, %v2821_v52 }
  0xbf   : > { %14560 = vmatmul.mubr.f32.vlgmr.msra.gmra.mxu0 %v2762_v26  ;;  %14581 = vmatprep.mubr.f32.mxu1 %v16234_v57 }
  0xc0   : > { %14588 = vmatpush3.msra.mxu0 %v15719_v4  ;;  %14562 = vmatprep.mubr.f32.mxu0 %v2772_v59 }
  0xc1   : > { %14589 = vmatprep.subr.mxu0 %v15722_v5  ;;  %14606 = vmatpush3.msra.mxu1 %v15715_v3 }
  0xc2   : > { %14582 = vmatmul.mubr.f32.gmra.mxu1 %v16253_v51  ;;  %14590 = vmatpush3.msra.mxu0 %v15722_v5 }
  0xc3   : > { %14563 = vmatmul.mubr.f32.gmra.mxu0 %v2782_v61  ;;  %14584 = vmatprep.mubr.f32.mxu1 %v16261_v56 }
  0xc4   : > { %14565 = vmatprep.mubr.f32.mxu0 %v2792_v58  ;;  %14619 = vmatprep.subr.mxu0 %v15726_v6 }
  0xc5   : > { %14635 = vmatprep.subr.mxu1 %v15713_v2 }
  0xc6   : > { %14585 = vmatmul.mubr.f32.gmra.mxu1 %v16273_v63 }
  0xc7   : > { %14566 = vmatmul.mubr.f32.gmra.mxu0 %v2802_v22  ;;  %14607 = vmatprep.mubr.f32.mxu1 %v2750_v49 }
  0xc8   : > { %14568 = vmatprep.mubr.f32.mxu0 %v2812_v53 }
  0xca   : > { %14608 = vmatmul.mubr.f32.vlgmr.msra.gmra.mxu1 %v2760_v12 }
  0xcb   : > { %14569 = vmatmul.mubr.f32.gmra.mxu0 %v2822_v28  ;;  %14610 = vmatprep.mubr.f32.mxu1 %v2770_v55 }
  0xcc   : > { %14591 = vmatprep.mubr.f32.mxu0 %v16205_v27  ;;  %14636 = vmatpush3.msra.mxu1 %v15713_v2  ;;  %v3450_v27 = vsel %vm288_vm0, %v15761_v14, 0  ;;  %v3445_v14 = vmul.f32 %v15901_v37, %v15783_v23  ;;  %v3459_v23 = vsel %vm288_vm0, %v16024_v1, 0  ;;  %v3446_v37 = vmul.f32 %v15919_v46, %v15804_v30 }
  0xcd   : > { %14637 = vmatprep.subr.mxu1 %v15715_v3  ;;  %v16327_v49 = vand.u32 4294901760, %v3450_v27 }
  0xce   : > { %14611 = vmatmul.mubr.f32.gmra.mxu1 %v2780_v31  ;;  %v3465_v46 = vsel %vm288_vm0, %v3446_v37, 0 }
  0xcf   : > { %14592 = vmatmul.mubr.f32.vlgmr.msra.gmra.mxu0 %v16225_v8  ;;  %14613 = vmatprep.mubr.f32.mxu1 %v2790_v29  ;;  %v3453_v8 = vsel %vm288_vm0, %v15787_v24, 0  ;;  %v16342_v10 = vsub.f32 %v3450_v27, %v16327_v49 }
  0xd0   : > { %14620 = vmatpush3.msra.mxu0 %v15726_v6  ;;  %14594 = vmatprep.mubr.f32.mxu0 %v16232_v39  ;;  %v3456_v39 = vsel %vm288_vm0, %v16019_v38, 0  ;;  %v16337_v16 = vand.u32 4294901760, %v3453_v8  ;;  %v3462_v38 = vsel %vm288_vm0, %v3445_v14, 0 }
  0xd1   : > { %14621 = vmatprep.subr.mxu0 %v15730_v7  ;;  %14638 = vmatpush3.msra.mxu1 %v15715_v3  ;;  %v16346_v24 = vand.u32 4294901760, %v3456_v39  ;;  %v16370_v33 = vand.u32 4294901760, %v3462_v38 }
  0xd2   : > { %14614 = vmatmul.mubr.f32.gmra.mxu1 %v2800_v32  ;;  %14622 = vmatpush3.msra.mxu0 %v15730_v7  ;;  %v16361_v1 = vsub.f32 %v3453_v8, %v16337_v16 }
  0xd3   : > { %14595 = vmatmul.mubr.f32.gmra.mxu0 %v16251_v60  ;;  %14616 = vmatprep.mubr.f32.mxu1 %v2810_v11  ;;  %v16368_v30 = vsub.f32 %v3456_v39, %v16346_v24  ;;  %v3471_v60 = vsel %vm288_vm0, %v3448_v47, 0 }
  0xd4   : > { %14597 = vmatprep.mubr.f32.mxu0 %v16259_v15  ;;  %14651 = vmatprep.subr.mxu0 %v15713_v2  ;;  %v3552_v40 = vand.u32 4294901760, %v16361_v1  ;;  %v16411_v0 = vand.u32 4294901760, %v3471_v60 }
  0xd5   : > { %14667 = vmatprep.subr.mxu1 %v15771_v18  ;;  %v3562_v17 = vand.u32 4294901760, %v16368_v30 }
  0xd6   : > { %14617 = vmatmul.mubr.f32.gmra.mxu1 %v2820_v34 }
  0xd7   : > { %14598 = vmatmul.mubr.f32.gmra.mxu0 %v16271_v62  ;;  %14639 = vmatprep.mubr.f32.mxu1 %v16192_v25 }
  0xd8   : > { %14600 = vmatprep.mubr.f32.mxu0 %v16279_v35  ;;  %v16431_v35 = vsub.f32 %v3471_v60, %v16411_v0 }
  0xda   : > { %14640 = vmatmul.mubr.f32.vlgmr.msra.gmra.mxu1 %v16207_v50  ;;  %v3612_v61 = vand.u32 4294901760, %v16431_v35 }
  0xdb   : > { %14601 = vmatmul.mubr.f32.gmra.mxu0 %v16287_v45  ;;  %14642 = vmatprep.mubr.f32.mxu1 %v16211_v36 }
  0xdc   : > { %14623 = vmatprep.mubr.f32.mxu0 %v16192_v25  ;;  %14668 = vmatpush3.msra.mxu1 %v15771_v18  ;;  %v3542_v18 = vand.u32 4294901760, %v16342_v10  ;;  %v16363_v25 = vand.u32 4294901760, %v3459_v23  ;;  %v3613_v53 = vsub.f32 %v16431_v35, %v3612_v61 }
  0xdd   : > { %14669 = vmatprep.subr.mxu1 %v15773_v19 }
  0xde   : > { %14643 = vmatmul.mubr.f32.gmra.mxu1 %v16227_v13  ;;  %v16387_v54 = vsub.f32 %v3459_v23, %v16363_v25  ;;  %v3614_v37 = vand.u32 4294901760, %v3613_v53 }
  0xdf   : > { %14624 = vmatmul.mubr.f32.vlgmr.msra.gmra.mxu0 %v16207_v50  ;;  %14645 = vmatprep.mubr.f32.mxu1 %v16234_v57  ;;  %v3468_v50 = vsel %vm288_vm0, %v3447_v20, 0 }
  0xe0   : > { %14652 = vmatpush3.msra.mxu0 %v15713_v2  ;;  %14626 = vmatprep.mubr.f32.mxu0 %v16211_v36  ;;  %v3543_v36 = vsub.f32 %v16342_v10, %v3542_v18  ;;  %v16397_v12 = vand.u32 4294901760, %v3468_v50  ;;  %v3572_v55 = vand.u32 4294901760, %v16387_v54 }
  0xe1   : > { %14653 = vmatprep.subr.mxu0 %v15715_v3  ;;  %14670 = vmatpush3.msra.mxu1 %v15773_v19  ;;  %v16389_v19 = vand.u32 4294901760, %v3465_v46 }
  0xe2   : > { %14646 = vmatmul.mubr.f32.gmra.mxu1 %v16253_v51  ;;  %14654 = vmatpush3.msra.mxu0 %v15715_v3  ;;  %v3544_v48 = vand.u32 4294901760, %v3543_v36  ;;  %v16419_v62 = vsub.f32 %v3468_v50, %v16397_v12 }
  0xe3   : > { %14627 = vmatmul.mubr.f32.gmra.mxu0 %v16227_v13  ;;  %14648 = vmatprep.mubr.f32.mxu1 %v16261_v56  ;;  %v16395_v13 = vsub.f32 %v3462_v38, %v16370_v33  ;;  %v16409_v15 = vsub.f32 %v3465_v46, %v16389_v19 }
  0xe4   : > { %14629 = vmatprep.mubr.f32.mxu0 %v16234_v57  ;;  %14683 = vmatprep.subr.mxu0 %v15719_v4  ;;  %v3553_v57 = vsub.f32 %v16361_v1, %v3552_v40  ;;  %v3602_v32 = vand.u32 4294901760, %v16419_v62 }
  0xe5   : > { %14699 = vmatprep.subr.mxu1 %v15713_v2  ;;  %v3582_v31 = vand.u32 4294901760, %v16395_v13  ;;  %v3592_v29 = vand.u32 4294901760, %v16409_v15 }
  0xe6   : > { %14649 = vmatmul.mubr.f32.gmra.mxu1 %v16273_v63  ;;  %v3554_v41 = vand.u32 4294901760, %v3553_v57  ;;  %v3603_v58 = vsub.f32 %v16419_v62, %v3602_v32 }
  0xe7   : > { %14630 = vmatmul.mubr.f32.gmra.mxu0 %v16253_v51  ;;  %14671 = vmatprep.mubr.f32.mxu1 %v16327_v49  ;;  %v3563_v51 = vsub.f32 %v16368_v30, %v3562_v17  ;;  %v3593_v11 = vsub.f32 %v16409_v15, %v3592_v29 }
  0xe8   : > { %14632 = vmatprep.mubr.f32.mxu0 %v16261_v56  ;;  %v3573_v56 = vsub.f32 %v16387_v54, %v3572_v55  ;;  %v3604_v8 = vand.u32 4294901760, %v3603_v58 }
  0xe9   : > { %v3564_v42 = vand.u32 4294901760, %v3563_v51 }
  0xea   : > { %v16421_v43 = vpop.f32.mrf.mxu1  ;;  %14672 = vmatmul.mubr.f32.vlgmr.msra.gmra.mxu1 %v16337_v16  ;;  %v3574_v9 = vand.u32 4294901760, %v3573_v56 }
  0xeb   : > { %14633 = vmatmul.mubr.f32.gmra.mxu0 %v16273_v63  ;;  %14674 = vmatprep.mubr.f32.mxu1 %v16346_v24  ;;  %v3583_v63 = vsub.f32 %v16395_v13, %v3582_v31 }
  0xec   : > { %14655 = vmatprep.mubr.f32.mxu0 %v3544_v48  ;;  %v16433_v26 = vpop.f32.mrf.mxu1  ;;  %14700 = vmatpush3.msra.mxu1 %v15713_v2 }
  0xed   : > { %14701 = vmatprep.subr.mxu1 %v15715_v3  ;;  %v3584_v34 = vand.u32 4294901760, %v3583_v63 }
  0xee   : > { %v14292_v45 = vpop.f32.mrf.mxu1  ;;  %14675 = vmatmul.mubr.f32.gmra.mxu1 %v16363_v25  ;;  %v16442_v59 = vpop.f32.mrf.mxu0 }
  0xef   : > { %14656 = vmatmul.mubr.f32.vlgmr.msra.gmra.mxu0 %v3554_v41  ;;  %14677 = vmatprep.mubr.f32.mxu1 %v16370_v33 }
  0xf0   : > { %14684 = vmatpush3.msra.mxu0 %v15719_v4  ;;  %14658 = vmatprep.mubr.f32.mxu0 %v3564_v42  ;;  %v549_v21 = vpop.f32.mrf.mxu1  ;;  %v16453_v44 = vpop.f32.mrf.mxu0  ;;  %v3594_v4 = vand.u32 4294901760, %v3593_v11 }
  0xf1   : > { %14685 = vmatprep.subr.mxu0 %v15722_v5  ;;  %14702 = vmatpush3.msra.mxu1 %v15715_v3 }
  0xf2   : > { %v14295_v22 = vpop.f32.mrf.mxu1  ;;  %14678 = vmatmul.mubr.f32.gmra.mxu1 %v16389_v19  ;;  %14686 = vmatpush3.msra.mxu0 %v15722_v5 }
  0xf3   : > { %v14276_v52 = vpop.f32.mrf.mxu0  ;;  %14659 = vmatmul.mubr.f32.gmra.mxu0 %v3574_v9  ;;  %14680 = vmatprep.mubr.f32.mxu1 %v16397_v12  ;;  %v538_v9 = vadd.f32 %v16433_v26, %v16453_v44 }
  0xf4   : > { %v556_v28 = vadd.f32 %v14292_v45, %v14276_v52  ;;  %14661 = vmatprep.mubr.f32.mxu0 %v3584_v34  ;;  %v561_v27 = vpop.f32.mrf.mxu1  ;;  %14715 = vmatprep.subr.mxu0 %v15726_v6 }
  0xf5   : > { %v406_v39 = vpop.f32.mrf.mxu0  ;;  %14731 = vmatprep.subr.mxu1 %v15713_v2 }
  0xf6   : > { %v550_v14 = vadd.f32 %v549_v21, %v406_v39  ;;  %v14298_v5 = vpop.f32.mrf.mxu1  ;;  %14681 = vmatmul.mubr.f32.gmra.mxu1 %v16411_v0 }
  0xf7   : > { %v14279_v23 = vpop.f32.mrf.mxu0  ;;  %14662 = vmatmul.mubr.f32.gmra.mxu0 %v3594_v4  ;;  %14703 = vmatprep.mubr.f32.mxu1 %v3542_v18 }
  0xf8   : > { %v568_v38 = vadd.f32 %v14295_v22, %v14279_v23  ;;  %14664 = vmatprep.mubr.f32.mxu0 %v3604_v8  ;;  %v573_v20 = vpop.f32.mrf.mxu1 }
  0xf9   : > { %v426_v46 = vpop.f32.mrf.mxu0 }
  0xfa   : > { %v562_v47 = vadd.f32 %v561_v27, %v426_v46  ;;  %v16468_v50 = vpop.f32.mrf.mxu1  ;;  %14704 = vmatmul.mubr.f32.vlgmr.msra.gmra.mxu1 %v3552_v40 }
  0xfb   : > { %v14282_v36 = vpop.f32.mrf.mxu0  ;;  %14665 = vmatmul.mubr.f32.gmra.mxu0 %v3614_v37  ;;  %14706 = vmatprep.mubr.f32.mxu1 %v3562_v17 }
  0xfc   : > { %v580_v60 = vadd.f32 %v14298_v5, %v14282_v36  ;;  %14687 = vmatprep.mubr.f32.mxu0 %v16342_v10  ;;  %v16475_v57 = vpop.f32.mrf.mxu1  ;;  %14732 = vmatpush3.msra.mxu1 %v15713_v2 }
  0xfd   : > { %v446_v18 = vpop.f32.mrf.mxu0  ;;  %14733 = vmatprep.subr.mxu1 %v15715_v3 }
  0xfe   : > { %v574_v48 = vadd.f32 %v573_v20, %v446_v18  ;;  %v14324_v51 = vpop.f32.mrf.mxu1  ;;  %14707 = vmatmul.mubr.f32.gmra.mxu1 %v3572_v55  ;;  %v17857_v55 = vmov 0.0  }
  0xff   : > { %v14305_v40 = vpop.f32.mrf.mxu0  ;;  %14688 = vmatmul.mubr.f32.vlgmr.msra.gmra.mxu0 %v16361_v1  ;;  %14709 = vmatprep.mubr.f32.mxu1 %v3582_v31 }
 0x100   : > { %14716 = vmatpush3.msra.mxu0 %v15726_v6  ;;  %14690 = vmatprep.mubr.f32.mxu0 %v16368_v30  ;;  %v795_v10 = vpop.f32.mrf.mxu1 }
 0x101   : > { %v655_v2 = vpop.f32.mrf.mxu0  ;;  %14717 = vmatprep.subr.mxu0 %v15730_v7  ;;  %14734 = vmatpush3.msra.mxu1 %v15715_v3 }
 0x102   : > { %v14327_v17 = vpop.f32.mrf.mxu1  ;;  %14710 = vmatmul.mubr.f32.gmra.mxu1 %v3592_v29  ;;  %14718 = vmatpush3.msra.mxu0 %v15730_v7  ;;  %v269_v7 = vld [vmem:[%s17851_s1] sm:$0x3f] }
 0x103   : > { %v14308_v1 = vpop.f32.mrf.mxu0  ;;  %14691 = vmatmul.mubr.f32.gmra.mxu0 %v16387_v54  ;;  %14712 = vmatprep.mubr.f32.mxu1 %v3602_v32  ;;  %v4234_v32 = vsel %vm288_vm0, %v269_v7, 0 }
 0x104   : > { %v677_v6 = vadd.f32 %v14308_v1, %v556_v28  ;;  %14693 = vmatprep.mubr.f32.mxu0 %v16395_v13  ;;  %v811_v30 = vpop.f32.mrf.mxu1  ;;  %14747 = vmatprep.subr.mxu0 %v17857_v55  ;;  %v544_v13 = vadd.f32 %v16421_v43, %v16442_v59  ;;  %v656_v43 = vadd.f32 %v655_v2, %v538_v9 }
 0x105   : > { %v669_v3 = vpop.f32.mrf.mxu0  ;;  %14754 = vmatprep.subr.mxu1 %v17857_v55 }
 0x106   : > { %v804_v31 = vadd.f32 %v14324_v51, %v677_v6  ;;  %v670_v41 = vadd.f32 %v669_v3, %v550_v14  ;;  %v14330_v54 = vpop.f32.mrf.mxu1  ;;  %14713 = vmatmul.mubr.f32.gmra.mxu1 %v3612_v61  ;;  %v663_v11 = vadd.f32 %v14305_v40, %v544_v13 }
 0x107   : > { %v14311_v56 = vpop.f32.mrf.mxu0  ;;  %14694 = vmatmul.mubr.f32.gmra.mxu0 %v16409_v15  ;;  %14735 = vmatprep.mubr.f32.mxu1 %v16327_v49 }
 0x108   : > { %v796_v29 = vadd.f32 %v795_v10, %v670_v41  ;;  %v691_v42 = vadd.f32 %v14311_v56, %v568_v38  ;;  %14696 = vmatprep.mubr.f32.mxu0 %v16419_v62  ;;  %v16507_v63 = vpop.f32.mrf.mxu1  ;;  %v16515_v62 = vand.u32 4294901760, %v4234_v32  ;;  %v788_v22 = vadd.f32 %v16468_v50, %v663_v11 }
 0x109   : > { %17867 = vst [vmem:[#allocation5_spill] sm:$0xff] %v16507_v63  ;;  %v683_v45 = vpop.f32.mrf.mxu0 }
 0x10a   : > { %v820_v61 = vadd.f32 %v14327_v17, %v691_v42  ;;  %v684_v15 = vadd.f32 %v683_v45, %v562_v47  ;;  %v14353_v21 = vpop.f32.mrf.mxu1  ;;  %14736 = vmatmul.mubr.f32.vlgmr.msra.gmra.mxu1 %v16337_v16  ;;  %v16527_v28 = vsub.f32 %v4234_v32, %v16515_v62 }
 0x10b   : > { %v14314_v34 = vpop.f32.mrf.mxu0  ;;  %14697 = vmatmul.mubr.f32.gmra.mxu0 %v16431_v35  ;;  %14738 = vmatprep.mubr.f32.mxu1 %v16346_v24 }
 0x10c   : > { %v16517_v59 = vadd.f32 %v811_v30, %v684_v15  ;;  %v705_v58 = vadd.f32 %v14314_v34, %v580_v60  ;;  %14719 = vmatprep.mubr.f32.mxu0 %v16327_v49  ;;  %v1027_v26 = vpop.f32.mrf.mxu1  ;;  %v780_v49 = vadd.f32 %v16475_v57, %v656_v43 }
 0x10d   : > { %v697_v44 = vpop.f32.mrf.mxu0 }
 0x10e   : > { %v836_v52 = vadd.f32 %v14330_v54, %v705_v58  ;;  %v16521_v4 = vadd.f32 %v697_v44, %v574_v48  ;;  %v14356_v53 = vpop.f32.mrf.mxu1  ;;  %14739 = vmatmul.mubr.f32.gmra.mxu1 %v16363_v25 }
 0x10f   : > { %v14337_v35 = vpop.f32.mrf.mxu0  ;;  %14720 = vmatmul.mubr.f32.vlgmr.msra.gmra.mxu0 %v16337_v16  ;;  %14741 = vmatprep.mubr.f32.mxu1 %v16370_v33  ;;  %v16537_v16 = vand.u32 4294901760, %v16527_v28 }
 0x110   : > { %17868 = vst [vmem:[#allocation6_spill] sm:$0xff] %v16521_v4  ;;  %v919_v27 = vadd.f32 %v14337_v35, %v788_v22  ;;  %14722 = vmatprep.mubr.f32.mxu0 %v16346_v24  ;;  %v16531_v8 = vpop.f32.mrf.mxu1 }
 0x111   : > { %v912_v39 = vpop.f32.mrf.mxu0 }
 0x112   : > { %v1034_v14 = vadd.f32 %v14353_v21, %v919_v27  ;;  %v913_v5 = vadd.f32 %v912_v39, %v780_v49  ;;  %v14359_v23 = vpop.f32.mrf.mxu1  ;;  %14742 = vmatmul.mubr.f32.gmra.mxu1 %v16389_v19 }
 0x113   : > { %v14340_v37 = vpop.f32.mrf.mxu0  ;;  %14723 = vmatmul.mubr.f32.gmra.mxu0 %v16363_v25  ;;  %14744 = vmatprep.mubr.f32.mxu1 %v16397_v12 }
 0x114   : > { %v16539_v38 = vand.u32 4294901760, %v1034_v14  ;;  %v1028_v20 = vadd.f32 %v1027_v26, %v913_v5  ;;  %v931_v24 = vadd.f32 %v14340_v37, %v804_v31  ;;  %14725 = vmatprep.mubr.f32.mxu0 %v16370_v33  ;;  %v16542_v46 = vpop.f32.mrf.mxu1  ;;  %v4306_v33 = vsub.f32 %v16527_v28, %v16537_v16 }
 0x115   : > { %17869 = vst [vmem:[#allocation7_spill] sm:$0xff] %v16542_v46  ;;  %v924_v47 = vpop.f32.mrf.mxu0 }
 0x116   : > { %v4343_v50 = vsub.f32 %v1034_v14, %v16539_v38  ;;  %v16545_v36 = vand.u32 4294901760, %v1028_v20  ;;  %v16547_v60 = vadd.f32 %v14356_v53, %v931_v24  ;;  %v16549_v25 = vadd.f32 %v924_v47, %v796_v29  ;;  %14748 = vmatpush3.msra.mxu0 %v16539_v38  ;;  %v14362_v57 = vpop.f32.mrf.mxu1  ;;  %14745 = vmatmul.mubr.f32.gmra.mxu1 %v16411_v0 }
 0x117   : > { %v14343_v18 = vpop.f32.mrf.mxu0  ;;  %14726 = vmatmul.mubr.f32.gmra.mxu0 %v16389_v19  ;;  %14749 = vmatprep.subr.mxu0 %v17857_v55 }
 0x118   : > { %v4344_v48 = vand.u32 4294901760, %v4343_v50  ;;  %v4350_v51 = vsub.f32 %v1028_v20, %v16545_v36  ;;  %14750 = vmatpush3.msra.mxu0 %v16545_v36  ;;  %14728 = vmatprep.mubr.f32.mxu0 %v16397_v12  ;;  %v16560_v40 = vpop.f32.mrf.mxu1  ;;  %v943_v10 = vadd.f32 %v14343_v18, %v820_v61  ;;  %v16572_v12 = vand.u32 4294901760, %v4306_v33 }
 0x119   : > { %17870 = vst [vmem:[#allocation8_spill] sm:$0xff] %v16560_v40  ;;  %v16562_v2 = vpop.f32.mrf.mxu0  ;;  %14761 = vmatprep.subr.mxu0 %v17857_v55  ;;  %14758 = vmatprep.mubr.msk.f32.mxu1 %vm15647_vm1, %v17857_v55 }
 0x11a   : > { %17871 = vst [vmem:[#allocation9_spill] sm:$0xff] %v16562_v2  ;;  %v4345_v19 = vsub.f32 %v4343_v50, %v4344_v48  ;;  %v4351_v17 = vand.u32 4294901760, %v4350_v51  ;;  %v16567_v1 = vpop.f32.mrf.mxu1  ;;  %v16569_v6 = vadd.f32 %v14359_v23, %v943_v10 }
 0x11b   : > { %v14346_v30 = vpop.f32.mrf.mxu0  ;;  %14729 = vmatmul.mubr.f32.gmra.mxu0 %v16411_v0 }
 0x11c   : > { %17872 = vst [vmem:[#allocation10_spill] sm:$0xff] %v16569_v6  ;;  %v955_v3 = vadd.f32 %v14346_v30, %v836_v52  ;;  %14751 = vmatprep.mubr.msk.f32.mxu0 %vm15647_vm1, %v17857_v55  ;;  %v4346_v7 = vand.u32 4294901760, %v4345_v19  ;;  %v16576_v31 = vpop.f32.mrf.mxu1  ;;  %v4352_v54 = vsub.f32 %v4350_v51, %v4351_v17 }
 0x11d   : > { %v16578_v41 = vpop.f32.mrf.mxu0 }
 0x11e   : > { %17873 = vst [vmem:[#allocation11_spill] sm:$0xff] %v16578_v41  ;;  %v16580_v56 = vadd.f32 %v14362_v57, %v955_v3  ;;  %14755 = vmatpush3.msra.mxu1 %v4346_v7  ;;  %v14388_v13 = vpop.f32.mrf.mxu1  ;;  %v4353_v0 = vand.u32 4294901760, %v4352_v54 }
 0x11f   : > { %v14369_v29 = vpop.f32.mrf.mxu0  ;;  %14752 = vmatmul.mubr.f32.vlgmr.msra.gmra.mxu0 %v16572_v12  ;;  %14756 = vmatprep.subr.mxu1 %v17857_v55 }
 0x120   : > { %17874 = vst [vmem:[#allocation12_spill] sm:$0xff] %v16580_v56  ;;  %14762 = vmatpush3.msra.mxu0 %v4343_v50  ;;  %14765 = vmatprep.mubr.msk.f32.mxu0 %vm15647_vm1, %v17857_v55  ;;  %v16586_v42 = vpop.f32.mrf.mxu1 }
 0x121   : > { %14757 = vmatpush3.msra.mxu1 %v4353_v0  ;;  %14763 = vmatprep.subr.mxu0 %v17857_v55  ;;  %v1170_v32 = vpop.f32.mrf.mxu0 }
 0x122   : > { %14764 = vmatpush3.msra.mxu0 %v4350_v51  ;;  %14768 = vmatprep.subr.mxu1 %v17857_v55  ;;  %v14391_v45 = vpop.f32.mrf.mxu1 }
 0x123   : > { %14759 = vmatmul.mubr.f32.vlgmr.msra.gmra.mxu1 %v16515_v62  ;;  %14775 = vmatprep.subr.mxu0 %v17857_v55  ;;  %v14372_v9 = vpop.f32.mrf.mxu0 }
 0x124   : > { %14769 = vmatpush3.msra.mxu1 %v16539_v38  ;;  %v1340_v11 = vadd.f32 %v14388_v13, %v14372_v9  ;;  %14766 = vmatmul.mubr.f32.vlgmr.msra.gmra.mxu0 %v16527_v28  ;;  %v16594_v61 = vpop.f32.mrf.mxu1 }
 0x125   : > { %17875 = vst [vmem:[#allocation13_spill] sm:$0xff] %v16594_v61  ;;  %14770 = vmatprep.subr.mxu1 %v17857_v55  ;;  %14776 = vmatpush3.msra.mxu0 %v4344_v48  ;;  %v16597_v15 = vpop.f32.mrf.mxu0  ;;  %v1322_v48 = vadd.f32 %v16576_v31, %v1170_v32 }
 0x126   : > { %14771 = vmatpush3.msra.mxu1 %v16545_v36  ;;  %14777 = vmatprep.subr.mxu0 %v17857_v55  ;;  %v14394_v21 = vpop.f32.mrf.mxu1 }
 0x127   : > { %14772 = vmatprep.mubr.msk.f32.mxu1 %vm15647_vm1, %v17857_v55  ;;  %14778 = vmatpush3.msra.mxu0 %v4351_v17  ;;  %v14375_v34 = vpop.f32.mrf.mxu0 }
 0x128   : > { %14782 = vmatprep.subr.mxu1 %v17857_v55  ;;  %14773 = vmatmul.mubr.f32.vlgmr.msra.gmra.mxu1 %v16537_v16  ;;  %v1352_v43 = vadd.f32 %v14391_v45, %v14375_v34  ;;  %v16605_v58 = vpop.f32.mrf.mxu1 }
 0x129   : > { %17876 = vst [vmem:[#allocation14_spill] sm:$0xff] %v16605_v58  ;;  %14783 = vmatpush3.msra.mxu1 %v16539_v38  ;;  %v16608_v26 = vpop.f32.mrf.mxu0  ;;  %14779 = vmatprep.mubr.msk.f32.mxu0 %vm15647_vm1, %v17857_v55 }
 0x12a   : > { %17877 = vst [vmem:[#allocation15_spill] sm:$0xff] %v16608_v26  ;;  %14784 = vmatprep.subr.mxu1 %v17857_v55  ;;  %v14417_v44 = vpop.f32.mrf.mxu1  ;;  %14789 = vmatprep.subr.mxu0 %v17857_v55 }
 0x12b   : > { %14785 = vmatpush3.msra.mxu1 %v16545_v36  ;;  %v14378_v22 = vpop.f32.mrf.mxu0  ;;  %14780 = vmatmul.mubr.f32.vlgmr.msra.gmra.mxu0 %v16515_v62  ;;  %v1328_v36 = vadd.f32 %v16567_v1, %v14369_v29 }
 0x12c   : > { %v1364_v52 = vadd.f32 %v14394_v21, %v14378_v22  ;;  %v1563_v53 = vpop.f32.mrf.mxu1  ;;  %14793 = vmatprep.mubr.msk.f32.mxu0 %vm15647_vm1, %v17857_v55  ;;  %14786 = vmatprep.mubr.msk.f32.mxu1 %vm15647_vm1, %v17857_v55 }
 0x12d   : > { %v16620_v35 = vpop.f32.mrf.mxu0  ;;  %14796 = vmatprep.subr.mxu1 %v17857_v55  ;;  %14787 = vmatmul.mubr.f32.vlgmr.msra.gmra.mxu1 %v16515_v62 }
 0x12e   : > { %17878 = vst [vmem:[#allocation16_spill] sm:$0xff] %v16620_v35  ;;  %v14420_v49 = vpop.f32.mrf.mxu1  ;;  %14800 = vmatprep.mubr.msk.f32.mxu1 %vm15647_vm1, %v17857_v55 }
 0x12f   : > { %v14401_v27 = vpop.f32.mrf.mxu0 }
 0x130   : > { %v16626_v39 = vpop.f32.mrf.mxu1  ;;  %v1447_v51 = vadd.f32 %v14401_v27, %v1328_v36 }
 0x131   : > { %v1439_v14 = vpop.f32.mrf.mxu0 }
 0x132   : > { %v14423_v5 = vpop.f32.mrf.mxu1  ;;  %v1440_v30 = vadd.f32 %v1439_v14, %v1322_v48  ;;  %v1572_v13 = vadd.f32 %v14417_v44, %v1447_v51 }
 0x133   : > { %v14404_v23 = vpop.f32.mrf.mxu0 }
 0x134   : > { %v1461_v37 = vadd.f32 %v14404_v23, %v1340_v11  ;;  %v16628_v38 = vpop.f32.mrf.mxu1  ;;  %v1564_v29 = vadd.f32 %v1563_v53, %v1440_v30 }
 0x135   : > { %17879 = vst [vmem:[#allocation17_spill] sm:$0xff] %v16628_v38  ;;  %v16630_v20 = vpop.f32.mrf.mxu0 }
 0x136   : > { %v1588_v24 = vadd.f32 %v14420_v49, %v1461_v37  ;;  %v14426_v47 = vpop.f32.mrf.mxu1 }
 0x137   : > { %v14407_v50 = vpop.f32.mrf.mxu0 }
 0x138   : > { %v1475_v57 = vadd.f32 %v14407_v50, %v1352_v43  ;;  %v16633_v18 = vpop.f32.mrf.mxu1 }
 0x139   : > { %17880 = vst [vmem:[#allocation18_spill] sm:$0xff] %v16633_v18  ;;  %v16635_v33 = vpop.f32.mrf.mxu0 }
 0x13a   : > { %17881 = vst [vmem:[#allocation19_spill] sm:$0xff] %v16635_v33  ;;  %v1604_v10 = vadd.f32 %v14423_v5, %v1475_v57  ;;  %v14449_v19 = vpop.f32.mrf.mxu1 }
 0x13b   : > { %v14410_v17 = vpop.f32.mrf.mxu0 }
 0x13c   : > { %v1489_v3 = vadd.f32 %v14410_v17, %v1364_v52  ;;  %v1811_v7 = vpop.f32.mrf.mxu1 }
 0x13d   : > { %v16638_v54 = vpop.f32.mrf.mxu0 }
 0x13e   : > { %17882 = vst [vmem:[#allocation20_spill] sm:$0xff] %v16638_v54  ;;  %v1620_v0 = vadd.f32 %v14426_v47, %v1489_v3  ;;  %v14452_v45 = vpop.f32.mrf.mxu1 }
 0x13f   : > { %v14433_v1 = vpop.f32.mrf.mxu0 }
 0x140   : > { %v1703_v9 = vadd.f32 %v14433_v1, %v1572_v13  ;;  %v16640_v11 = vpop.f32.mrf.mxu1 }
 0x141   : > { %v1696_v21 = vpop.f32.mrf.mxu0 }
 0x142   : > { %v1818_v34 = vadd.f32 %v14449_v19, %v1703_v9  ;;  %v1697_v31 = vadd.f32 %v1696_v21, %v1564_v29  ;;  %v14455_v32 = vpop.f32.mrf.mxu1 }
 0x143   : > { %v14436_v43 = vpop.f32.mrf.mxu0 }
 0x144   : > { %v16642_v22 = vand.u32 4294901760, %v1818_v34  ;;  %v1812_v49 = vadd.f32 %v1811_v7, %v1697_v31  ;;  %v1715_v52 = vadd.f32 %v14436_v43, %v1588_v24  ;;  %v16644_v27 = vpop.f32.mrf.mxu1 }
 0x145   : > { %17883 = vst [vmem:[#allocation21_spill] sm:$0xff] %v16644_v27  ;;  %v16646_v14 = vpop.f32.mrf.mxu0 }
 0x146   : > { %v4802_v44 = vsub.f32 %v1818_v34, %v16642_v22  ;;  %v16649_v5 = vand.u32 4294901760, %v1812_v49  ;;  %v16651_v53 = vadd.f32 %v14452_v45, %v1715_v52  ;;  %14790 = vmatpush3.msra.mxu0 %v16642_v22  ;;  %v14458_v23 = vpop.f32.mrf.mxu1 }
 0x147   : > { %v14439_v37 = vpop.f32.mrf.mxu0  ;;  %14791 = vmatprep.subr.mxu0 %v17857_v55 }
 0x148   : > { %v4803_v47 = vand.u32 4294901760, %v4802_v44  ;;  %v4809_v50 = vsub.f32 %v1812_v49, %v16649_v5  ;;  %14792 = vmatpush3.msra.mxu0 %v16649_v5  ;;  %v16657_v24 = vpop.f32.mrf.mxu1  ;;  %v1727_v36 = vadd.f32 %v14439_v37, %v1604_v10 }
 0x149   : > { %17884 = vst [vmem:[#allocation22_spill] sm:$0xff] %v16657_v24  ;;  %v16659_v57 = vpop.f32.mrf.mxu0  ;;  %14803 = vmatprep.subr.mxu0 %v17857_v55  ;;  %14794 = vmatmul.mubr.f32.vlgmr.msra.gmra.mxu0 %v16572_v12 }
 0x14a   : > { %17885 = vst [vmem:[#allocation23_spill] sm:$0xff] %v16659_v57  ;;  %v4804_v48 = vsub.f32 %v4802_v44, %v4803_v47  ;;  %v4810_v51 = vand.u32 4294901760, %v4809_v50  ;;  %14804 = vmatpush3.msra.mxu0 %v4802_v44  ;;  %14807 = vmatprep.mubr.msk.f32.mxu0 %vm15647_vm1, %v17857_v55  ;;  %v16665_v19 = vpop.f32.mrf.mxu1  ;;  %v16667_v17 = vadd.f32 %v14455_v32, %v1727_v36 }
 0x14b   : > { %v14442_v30 = vpop.f32.mrf.mxu0  ;;  %14805 = vmatprep.subr.mxu0 %v17857_v55 }
 0x14c   : > { %17886 = vst [vmem:[#allocation24_spill] sm:$0xff] %v16667_v17  ;;  %v1739_v10 = vadd.f32 %v14442_v30, %v1620_v0  ;;  %14806 = vmatpush3.msra.mxu0 %v4809_v50  ;;  %v4805_v3 = vand.u32 4294901760, %v4804_v48  ;;  %v16670_v7 = vpop.f32.mrf.mxu1  ;;  %v4811_v45 = vsub.f32 %v4809_v50, %v4810_v51 }
 0x14d   : > { %v16672_v13 = vpop.f32.mrf.mxu0  ;;  %14817 = vmatprep.subr.mxu0 %v17857_v55  ;;  %14808 = vmatmul.mubr.f32.vlgmr.msra.gmra.mxu0 %v16527_v28 }
 0x14e   : > { %17887 = vst [vmem:[#allocation25_spill] sm:$0xff] %v16672_v13  ;;  %v16676_v1 = vadd.f32 %v14458_v23, %v1739_v10  ;;  %14797 = vmatpush3.msra.mxu1 %v4805_v3  ;;  %14818 = vmatpush3.msra.mxu0 %v4803_v47  ;;  %v14484_v29 = vpop.f32.mrf.mxu1  ;;  %v4812_v0 = vand.u32 4294901760, %v4811_v45 }
 0x14f   : > { %v14465_v9 = vpop.f32.mrf.mxu0  ;;  %14798 = vmatprep.subr.mxu1 %v17857_v55  ;;  %14819 = vmatprep.subr.mxu0 %v17857_v55 }
 0x150   : > { %17888 = vst [vmem:[#allocation26_spill] sm:$0xff] %v16676_v1  ;;  %14820 = vmatpush3.msra.mxu0 %v4810_v51  ;;  %v16680_v21 = vpop.f32.mrf.mxu1  ;;  %14821 = vmatprep.mubr.msk.f32.mxu0 %vm15647_vm1, %v17857_v55 }
 0x151   : > { %14799 = vmatpush3.msra.mxu1 %v4812_v0  ;;  %v1962_v34 = vpop.f32.mrf.mxu0  ;;  %14831 = vmatprep.subr.mxu0 %v17857_v55 }
 0x152   : > { %14810 = vmatprep.subr.mxu1 %v17857_v55  ;;  %14801 = vmatmul.mubr.f32.vlgmr.msra.gmra.mxu1 %v16515_v62  ;;  %v14487_v31 = vpop.f32.mrf.mxu1  ;;  %v2114_v13 = vadd.f32 %v16670_v7, %v1962_v34 }
 0x153   : > { %14811 = vmatpush3.msra.mxu1 %v16642_v22  ;;  %v14468_v32 = vpop.f32.mrf.mxu0  ;;  %14814 = vmatprep.mubr.msk.f32.mxu1 %vm15647_vm1, %v17857_v55 }
 0x154   : > { %v2132_v43 = vadd.f32 %v14484_v29, %v14468_v32  ;;  %14812 = vmatprep.subr.mxu1 %v17857_v55  ;;  %v16691_v49 = vpop.f32.mrf.mxu1  ;;  %14822 = vmatmul.mubr.f32.vlgmr.msra.gmra.mxu0 %v16515_v62 }
 0x155   : > { %17889 = vst [vmem:[#allocation27_spill] sm:$0xff] %v16691_v49  ;;  %14813 = vmatpush3.msra.mxu1 %v16649_v5  ;;  %v16695_v52 = vpop.f32.mrf.mxu0  ;;  %14835 = vmatprep.mubr.msk.f32.mxu0 %vm15647_vm1, %v17857_v55 }
 0x156   : > { %14824 = vmatprep.subr.mxu1 %v17857_v55  ;;  %14815 = vmatmul.mubr.f32.vlgmr.msra.gmra.mxu1 %v16537_v16  ;;  %v14490_v44 = vpop.f32.mrf.mxu1 }
 0x157   : > { %14825 = vmatpush3.msra.mxu1 %v16642_v22  ;;  %v14471_v23 = vpop.f32.mrf.mxu0  ;;  %14828 = vmatprep.mubr.msk.f32.mxu1 %vm15647_vm1, %v17857_v55 }
 0x158   : > { %v2144_v37 = vadd.f32 %v14487_v31, %v14471_v23  ;;  %14826 = vmatprep.subr.mxu1 %v17857_v55  ;;  %v16705_v47 = vpop.f32.mrf.mxu1 }
 0x159   : > { %17890 = vst [vmem:[#allocation28_spill] sm:$0xff] %v16705_v47  ;;  %14827 = vmatpush3.msra.mxu1 %v16649_v5  ;;  %v16708_v50 = vpop.f32.mrf.mxu0 }
 0x15a   : > { %17891 = vst [vmem:[#allocation29_spill] sm:$0xff] %v16708_v50  ;;  %v14513_v36 = vpop.f32.mrf.mxu1  ;;  %14838 = vmatprep.subr.mxu1 %v17857_v55  ;;  %14829 = vmatmul.mubr.f32.vlgmr.msra.gmra.mxu1 %v16515_v62 }
 0x15b   : > { %v14474_v48 = vpop.f32.mrf.mxu0  ;;  %14842 = vmatprep.mubr.msk.f32.mxu1 %vm15647_vm1, %v17857_v55 }
 0x15c   : > { %v2156_v22 = vadd.f32 %v14490_v44, %v14474_v48  ;;  %v2355_v51 = vpop.f32.mrf.mxu1  ;;  %v2120_v44 = vadd.f32 %v16665_v19, %v14465_v9 }
 0x15d   : > { %v16714_v30 = vpop.f32.mrf.mxu0 }
 0x15e   : > { %17892 = vst [vmem:[#allocation30_spill] sm:$0xff] %v16714_v30  ;;  %v14516_v10 = vpop.f32.mrf.mxu1 }
 0x15f   : > { %v14497_v3 = vpop.f32.mrf.mxu0 }
 0x160   : > { %v16716_v45 = vpop.f32.mrf.mxu1  ;;  %v2239_v18 = vadd.f32 %v14497_v3, %v2120_v44 }
 0x161   : > { %v2231_v5 = vpop.f32.mrf.mxu0 }
 0x162   : > { %v14519_v29 = vpop.f32.mrf.mxu1 }
 0x163   : > { %v14500_v0 = vpop.f32.mrf.mxu0 }
 0x164   : > { %v2253_v31 = vadd.f32 %v14500_v0, %v2132_v43  ;;  %v16718_v32 = vpop.f32.mrf.mxu1  ;;  %v2232_v0 = vadd.f32 %v2231_v5, %v2114_v13 }
 0x165   : > { %17893 = vst [vmem:[#allocation31_spill] sm:$0xff] %v16718_v32  ;;  %v16720_v23 = vpop.f32.mrf.mxu0 }
 0x166   : > { %v2380_v47 = vadd.f32 %v14516_v10, %v2253_v31  ;;  %v14522_v1 = vpop.f32.mrf.mxu1  ;;  %v2364_v10 = vadd.f32 %v14513_v36, %v2239_v18  ;;  %v17898_v36 = vmov 0.0  }
 0x167   : > { %v14503_v24 = vpop.f32.mrf.mxu0 }
 0x168   : > { %v2267_v48 = vadd.f32 %v14503_v24, %v2144_v37  ;;  %v16723_v55 = vpop.f32.mrf.mxu1  ;;  %v2356_v24 = vadd.f32 %v2355_v51, %v2232_v0 }
 0x169   : > { %17894 = vst [vmem:[#allocation32_spill] sm:$0xff] %v16723_v55  ;;  %v16725_v30 = vpop.f32.mrf.mxu0 }
 0x16a   : > { %17895 = vst [vmem:[#allocation33_spill] sm:$0xff] %v16725_v30  ;;  %v2396_v54 = vadd.f32 %v14519_v29, %v2267_v48  ;;  %v14545_v58 = vpop.f32.mrf.mxu1 }
 0x16b   : > { %v14506_v43 = vpop.f32.mrf.mxu0 }
 0x16c   : > { %v2281_v35 = vadd.f32 %v14506_v43, %v2156_v22  ;;  %v2603_v56 = vpop.f32.mrf.mxu1 }
 0x16d   : > { %v16728_v40 = vpop.f32.mrf.mxu0 }
 0x16e   : > { %17896 = vst [vmem:[#allocation34_spill] sm:$0xff] %v16728_v40  ;;  %v2412_v31 = vadd.f32 %v14522_v1, %v2281_v35  ;;  %v14548_v41 = vpop.f32.mrf.mxu1 }
 0x16f   : > { %v14529_v19 = vpop.f32.mrf.mxu0 }
 0x170   : > { %v2495_v9 = vadd.f32 %v14529_v19, %v2364_v10  ;;  %v16730_v37 = vpop.f32.mrf.mxu1 }
 0x171   : > { %v2488_v55 = vpop.f32.mrf.mxu0 }
 0x172   : > { %v2610_v63 = vadd.f32 %v14545_v58, %v2495_v9  ;;  %v2489_v7 = vadd.f32 %v2488_v55, %v2356_v24  ;;  %v14551_v34 = vpop.f32.mrf.mxu1 }
 0x173   : > { %v14532_v3 = vpop.f32.mrf.mxu0 }
 0x174   : > { %v16732_v29 = vand.u32 4294901760, %v2610_v63  ;;  %v2604_v13 = vadd.f32 %v2603_v56, %v2489_v7  ;;  %v2507_v22 = vadd.f32 %v14532_v3, %v2380_v47  ;;  %v16734_v5 = vpop.f32.mrf.mxu1 }
 0x175   : > { %17897 = vst [vmem:[#allocation35_spill] sm:$0xff] %v16734_v5  ;;  %v16736_v44 = vpop.f32.mrf.mxu0 }
 0x176   : > { %v5261_v35 = vsub.f32 %v2610_v63, %v16732_v29  ;;  %v16739_v18 = vand.u32 4294901760, %v2604_v13  ;;  %v16741_v1 = vadd.f32 %v14548_v41, %v2507_v22  ;;  %14832 = vmatpush3.msra.mxu0 %v16732_v29  ;;  %v14554_v58 = vpop.f32.mrf.mxu1 }
 0x177   : > { %v14535_v55 = vpop.f32.mrf.mxu0  ;;  %14833 = vmatprep.subr.mxu0 %v17898_v36 }
 0x178   : > { %v5262_v51 = vand.u32 4294901760, %v5261_v35  ;;  %v5268_v56 = vsub.f32 %v2604_v13, %v16739_v18  ;;  %14834 = vmatpush3.msra.mxu0 %v16739_v18  ;;  %v16747_v47 = vpop.f32.mrf.mxu1  ;;  %v2519_v48 = vadd.f32 %v14535_v55, %v2396_v54 }
 0x179   : > { %17899 = vst [vmem:[#allocation36_spill] sm:$0xff] %v16747_v47  ;;  %v16749_v43 = vpop.f32.mrf.mxu0  ;;  %14845 = vmatprep.subr.mxu0 %v17898_v36  ;;  %14836 = vmatmul.mubr.f32.vlgmr.msra.gmra.mxu0 %v16572_v12 }
 0x17a   : > { %17900 = vst [vmem:[#allocation37_spill] sm:$0xff] %v16749_v43  ;;  %v5263_v63 = vsub.f32 %v5261_v35, %v5262_v51  ;;  %v5269_v41 = vand.u32 4294901760, %v5268_v56  ;;  %14846 = vmatpush3.msra.mxu0 %v5261_v35  ;;  %14849 = vmatprep.mubr.msk.f32.mxu0 %vm15647_vm1, %v17898_v36  ;;  %v16755_v0 = vpop.f32.mrf.mxu1  ;;  %v16757_v10 = vadd.f32 %v14551_v34, %v2519_v48 }
 0x17b   : > { %v14538_v19 = vpop.f32.mrf.mxu0  ;;  %14847 = vmatprep.subr.mxu0 %v17898_v36 }
 0x17c   : > { %17901 = vst [vmem:[#allocation38_spill] sm:$0xff] %v16757_v10  ;;  %v2531_v54 = vadd.f32 %v14538_v19, %v2412_v31  ;;  %14848 = vmatpush3.msra.mxu0 %v5268_v56  ;;  %v5264_v24 = vand.u32 4294901760, %v5263_v63  ;;  %v16760_v9 = vpop.f32.mrf.mxu1  ;;  %v5270_v3 = vsub.f32 %v5268_v56, %v5269_v41 }
 0x17d   : > { %v16762_v7 = vpop.f32.mrf.mxu0  ;;  %14859 = vmatprep.subr.mxu0 %v17898_v36  ;;  %14850 = vmatmul.mubr.f32.vlgmr.msra.gmra.mxu0 %v16527_v28 }
 0x17e   : > { %17902 = vst [vmem:[#allocation39_spill] sm:$0xff] %v16762_v7  ;;  %v16766_v13 = vadd.f32 %v14554_v58, %v2531_v54  ;;  %14839 = vmatpush3.msra.mxu1 %v5264_v24  ;;  %14860 = vmatpush3.msra.mxu0 %v5262_v51  ;;  %v14580_v34 = vpop.f32.mrf.mxu1  ;;  %v5271_v31 = vand.u32 4294901760, %v5270_v3 }
 0x17f   : > { %v14561_v22 = vpop.f32.mrf.mxu0  ;;  %14840 = vmatprep.subr.mxu1 %v17898_v36  ;;  %14861 = vmatprep.subr.mxu0 %v17898_v36 }
 0x180   : > { %17903 = vst [vmem:[#allocation40_spill] sm:$0xff] %v16766_v13  ;;  %14862 = vmatpush3.msra.mxu0 %v5269_v41  ;;  %v16770_v35 = vpop.f32.mrf.mxu1  ;;  %14863 = vmatprep.mubr.msk.f32.mxu0 %vm15647_vm1, %v17898_v36 }
 0x181   : > { %14841 = vmatpush3.msra.mxu1 %v5271_v31  ;;  %v2754_v55 = vpop.f32.mrf.mxu0  ;;  %14873 = vmatprep.subr.mxu0 %v17898_v36 }
 0x182   : > { %14852 = vmatprep.subr.mxu1 %v17898_v36  ;;  %14843 = vmatmul.mubr.f32.vlgmr.msra.gmra.mxu1 %v16515_v62  ;;  %v14583_v58 = vpop.f32.mrf.mxu1  ;;  %v2906_v32 = vadd.f32 %v16760_v9, %v2754_v55 }
 0x183   : > { %14853 = vmatpush3.msra.mxu1 %v16732_v29  ;;  %v14564_v51 = vpop.f32.mrf.mxu0  ;;  %14856 = vmatprep.mubr.msk.f32.mxu1 %vm15647_vm1, %v17898_v36 }
 0x184   : > { %v2924_v56 = vadd.f32 %v14580_v34, %v14564_v51  ;;  %14854 = vmatprep.subr.mxu1 %v17898_v36  ;;  %v16781_v48 = vpop.f32.mrf.mxu1  ;;  %14864 = vmatmul.mubr.f32.vlgmr.msra.gmra.mxu0 %v16515_v62 }
 0x185   : > { %17904 = vst [vmem:[#allocation41_spill] sm:$0xff] %v16781_v48  ;;  %14855 = vmatpush3.msra.mxu1 %v16739_v18  ;;  %v16785_v63 = vpop.f32.mrf.mxu0  ;;  %14877 = vmatprep.mubr.msk.f32.mxu0 %vm15647_vm1, %v17898_v36 }
 0x186   : > { %14866 = vmatprep.subr.mxu1 %v17898_v36  ;;  %14857 = vmatmul.mubr.f32.vlgmr.msra.gmra.mxu1 %v16537_v16  ;;  %v14586_v41 = vpop.f32.mrf.mxu1 }
 0x187   : > { %14867 = vmatpush3.msra.mxu1 %v16732_v29  ;;  %v14567_v19 = vpop.f32.mrf.mxu0  ;;  %14870 = vmatprep.mubr.msk.f32.mxu1 %vm15647_vm1, %v17898_v36 }
 0x188   : > { %v2936_v54 = vadd.f32 %v14583_v58, %v14567_v19  ;;  %14868 = vmatprep.subr.mxu1 %v17898_v36  ;;  %v16795_v24 = vpop.f32.mrf.mxu1 }
 0x189   : > { %17905 = vst [vmem:[#allocation42_spill] sm:$0xff] %v16795_v24  ;;  %14869 = vmatpush3.msra.mxu1 %v16739_v18  ;;  %v16798_v3 = vpop.f32.mrf.mxu0 }
 0x18a   : > { %17906 = vst [vmem:[#allocation43_spill] sm:$0xff] %v16798_v3  ;;  %v14609_v34 = vpop.f32.mrf.mxu1  ;;  %14871 = vmatmul.mubr.f32.vlgmr.msra.gmra.mxu1 %v16515_v62  ;;  %14880 = vmatprep.subr.mxu1 %v17898_v36 }
 0x18b   : > { %v14570_v31 = vpop.f32.mrf.mxu0  ;;  %14884 = vmatprep.mubr.msk.f32.mxu1 %vm15647_vm1, %v17898_v36 }
 0x18c   : > { %v2948_v29 = vadd.f32 %v14586_v41, %v14570_v31  ;;  %v3147_v51 = vpop.f32.mrf.mxu1  ;;  %v2912_v41 = vadd.f32 %v16755_v0, %v14561_v22 }
 0x18d   : > { %v16804_v58 = vpop.f32.mrf.mxu0 }
 0x18e   : > { %17907 = vst [vmem:[#allocation44_spill] sm:$0xff] %v16804_v58  ;;  %v14612_v19 = vpop.f32.mrf.mxu1 }
 0x18f   : > { %v14593_v13 = vpop.f32.mrf.mxu0 }
 0x190   : > { %v16806_v24 = vpop.f32.mrf.mxu1  ;;  %v3031_v30 = vadd.f32 %v14593_v13, %v2912_v41 }
 0x191   : > { %v3023_v18 = vpop.f32.mrf.mxu0 }
 0x192   : > { %v14615_v47 = vpop.f32.mrf.mxu1 }
 0x193   : > { %v14596_v7 = vpop.f32.mrf.mxu0 }
 0x194   : > { %v3045_v40 = vadd.f32 %v14596_v7, %v2924_v56  ;;  %v16808_v4 = vpop.f32.mrf.mxu1  ;;  %v3024_v56 = vadd.f32 %v3023_v18, %v2906_v32 }
 0x195   : > { %17908 = vst [vmem:[#allocation45_spill] sm:$0xff] %v16808_v4  ;;  %v16810_v48 = vpop.f32.mrf.mxu0 }
 0x196   : > { %v3172_v3 = vadd.f32 %v14612_v19, %v3045_v40  ;;  %v14618_v10 = vpop.f32.mrf.mxu1  ;;  %v3156_v40 = vadd.f32 %v14609_v34, %v3031_v30 }
 0x197   : > { %v14599_v5 = vpop.f32.mrf.mxu0 }
 0x198   : > { %v3059_v31 = vadd.f32 %v14599_v5, %v2936_v54  ;;  %v16813_v43 = vpop.f32.mrf.mxu1  ;;  %v3148_v5 = vadd.f32 %v3147_v51, %v3024_v56 }
 0x199   : > { %17909 = vst [vmem:[#allocation46_spill] sm:$0xff] %v16813_v43  ;;  %v16815_v58 = vpop.f32.mrf.mxu0 }
 0x19a   : > { %17910 = vst [vmem:[#allocation47_spill] sm:$0xff] %v16815_v58  ;;  %v3188_v49 = vadd.f32 %v14615_v47, %v3059_v31  ;;  %v14641_v50 = vpop.f32.mrf.mxu1 }
 0x19b   : > { %v14602_v7 = vpop.f32.mrf.mxu0 }
 0x19c   : > { %v3073_v4 = vadd.f32 %v14602_v7, %v2948_v29  ;;  %v3395_v17 = vpop.f32.mrf.mxu1 }
 0x19d   : > { %v16818_v27 = vpop.f32.mrf.mxu0 }
 0x19e   : > { %17911 = vst [vmem:[#allocation48_spill] sm:$0xff] %v16818_v27  ;;  %v3204_v19 = vadd.f32 %v14618_v10, %v3073_v4  ;;  %v14644_v57 = vpop.f32.mrf.mxu1 }
 0x19f   : > { %v14625_v0 = vpop.f32.mrf.mxu0 }
 0x1a0   : > { %v3287_v22 = vadd.f32 %v14625_v0, %v3156_v40  ;;  %v16820_v54 = vpop.f32.mrf.mxu1 }
 0x1a1   : > { %v3280_v43 = vpop.f32.mrf.mxu0 }
 0x1a2   : > { %v3402_v58 = vadd.f32 %v14641_v50, %v3287_v22  ;;  %v3281_v9 = vadd.f32 %v3280_v43, %v3148_v5  ;;  %v14647_v13 = vpop.f32.mrf.mxu1 }
 0x1a3   : > { %v14628_v47 = vpop.f32.mrf.mxu0 }
 0x1a4   : > { %v16822_v55 = vand.u32 4294901760, %v3402_v58  ;;  %v3396_v32 = vadd.f32 %v3395_v17, %v3281_v9  ;;  %v3299_v29 = vadd.f32 %v14628_v47, %v3172_v3  ;;  %v16824_v18 = vpop.f32.mrf.mxu1 }
 0x1a5   : > { %17912 = vst [vmem:[#allocation49_spill] sm:$0xff] %v16824_v18  ;;  %v16826_v41 = vpop.f32.mrf.mxu0 }
 0x1a6   : > { %v5720_v4 = vsub.f32 %v3402_v58, %v16822_v55  ;;  %v16829_v30 = vand.u32 4294901760, %v3396_v32  ;;  %v16831_v10 = vadd.f32 %v14644_v57, %v3299_v29  ;;  %14874 = vmatpush3.msra.mxu0 %v16822_v55  ;;  %v14650_v50 = vpop.f32.mrf.mxu1 }
 0x1a7   : > { %v14631_v43 = vpop.f32.mrf.mxu0  ;;  %14875 = vmatprep.subr.mxu0 %v17898_v36 }
 0x1a8   : > { %v5721_v34 = vand.u32 4294901760, %v5720_v4  ;;  %v5727_v17 = vsub.f32 %v3396_v32, %v16829_v30  ;;  %14876 = vmatpush3.msra.mxu0 %v16829_v30  ;;  %v16837_v3 = vpop.f32.mrf.mxu1  ;;  %v3311_v51 = vadd.f32 %v14631_v43, %v3188_v49 }
 0x1a9   : > { %17913 = vst [vmem:[#allocation50_spill] sm:$0xff] %v16837_v3  ;;  %v16839_v31 = vpop.f32.mrf.mxu0  ;;  %14887 = vmatprep.subr.mxu0 %v17898_v36  ;;  %14878 = vmatmul.mubr.f32.vlgmr.msra.gmra.mxu0 %v16572_v12 }
 0x1aa   : > { %17914 = vst [vmem:[#allocation51_spill] sm:$0xff] %v16839_v31  ;;  %v5722_v57 = vsub.f32 %v5720_v4, %v5721_v34  ;;  %v5728_v58 = vand.u32 4294901760, %v5727_v17  ;;  %14888 = vmatpush3.msra.mxu0 %v5720_v4  ;;  %14891 = vmatprep.mubr.msk.f32.mxu0 %vm15647_vm1, %v17898_v36  ;;  %v16845_v7 = vpop.f32.mrf.mxu1  ;;  %v16847_v56 = vadd.f32 %v14647_v13, %v3311_v51 }
 0x1ab   : > { %v14634_v40 = vpop.f32.mrf.mxu0  ;;  %14889 = vmatprep.subr.mxu0 %v17898_v36 }
 0x1ac   : > { %17915 = vst [vmem:[#allocation52_spill] sm:$0xff] %v16847_v56  ;;  %v3323_v49 = vadd.f32 %v14634_v40, %v3204_v19  ;;  %14890 = vmatpush3.msra.mxu0 %v5727_v17  ;;  %v5723_v0 = vand.u32 4294901760, %v5722_v57  ;;  %v16850_v5 = vpop.f32.mrf.mxu1  ;;  %v5729_v9 = vsub.f32 %v5727_v17, %v5728_v58 }
 0x1ad   : > { %v16852_v22 = vpop.f32.mrf.mxu0  ;;  %14901 = vmatprep.subr.mxu0 %v17898_v36  ;;  %14892 = vmatmul.mubr.f32.vlgmr.msra.gmra.mxu0 %v16527_v28 }
 0x1ae   : > { %17916 = vst [vmem:[#allocation53_spill] sm:$0xff] %v16852_v22  ;;  %v16856_v47 = vadd.f32 %v14650_v50, %v3323_v49  ;;  %14881 = vmatpush3.msra.mxu1 %v5723_v0  ;;  %14902 = vmatpush3.msra.mxu0 %v5721_v34  ;;  %v14676_v13 = vpop.f32.mrf.mxu1  ;;  %v5730_v19 = vand.u32 4294901760, %v5729_v9 }
 0x1af   : > { %v14657_v32 = vpop.f32.mrf.mxu0  ;;  %14882 = vmatprep.subr.mxu1 %v17898_v36  ;;  %14903 = vmatprep.subr.mxu0 %v17898_v36 }
 0x1b0   : > { %17917 = vst [vmem:[#allocation54_spill] sm:$0xff] %v16856_v47  ;;  %14904 = vmatpush3.msra.mxu0 %v5728_v58  ;;  %v16860_v29 = vpop.f32.mrf.mxu1  ;;  %14905 = vmatprep.mubr.msk.f32.mxu0 %vm15647_vm1, %v17898_v36 }
 0x1b1   : > { %14883 = vmatpush3.msra.mxu1 %v5730_v19  ;;  %v3546_v4 = vpop.f32.mrf.mxu0  ;;  %14906 = vmatmul.mubr.f32.vlgmr.msra.gmra.mxu0 %v16515_v62 }
 0x1b2   : > { %14885 = vmatmul.mubr.f32.vlgmr.msra.gmra.mxu1 %v16515_v62  ;;  %14894 = vmatprep.subr.mxu1 %v17898_v36  ;;  %v14679_v50 = vpop.f32.mrf.mxu1  ;;  %v3698_v38 = vadd.f32 %v16850_v5, %v3546_v4 }
 0x1b3   : > { %14895 = vmatpush3.msra.mxu1 %v16822_v55  ;;  %v14660_v43 = vpop.f32.mrf.mxu0  ;;  %14898 = vmatprep.mubr.msk.f32.mxu1 %vm15647_vm1, %v17898_v36 }
 0x1b4   : > { %v3716_v34 = vadd.f32 %v14676_v13, %v14660_v43  ;;  %14896 = vmatprep.subr.mxu1 %v17898_v36  ;;  %v16871_v17 = vpop.f32.mrf.mxu1  ;;  %14915 = vmatprep.subr.mxu0 %v17898_v36 }
 0x1b5   : > { %17918 = vst [vmem:[#allocation55_spill] sm:$0xff] %v16871_v17  ;;  %14897 = vmatpush3.msra.mxu1 %v16829_v30  ;;  %v16875_v51 = vpop.f32.mrf.mxu0  ;;  %14919 = vmatprep.mubr.msk.f32.mxu0 %vm15647_vm1, %v17898_v36 }
 0x1b6   : > { %14899 = vmatmul.mubr.f32.vlgmr.msra.gmra.mxu1 %v16537_v16  ;;  %14908 = vmatprep.subr.mxu1 %v17898_v36  ;;  %v14682_v57 = vpop.f32.mrf.mxu1 }
 0x1b7   : > { %14909 = vmatpush3.msra.mxu1 %v16822_v55  ;;  %v14663_v58 = vpop.f32.mrf.mxu0  ;;  %14912 = vmatprep.mubr.msk.f32.mxu1 %vm15647_vm1, %v17898_v36 }
 0x1b8   : > { %v3728_v40 = vadd.f32 %v14679_v50, %v14663_v58  ;;  %14910 = vmatprep.subr.mxu1 %v17898_v36  ;;  %v16885_v49 = vpop.f32.mrf.mxu1 }
 0x1b9   : > { %17919 = vst [vmem:[#allocation56_spill] sm:$0xff] %v16885_v49  ;;  %14911 = vmatpush3.msra.mxu1 %v16829_v30  ;;  %v16888_v0 = vpop.f32.mrf.mxu0 }
 0x1ba   : > { %17920 = vst [vmem:[#allocation57_spill] sm:$0xff] %v16888_v0  ;;  %14913 = vmatmul.mubr.f32.vlgmr.msra.gmra.mxu1 %v16515_v62  ;;  %v14705_v9 = vpop.f32.mrf.mxu1  ;;  %14922 = vmatprep.subr.mxu1 %v17898_v36 }
 0x1bb   : > { %v14666_v13 = vpop.f32.mrf.mxu0  ;;  %14926 = vmatprep.mubr.msk.f32.mxu1 %vm15647_vm1, %v17898_v36 }
 0x1bc   : > { %v3740_v55 = vadd.f32 %v14682_v57, %v14666_v13  ;;  %v3939_v19 = vpop.f32.mrf.mxu1  ;;  %v3704_v57 = vadd.f32 %v16845_v7, %v14657_v32 }
 0x1bd   : > { %v16894_v50 = vpop.f32.mrf.mxu0 }
 0x1be   : > { %17921 = vst [vmem:[#allocation58_spill] sm:$0xff] %v16894_v50  ;;  %v14708_v43 = vpop.f32.mrf.mxu1 }
 0x1bf   : > { %v14689_v58 = vpop.f32.mrf.mxu0 }
 0x1c0   : > { %v16896_v49 = vpop.f32.mrf.mxu1  ;;  %v3823_v33 = vadd.f32 %v14689_v58, %v3704_v57 }
 0x1c1   : > { %v3815_v30 = vpop.f32.mrf.mxu0 }
 0x1c2   : > { %v14711_v47 = vpop.f32.mrf.mxu1 }
 0x1c3   : > { %v14692_v3 = vpop.f32.mrf.mxu0 }
 0x1c4   : > { %v3837_v22 = vadd.f32 %v14692_v3, %v3716_v34  ;;  %v16898_v27 = vpop.f32.mrf.mxu1 }
 0x1c5   : > { %17922 = vst [vmem:[#allocation59_spill] sm:$0xff] %v16898_v27  ;;  %v16900_v17 = vpop.f32.mrf.mxu0  ;;  %v3816_v27 = vadd.f32 %v3815_v30, %v3698_v38 }
 0x1c6   : > { %v16902_v0 = vadd.f32 %v14708_v43, %v3837_v22  ;;  %v14714_v56 = vpop.f32.mrf.mxu1  ;;  %v3948_v43 = vadd.f32 %v14705_v9, %v3823_v33 }
 0x1c7   : > { %v14695_v18 = vpop.f32.mrf.mxu0  ;;  %v3940_v7 = vadd.f32 %v3939_v19, %v3816_v27 }
 0x1c8   : > { %v3851_v13 = vadd.f32 %v14695_v18, %v3728_v40  ;;  %v16905_v50 = vpop.f32.mrf.mxu1 }
 0x1c9   : > { %17923 = vst [vmem:[#allocation60_spill] sm:$0xff] %v16905_v50  ;;  %v16907_v31 = vpop.f32.mrf.mxu0 }
 0x1ca   : > { %v3980_v61 = vadd.f32 %v14711_v47, %v3851_v13  ;;  %v14737_v3 = vpop.f32.mrf.mxu1 }
 0x1cb   : > { %v14698_v34 = vpop.f32.mrf.mxu0 }
 0x1cc   : > { %v3865_v26 = vadd.f32 %v14698_v34, %v3740_v55  ;;  %v4187_v6 = vpop.f32.mrf.mxu1 }
 0x1cd   : > { %v16910_v22 = vpop.f32.mrf.mxu0 }
 0x1ce   : > { %v3996_v46 = vadd.f32 %v14714_v56, %v3865_v26  ;;  %v16912_v2 = vpop.f32.mrf.mxu1 }
 0x1cf   : > { %v14721_v18 = vpop.f32.mrf.mxu0 }
 0x1d0   : > { %v4079_v32 = vadd.f32 %v14721_v18, %v3948_v43  ;;  %v16914_v40 = vpop.f32.mrf.mxu1 }
 0x1d1   : > { %v4072_v50 = vpop.f32.mrf.mxu0 }
 0x1d2   : > { %v4194_v5 = vadd.f32 %v14737_v3, %v4079_v32  ;;  %v4073_v4 = vadd.f32 %v4072_v50, %v3940_v7  ;;  %v14743_v58 = vpop.f32.mrf.mxu1  ;;  %v1040_v3 = vadd.f32 %v16531_v8, %v16549_v25  ;;  %v16943_v32 = vand.u32 4294901760, %v16547_v60 }
 0x1d3   : > { %v16916_v47 = vpop.f32.mrf.mxu0 }
 0x1d4   : > { %v16918_v38 = vand.u32 4294901760, %v4194_v5  ;;  %v4188_v55 = vadd.f32 %v4187_v6, %v4073_v4  ;;  %v16927_v56 = vpop.f32.mrf.mxu1  ;;  %v16949_v8 = vand.u32 4294901760, %v1040_v3  ;;  %v6660_v25 = vsub.f32 %v16547_v60, %v16943_v32 }
 0x1d5   : > { %v16920_v30 = vpop.f32.mrf.mxu0 }
 0x1d6   : > { %v6179_v26 = vsub.f32 %v4194_v5, %v16918_v38  ;;  %v16923_v33 = vand.u32 4294901760, %v4188_v55  ;;  %14916 = vmatpush3.msra.mxu0 %v16918_v38  ;;  %v14746_v43 = vpop.f32.mrf.mxu1  ;;  %v6661_v60 = vand.u32 4294901760, %v6660_v25 }
 0x1d7   : > { %v14727_v27 = vpop.f32.mrf.mxu0  ;;  %14917 = vmatprep.subr.mxu0 %v17898_v36 }
 0x1d8   : > { %v6180_v9 = vand.u32 4294901760, %v6179_v26  ;;  %v6186_v19 = vsub.f32 %v4188_v55, %v16923_v33  ;;  %v4103_v50 = vadd.f32 %v14727_v27, %v3980_v61  ;;  %14918 = vmatpush3.msra.mxu0 %v16923_v33  ;;  %v6667_v55 = vsub.f32 %v1040_v3, %v16949_v8 }
 0x1d9   : > { %v16931_v6 = vpop.f32.mrf.mxu0  ;;  %14929 = vmatprep.subr.mxu0 %v17898_v36  ;;  %14920 = vmatmul.mubr.f32.vlgmr.msra.gmra.mxu0 %v16572_v12 }
 0x1da   : > { %v6181_v57 = vsub.f32 %v6179_v26, %v6180_v9  ;;  %v6187_v13 = vand.u32 4294901760, %v6186_v19  ;;  %14930 = vmatpush3.msra.mxu0 %v6179_v26  ;;  %14933 = vmatprep.mubr.msk.f32.mxu0 %vm15647_vm1, %v17898_v36  ;;  %v16939_v34 = vadd.f32 %v14743_v58, %v4103_v50  ;;  %v1334_v58 = vadd.f32 %v16586_v42, %v16597_v15 }
 0x1db   : > { %v14730_v61 = vpop.f32.mrf.mxu0  ;;  %14931 = vmatprep.subr.mxu0 %v17898_v36  ;;  %v6668_v42 = vand.u32 4294901760, %v6667_v55  ;;  %v2126_v50 = vadd.f32 %v16680_v21, %v16695_v52 }
 0x1dc   : > { %v4115_v18 = vadd.f32 %v14730_v61, %v3996_v46  ;;  %14932 = vmatpush3.msra.mxu0 %v6186_v19  ;;  %v6182_v7 = vand.u32 4294901760, %v6181_v57  ;;  %v6188_v5 = vsub.f32 %v6186_v19, %v6187_v13  ;;  %v1454_v26 = vadd.f32 %v16630_v20, %v1334_v58 }
 0x1dd   : > { %14943 = vmatprep.subr.mxu0 %v17898_v36  ;;  %14934 = vmatmul.mubr.f32.vlgmr.msra.gmra.mxu0 %v16527_v28  ;;  %v6662_v20 = vsub.f32 %v6660_v25, %v6661_v60  ;;  %v17035_v61 = vpop.f32.mrf.mxu0 }
 0x1de   : > { %v16947_v4 = vadd.f32 %v14746_v43, %v4115_v18  ;;  %14923 = vmatpush3.msra.mxu1 %v6182_v7  ;;  %14944 = vmatpush3.msra.mxu0 %v6180_v9  ;;  %v6189_v46 = vand.u32 4294901760, %v6188_v5  ;;  %v1580_v15 = vadd.f32 %v16626_v39, %v1454_v26  ;;  %v6669_v39 = vsub.f32 %v6667_v55, %v6668_v42  ;;  %v17042_v18 = vpop.f32.mrf.mxu1 }
 0x1df   : > { %14924 = vmatprep.subr.mxu1 %v17898_v36  ;;  %14945 = vmatprep.subr.mxu0 %v17898_v36  ;;  %v4309_v7 = vpop.f32.mrf.mxu0  ;;  %v2918_v26 = vadd.f32 %v16770_v35, %v16785_v63 }
 0x1e0   : > { %14946 = vmatpush3.msra.mxu0 %v6187_v13  ;;  %14947 = vmatprep.mubr.msk.f32.mxu0 %vm15647_vm1, %v17898_v36  ;;  %v1709_v27 = vadd.f32 %v16646_v14, %v1580_v15  ;;  %v6663_v14 = vand.u32 4294901760, %v6662_v20  ;;  %v2246_v13 = vadd.f32 %v16720_v23, %v2126_v50 }
 0x1e1   : > { %14925 = vmatpush3.msra.mxu1 %v6189_v46  ;;  %14957 = vmatprep.subr.mxu0 %v17898_v36  ;;  %v14753_v5 = vpop.f32.mrf.mxu0  ;;  %v3038_v15 = vadd.f32 %v16810_v48, %v2918_v26 }
 0x1e2   : > { %14927 = vmatmul.mubr.f32.vlgmr.msra.gmra.mxu1 %v16515_v62  ;;  %14936 = vmatprep.subr.mxu1 %v17898_v36  ;;  %v1824_v9 = vadd.f32 %v16640_v11, %v1709_v27  ;;  %v2372_v52 = vadd.f32 %v16716_v45, %v2246_v13 }
 0x1e3   : > { %14937 = vmatpush3.msra.mxu1 %v16918_v38  ;;  %14948 = vmatmul.mubr.f32.vlgmr.msra.gmra.mxu0 %v16515_v62 }
 0x1e4   : > { %14958 = vmatpush3.msra.mxu0 %v16943_v32  ;;  %14938 = vmatprep.subr.mxu1 %v17898_v36  ;;  %v16998_v11 = vand.u32 4294901760, %v1824_v9  ;;  %v2501_v3 = vadd.f32 %v16736_v44, %v2372_v52  ;;  %v17100_v52 = vand.u32 4294901760, %v16831_v10 }
 0x1e5   : > { %14959 = vmatprep.subr.mxu0 %v17898_v36  ;;  %14939 = vmatpush3.msra.mxu1 %v16923_v33 }
 0x1e6   : > { %14940 = vmatprep.mubr.msk.f32.mxu1 %vm15647_vm1, %v17898_v36  ;;  %14960 = vmatpush3.msra.mxu0 %v16949_v8  ;;  %v7126_v57 = vsub.f32 %v1824_v9, %v16998_v11  ;;  %v2616_v44 = vadd.f32 %v16730_v37, %v2501_v3  ;;  %v3164_v9 = vadd.f32 %v16806_v24, %v3038_v15 }
 0x1e7   : > { %14941 = vmatmul.mubr.f32.vlgmr.msra.gmra.mxu1 %v16537_v16  ;;  %14950 = vmatprep.subr.mxu1 %v17898_v36 }
 0x1e8   : > { %14961 = vmatprep.mubr.msk.f32.mxu0 %vm15647_vm1, %v17898_v36  ;;  %14971 = vmatprep.subr.mxu0 %v17898_v36  ;;  %v7127_v21 = vand.u32 4294901760, %v7126_v57  ;;  %v17052_v46 = vand.u32 4294901760, %v2616_v44 }
 0x1e9   : > { %14951 = vmatpush3.msra.mxu1 %v16918_v38  ;;  %14962 = vmatmul.mubr.f32.vlgmr.msra.gmra.mxu0 %v16572_v12  ;;  %v16994_v38 = vand.u32 4294901760, %v16651_v53 }
 0x1ea   : > { %14972 = vmatpush3.msra.mxu0 %v6660_v25  ;;  %14952 = vmatprep.subr.mxu1 %v17898_v36  ;;  %v7128_v45 = vsub.f32 %v7126_v57, %v7127_v21 }
 0x1eb   : > { %14973 = vmatprep.subr.mxu0 %v17898_v36  ;;  %14953 = vmatpush3.msra.mxu1 %v16923_v33  ;;  %v6670_v33 = vand.u32 4294901760, %v6669_v39  ;;  %v7119_v19 = vsub.f32 %v16651_v53, %v16994_v38 }
 0x1ec   : > { %14954 = vmatprep.mubr.msk.f32.mxu1 %vm15647_vm1, %v17898_v36  ;;  %14974 = vmatpush3.msra.mxu0 %v6667_v55  ;;  %v7129_v37 = vand.u32 4294901760, %v7128_v45 }
 0x1ed   : > { %14955 = vmatmul.mubr.f32.vlgmr.msra.gmra.mxu1 %v16515_v62  ;;  %14964 = vmatprep.subr.mxu1 %v17898_v36  ;;  %v7120_v53 = vand.u32 4294901760, %v7119_v19 }
 0x1ee   : > { %14975 = vmatprep.mubr.msk.f32.mxu0 %vm15647_vm1, %v17898_v36  ;;  %14985 = vmatprep.subr.mxu0 %v17898_v36 }
 0x1ef   : > { %14965 = vmatpush3.msra.mxu1 %v6663_v14  ;;  %14976 = vmatmul.mubr.f32.vlgmr.msra.gmra.mxu0 %v16527_v28  ;;  %v7121_v23 = vsub.f32 %v7119_v19, %v7120_v53 }
 0x1f0   : > { %14986 = vmatpush3.msra.mxu0 %v6661_v60  ;;  %14966 = vmatprep.subr.mxu1 %v17898_v36  ;;  %v4466_v60 = vpop.f32.mrf.mxu0 }
 0x1f1   : > { %14987 = vmatprep.subr.mxu0 %v17898_v36  ;;  %14967 = vmatpush3.msra.mxu1 %v6670_v33  ;;  %v7122_v43 = vand.u32 4294901760, %v7121_v23 }
 0x1f2   : > { %14968 = vmatprep.mubr.msk.f32.mxu1 %vm15647_vm1, %v17898_v36  ;;  %14988 = vmatpush3.msra.mxu0 %v6668_v42  ;;  %v7585_v42 = vsub.f32 %v2616_v44, %v17052_v46  ;;  %v14767_v35 = vpop.f32.mrf.mxu0 }
 0x1f3   : > { %14969 = vmatmul.mubr.f32.vlgmr.msra.gmra.mxu1 %v16515_v62  ;;  %14978 = vmatprep.subr.mxu1 %v17898_v36 }
 0x1f4   : > { %14989 = vmatprep.mubr.msk.f32.mxu0 %vm15647_vm1, %v17898_v36  ;;  %14999 = vmatprep.subr.mxu0 %v17898_v36  ;;  %v7586_v39 = vand.u32 4294901760, %v7585_v42  ;;  %v4618_v14 = vpop.f32.mrf.mxu0 }
 0x1f5   : > { %14979 = vmatpush3.msra.mxu1 %v16943_v32  ;;  %14990 = vmatmul.mubr.f32.vlgmr.msra.gmra.mxu0 %v16515_v62 }
 0x1f6   : > { %15000 = vmatpush3.msra.mxu0 %v16994_v38  ;;  %14980 = vmatprep.subr.mxu1 %v17898_v36  ;;  %v14781_v24 = vpop.f32.mrf.mxu0  ;;  %v7587_v13 = vsub.f32 %v7585_v42, %v7586_v39 }
 0x1f7   : > { %15001 = vmatprep.subr.mxu0 %v17898_v36  ;;  %14981 = vmatpush3.msra.mxu1 %v16949_v8  ;;  %v17924_v24 = vld [vmem:[#allocation9_spill] sm:$0xff] }
 0x1f8   : > { %14982 = vmatprep.mubr.msk.f32.mxu1 %vm15647_vm1, %v17898_v36  ;;  %15002 = vmatpush3.msra.mxu0 %v16998_v11  ;;  %v7588_v23 = vand.u32 4294901760, %v7587_v13 }
 0x1f9   : > { %14983 = vmatmul.mubr.f32.vlgmr.msra.gmra.mxu1 %v16537_v16  ;;  %14992 = vmatprep.subr.mxu1 %v17898_v36 }
 0x1fa   : > { %15003 = vmatprep.mubr.msk.f32.mxu0 %vm15647_vm1, %v17898_v36  ;;  %15013 = vmatprep.subr.mxu0 %v17898_v36 }
 0x1fb   : > { %14993 = vmatpush3.msra.mxu1 %v16943_v32  ;;  %15004 = vmatmul.mubr.f32.vlgmr.msra.gmra.mxu0 %v16572_v12  ;;  %v17048_v32 = vand.u32 4294901760, %v16741_v1 }
 0x1fc   : > { %15014 = vmatpush3.msra.mxu0 %v7119_v19  ;;  %14994 = vmatprep.subr.mxu1 %v17898_v36  ;;  %v3293_v19 = vadd.f32 %v16826_v41, %v3164_v9 }
 0x1fd   : > { %15015 = vmatprep.subr.mxu0 %v17898_v36  ;;  %14995 = vmatpush3.msra.mxu1 %v16949_v8  ;;  %v4390_v8 = vpop.f32.mrf.mxu1  ;;  %v7578_v55 = vsub.f32 %v16741_v1, %v17048_v32 }
 0x1fe   : > { %14996 = vmatprep.mubr.msk.f32.mxu1 %vm15647_vm1, %v17898_v36  ;;  %15016 = vmatpush3.msra.mxu0 %v7126_v57  ;;  %v4391_v25 = vadd.f32 %v4390_v8, %v4309_v7  ;;  %v8037_v7 = vsub.f32 %v16831_v10, %v17100_v52 }
 0x1ff   : > { %14997 = vmatmul.mubr.f32.vlgmr.msra.gmra.mxu1 %v16515_v62  ;;  %15006 = vmatprep.subr.mxu1 %v17898_v36  ;;  %v14760_v58 = vpop.f32.mrf.mxu1  ;;  %v7579_v20 = vand.u32 4294901760, %v7578_v55 }
 0x200   : > { %15017 = vmatprep.mubr.msk.f32.mxu0 %vm15647_vm1, %v17898_v36  ;;  %15027 = vmatprep.subr.mxu0 %v17898_v36  ;;  %v4467_v1 = vadd.f32 %v4466_v60, %v4391_v25  ;;  %v8038_v58 = vand.u32 4294901760, %v8037_v7 }
 0x201   : > { %15007 = vmatpush3.msra.mxu1 %v7122_v43  ;;  %15018 = vmatmul.mubr.f32.vlgmr.msra.gmra.mxu0 %v16527_v28  ;;  %v4541_v63 = vpop.f32.mrf.mxu1  ;;  %v7580_v33 = vsub.f32 %v7578_v55, %v7579_v20 }
 0x202   : > { %15028 = vmatpush3.msra.mxu0 %v7120_v53  ;;  %15008 = vmatprep.subr.mxu1 %v17898_v36  ;;  %v4542_v27 = vadd.f32 %v4541_v63, %v4467_v1  ;;  %v8039_v1 = vsub.f32 %v8037_v7, %v8038_v58 }
 0x203   : > { %15029 = vmatprep.subr.mxu0 %v17898_v36  ;;  %15009 = vmatpush3.msra.mxu1 %v7129_v37  ;;  %v14774_v48 = vpop.f32.mrf.mxu1  ;;  %v3710_v37 = vadd.f32 %v16860_v29, %v16875_v51 }
 0x204   : > { %15010 = vmatprep.mubr.msk.f32.mxu1 %vm15647_vm1, %v17898_v36  ;;  %15030 = vmatpush3.msra.mxu0 %v7127_v21  ;;  %v4619_v50 = vadd.f32 %v4618_v14, %v4542_v27  ;;  %v7581_v21 = vand.u32 4294901760, %v7580_v33 }
 0x205   : > { %15011 = vmatmul.mubr.f32.vlgmr.msra.gmra.mxu1 %v16515_v62  ;;  %15020 = vmatprep.subr.mxu1 %v17898_v36  ;;  %v4691_v57 = vpop.f32.mrf.mxu1  ;;  %v3830_v25 = vadd.f32 %v16900_v17, %v3710_v37 }
 0x206   : > { %15031 = vmatprep.mubr.msk.f32.mxu0 %vm15647_vm1, %v17898_v36  ;;  %15041 = vmatprep.subr.mxu0 %v17898_v36  ;;  %v17089_v53 = vadd.f32 %v4691_v57, %v4619_v50  ;;  %v937_v57 = vadd.f32 %v17924_v24, %v16517_v59 }
 0x207   : > { %15021 = vmatpush3.msra.mxu1 %v16994_v38  ;;  %15032 = vmatmul.mubr.f32.vlgmr.msra.gmra.mxu0 %v16515_v62  ;;  %v14788_v41 = vpop.f32.mrf.mxu1  ;;  %v3956_v60 = vadd.f32 %v16896_v49, %v3830_v25 }
 0x208   : > { %15042 = vmatpush3.msra.mxu0 %v17048_v32  ;;  %15022 = vmatprep.subr.mxu1 %v17898_v36  ;;  %v6537_v49 = vmul.f32 2.0, %v17089_v53 }
 0x209   : > { %15043 = vmatprep.subr.mxu0 %v17898_v36  ;;  %15023 = vmatpush3.msra.mxu1 %v16998_v11  ;;  %v4085_v35 = vadd.f32 %v16920_v30, %v3956_v60  ;;  %v17241_v60 = vmul.f32 %v17089_v53, %v17089_v53 }
 0x20a   : > { %15024 = vmatprep.mubr.msk.f32.mxu1 %vm15647_vm1, %v17898_v36  ;;  %15044 = vmatpush3.msra.mxu0 %v17052_v46 }
 0x20b   : > { %15025 = vmatmul.mubr.f32.vlgmr.msra.gmra.mxu1 %v16537_v16  ;;  %15034 = vmatprep.subr.mxu1 %v17898_v36  ;;  %v4200_v48 = vadd.f32 %v16914_v40, %v4085_v35 }
 0x20c   : > { %15045 = vmatprep.mubr.msk.f32.mxu0 %vm15647_vm1, %v17898_v36  ;;  %15055 = vmatprep.subr.mxu0 %v17898_v36 }
 0x20d   : > { %15035 = vmatpush3.msra.mxu1 %v16994_v38  ;;  %15046 = vmatmul.mubr.f32.vlgmr.msra.gmra.mxu0 %v16572_v12  ;;  %v3408_v38 = vadd.f32 %v16820_v54, %v3293_v19  ;;  %v17162_v40 = vand.u32 4294901760, %v4200_v48 }
 0x20e   : > { %15056 = vmatpush3.msra.mxu0 %v7578_v55  ;;  %15036 = vmatprep.subr.mxu1 %v17898_v36 }
 0x20f   : > { %15057 = vmatprep.subr.mxu0 %v17898_v36  ;;  %15037 = vmatpush3.msra.mxu1 %v16998_v11  ;;  %v4768_v11 = vpop.f32.mrf.mxu0  ;;  %v17104_v45 = vand.u32 4294901760, %v3408_v38  ;;  %v8503_v33 = vsub.f32 %v4200_v48, %v17162_v40 }
 0x210   : > { %15038 = vmatprep.mubr.msk.f32.mxu1 %vm15647_vm1, %v17898_v36  ;;  %15058 = vmatpush3.msra.mxu0 %v7585_v42  ;;  %v4091_v42 = vadd.f32 %v16916_v47, %v16902_v0 }
 0x211   : > { %15039 = vmatmul.mubr.f32.vlgmr.msra.gmra.mxu1 %v16515_v62  ;;  %15048 = vmatprep.subr.mxu1 %v17898_v36  ;;  %v14795_v54 = vpop.f32.mrf.mxu0  ;;  %v8044_v8 = vsub.f32 %v3408_v38, %v17104_v45  ;;  %v8504_v50 = vand.u32 4294901760, %v8503_v33  ;;  %v17925_v38 = vld [vmem:[#allocation7_spill] sm:$0xff] }
 0x212   : > { %15059 = vmatprep.mubr.msk.f32.mxu0 %vm15647_vm1, %v17898_v36  ;;  %15069 = vmatprep.subr.mxu0 %v17898_v36  ;;  %v4849_v3 = vpop.f32.mrf.mxu1 }
 0x213   : > { %15049 = vmatpush3.msra.mxu1 %v7581_v21  ;;  %15060 = vmatmul.mubr.f32.vlgmr.msra.gmra.mxu0 %v16527_v28  ;;  %v4850_v44 = vadd.f32 %v4849_v3, %v4768_v11  ;;  %v4925_v5 = vpop.f32.mrf.mxu0  ;;  %v8045_v26 = vand.u32 4294901760, %v8044_v8  ;;  %v8505_v41 = vsub.f32 %v8503_v33, %v8504_v50  ;;  %v1052_v21 = vadd.f32 %v17925_v38, %v937_v57  ;;  %v17926_v11 = vld [vmem:[#allocation10_spill] sm:$0xff] }
 0x214   : > { %15070 = vmatpush3.msra.mxu0 %v7579_v20  ;;  %15050 = vmatprep.subr.mxu1 %v17898_v36  ;;  %v14802_v43 = vpop.f32.mrf.mxu1  ;;  %v4206_v20 = vadd.f32 %v16912_v2, %v4091_v42 }
 0x215   : > { %15071 = vmatprep.subr.mxu0 %v17898_v36  ;;  %15051 = vmatpush3.msra.mxu1 %v7588_v23  ;;  %v4926_v10 = vadd.f32 %v4925_v5, %v4850_v44  ;;  %v14809_v29 = vpop.f32.mrf.mxu0  ;;  %v8046_v27 = vsub.f32 %v8044_v8, %v8045_v26  ;;  %v8506_v23 = vand.u32 4294901760, %v8505_v41  ;;  %v17208_v54 = vand.u32 4294901760, %v1052_v21  ;;  %v17927_v44 = vld [vmem:[#allocation15_spill] sm:$0xff]  ;;  %v17928_v43 = vld [vmem:[#allocation13_spill] sm:$0xff] }
 0x216   : > { %15052 = vmatprep.mubr.msk.f32.mxu1 %vm15647_vm1, %v17898_v36  ;;  %15072 = vmatpush3.msra.mxu0 %v7586_v39  ;;  %v5000_v51 = vpop.f32.mrf.mxu1  ;;  %v8040_v39 = vand.u32 4294901760, %v8039_v1 }
 0x217   : > { %15053 = vmatmul.mubr.f32.vlgmr.msra.gmra.mxu1 %v16515_v62  ;;  %15062 = vmatprep.subr.mxu1 %v17898_v36  ;;  %v5001_v55 = vadd.f32 %v5000_v51, %v4926_v10  ;;  %v5077_v15 = vpop.f32.mrf.mxu0  ;;  %v8047_v9 = vand.u32 4294901760, %v8046_v27  ;;  %v8982_v5 = vsub.f32 %v1052_v21, %v17208_v54 }
 0x218   : > { %15073 = vmatprep.mubr.msk.f32.mxu0 %vm15647_vm1, %v17898_v36  ;;  %15083 = vmatprep.subr.mxu0 %v17898_v36  ;;  %v14816_v17 = vpop.f32.mrf.mxu1 }
 0x219   : > { %15063 = vmatpush3.msra.mxu1 %v17048_v32  ;;  %15074 = vmatmul.mubr.f32.vlgmr.msra.gmra.mxu0 %v16515_v62  ;;  %v5078_v0 = vadd.f32 %v5077_v15, %v5001_v55  ;;  %v14823_v47 = vpop.f32.mrf.mxu0  ;;  %v17930_v55 = vld [vmem:[#allocation17_spill] sm:$0xff]  ;;  %v17931_v15 = vld [vmem:[#allocation23_spill] sm:$0xff] }
 0x21a   : > { %15084 = vmatpush3.msra.mxu0 %v17100_v52  ;;  %15064 = vmatprep.subr.mxu1 %v17898_v36  ;;  %v5150_v63 = vpop.f32.mrf.mxu1 }
 0x21b   : > { %15085 = vmatprep.subr.mxu0 %v17898_v36  ;;  %15065 = vmatpush3.msra.mxu1 %v17052_v46  ;;  %v17145_v30 = vadd.f32 %v5150_v63, %v5078_v0 }
 0x21c   : > { %15066 = vmatprep.mubr.msk.f32.mxu1 %vm15647_vm1, %v17898_v36  ;;  %15086 = vmatpush3.msra.mxu0 %v17104_v45 }
 0x21d   : > { %15067 = vmatmul.mubr.f32.vlgmr.msra.gmra.mxu1 %v16537_v16  ;;  %15076 = vmatprep.subr.mxu1 %v17898_v36  ;;  %v17153_v2 = vmul.f32 %v6537_v49, %v17145_v30  ;;  %v17249_v47 = vmul.f32 %v17145_v30, %v17145_v30 }
 0x21e   : > { %15087 = vmatprep.mubr.msk.f32.mxu0 %vm15647_vm1, %v17898_v36  ;;  %15097 = vmatprep.subr.mxu0 %v17898_v36 }
 0x21f   : > { %15077 = vmatpush3.msra.mxu1 %v17048_v32  ;;  %15088 = vmatmul.mubr.f32.vlgmr.msra.gmra.mxu0 %v16572_v12  ;;  %v14830_v32 = vpop.f32.mrf.mxu1  ;;  %v17257_v48 = vadd.f32 %v17249_v47, %v17241_v60 }
 0x220   : > { %15098 = vmatpush3.msra.mxu0 %v8037_v7  ;;  %15078 = vmatprep.subr.mxu1 %v17898_v36  ;;  %v1346_v7 = vadd.f32 %v17928_v43, %v17927_v44  ;;  %v17936_v44 = vld [vmem:[#allocation33_spill] sm:$0xff] }
 0x221   : > { %15099 = vmatprep.subr.mxu0 %v17898_v36  ;;  %15079 = vmatpush3.msra.mxu1 %v17052_v46  ;;  %v17158_v46 = vand.u32 4294901760, %v4206_v20 }
 0x222   : > { %15080 = vmatprep.mubr.msk.f32.mxu1 %vm15647_vm1, %v17898_v36  ;;  %15100 = vmatpush3.msra.mxu0 %v8044_v8  ;;  %v17929_v8 = vld [vmem:[#allocation19_spill] sm:$0xff] }
 0x223   : > { %15081 = vmatmul.mubr.f32.vlgmr.msra.gmra.mxu1 %v16515_v62  ;;  %15090 = vmatprep.subr.mxu1 %v17898_v36  ;;  %v8496_v14 = vsub.f32 %v4206_v20, %v17158_v46  ;;  %v1468_v25 = vadd.f32 %v17929_v8, %v1346_v7 }
 0x224   : > { %15101 = vmatprep.mubr.msk.f32.mxu0 %vm15647_vm1, %v17898_v36  ;;  %15111 = vmatprep.subr.mxu0 %v17898_v36 }
 0x225   : > { %15091 = vmatpush3.msra.mxu1 %v8040_v39  ;;  %15102 = vmatmul.mubr.f32.vlgmr.msra.gmra.mxu0 %v16527_v28  ;;  %v8497_v19 = vand.u32 4294901760, %v8496_v14  ;;  %v1596_v17 = vadd.f32 %v17930_v55, %v1468_v25  ;;  %v17932_v39 = vld [vmem:[#allocation21_spill] sm:$0xff]  ;;  %v17307_v25 = vmul.f32 %v17145_v30, %v17089_v53  ;;  %v17939_v53 = vld [vmem:[#allocation35_spill] sm:$0xff]  ;;  %v17940_v55 = vld [vmem:[#allocation38_spill] sm:$0xff] }
 0x226   : > { %15112 = vmatpush3.msra.mxu0 %v8038_v58  ;;  %15092 = vmatprep.subr.mxu1 %v17898_v36  ;;  %v8983_v58 = vand.u32 4294901760, %v8982_v5 }
 0x227   : > { %15113 = vmatprep.subr.mxu0 %v17898_v36  ;;  %15093 = vmatpush3.msra.mxu1 %v8047_v9  ;;  %v8498_v13 = vsub.f32 %v8496_v14, %v8497_v19  ;;  %v1721_v1 = vadd.f32 %v17931_v15, %v1596_v17  ;;  %v17324_v17 = vand.u32 4294901760, %v17940_v55  ;;  %v17941_v15 = vld [vmem:[#allocation43_spill] sm:$0xff] }
 0x228   : > { %15094 = vmatprep.mubr.msk.f32.mxu1 %vm15647_vm1, %v17898_v36  ;;  %15114 = vmatpush3.msra.mxu0 %v8045_v26  ;;  %v8984_v63 = vsub.f32 %v8982_v5, %v8983_v58 }
 0x229   : > { %15095 = vmatmul.mubr.f32.vlgmr.msra.gmra.mxu1 %v16515_v62  ;;  %15104 = vmatprep.subr.mxu1 %v17898_v36  ;;  %v8499_v59 = vand.u32 4294901760, %v8498_v13 }
 0x22a   : > { %15115 = vmatprep.mubr.msk.f32.mxu0 %vm15647_vm1, %v17898_v36  ;;  %15125 = vmatprep.subr.mxu0 %v17898_v36 }
 0x22b   : > { %15105 = vmatpush3.msra.mxu1 %v17100_v52  ;;  %15116 = vmatmul.mubr.f32.vlgmr.msra.gmra.mxu0 %v16515_v62 }
 0x22c   : > { %15126 = vmatpush3.msra.mxu0 %v17158_v46  ;;  %15106 = vmatprep.subr.mxu1 %v17898_v36 }
 0x22d   : > { %15127 = vmatprep.subr.mxu0 %v17898_v36  ;;  %15107 = vmatpush3.msra.mxu1 %v17104_v45 }
 0x22e   : > { %15108 = vmatprep.mubr.msk.f32.mxu1 %vm15647_vm1, %v17898_v36  ;;  %15128 = vmatpush3.msra.mxu0 %v17162_v40 }
 0x22f   : > { %15109 = vmatmul.mubr.f32.vlgmr.msra.gmra.mxu1 %v16537_v16  ;;  %15118 = vmatprep.subr.mxu1 %v17898_v36 }
 0x230   : > { %15129 = vmatprep.mubr.msk.f32.mxu0 %vm15647_vm1, %v17898_v36  ;;  %15139 = vmatprep.subr.mxu0 %v17898_v36 }
 0x231   : > { %15119 = vmatpush3.msra.mxu1 %v17100_v52  ;;  %15130 = vmatmul.mubr.f32.vlgmr.msra.gmra.mxu0 %v16572_v12  ;;  %v17204_v52 = vand.u32 4294901760, %v17926_v11 }
 0x232   : > { %15140 = vmatpush3.msra.mxu0 %v8496_v14  ;;  %15120 = vmatprep.subr.mxu1 %v17898_v36 }
 0x233   : > { %15141 = vmatprep.subr.mxu0 %v17898_v36  ;;  %15121 = vmatpush3.msra.mxu1 %v17104_v45  ;;  %v8975_v45 = vsub.f32 %v17926_v11, %v17204_v52  ;;  %v17935_v11 = vld [vmem:[#allocation27_spill] sm:$0xff] }
 0x234   : > { %15122 = vmatprep.mubr.msk.f32.mxu1 %vm15647_vm1, %v17898_v36  ;;  %15142 = vmatpush3.msra.mxu0 %v8503_v33  ;;  %v17933_v33 = vld [vmem:[#allocation24_spill] sm:$0xff] }
 0x235   : > { %15123 = vmatmul.mubr.f32.vlgmr.msra.gmra.mxu1 %v16515_v62  ;;  %15132 = vmatprep.subr.mxu1 %v17898_v36  ;;  %v8976_v29 = vand.u32 4294901760, %v8975_v45 }
 0x236   : > { %15143 = vmatprep.mubr.msk.f32.mxu0 %vm15647_vm1, %v17898_v36  ;;  %15153 = vmatprep.subr.mxu0 %v17898_v36 }
 0x237   : > { %15133 = vmatpush3.msra.mxu1 %v8499_v59  ;;  %15144 = vmatmul.mubr.f32.vlgmr.msra.gmra.mxu0 %v16527_v28  ;;  %v8977_v42 = vsub.f32 %v8975_v45, %v8976_v29  ;;  %v17934_v59 = vld [vmem:[#allocation29_spill] sm:$0xff] }
 0x238   : > { %15154 = vmatpush3.msra.mxu0 %v8497_v19  ;;  %15134 = vmatprep.subr.mxu1 %v17898_v36  ;;  %v17266_v19 = vand.u32 4294901760, %v17933_v33 }
 0x239   : > { %15155 = vmatprep.subr.mxu0 %v17898_v36  ;;  %15135 = vmatpush3.msra.mxu1 %v8506_v23  ;;  %v5227_v3 = vpop.f32.mrf.mxu0  ;;  %v8978_v9 = vand.u32 4294901760, %v8977_v42  ;;  %v2138_v23 = vadd.f32 %v17935_v11, %v17934_v59  ;;  %v9893_v42 = vsub.f32 %v17940_v55, %v17324_v17  ;;  %v17950_v55 = vld [vmem:[#allocation59_spill] sm:$0xff] }
 0x23a   : > { %15136 = vmatprep.mubr.msk.f32.mxu1 %vm15647_vm1, %v17898_v36  ;;  %15156 = vmatpush3.msra.mxu0 %v8504_v50  ;;  %v8985_v50 = vand.u32 4294901760, %v8984_v63  ;;  %v9434_v21 = vsub.f32 %v17933_v33, %v17266_v19 }
 0x23b   : > { %15137 = vmatmul.mubr.f32.vlgmr.msra.gmra.mxu1 %v16515_v62  ;;  %15146 = vmatprep.subr.mxu1 %v17898_v36  ;;  %v14837_v37 = vpop.f32.mrf.mxu0  ;;  %v2260_v43 = vadd.f32 %v17936_v44, %v2138_v23  ;;  %v17948_v44 = vld [vmem:[#allocation57_spill] sm:$0xff] }
 0x23c   : > { %15157 = vmatprep.mubr.msk.f32.mxu0 %vm15647_vm1, %v17898_v36  ;;  %15167 = vmatprep.subr.mxu0 %v17898_v36  ;;  %v9435_v7 = vand.u32 4294901760, %v9434_v21 }
 0x23d   : > { %15147 = vmatpush3.msra.mxu1 %v17158_v46  ;;  %15158 = vmatmul.mubr.f32.vlgmr.msra.gmra.mxu0 %v16515_v62  ;;  %v5384_v10 = vpop.f32.mrf.mxu0 }
 0x23e   : > { %15168 = vmatpush3.msra.mxu0 %v17204_v52  ;;  %15148 = vmatprep.subr.mxu1 %v17898_v36 }
 0x23f   : > { %15169 = vmatprep.subr.mxu0 %v17898_v36  ;;  %15149 = vmatpush3.msra.mxu1 %v17162_v40  ;;  %v14851_v51 = vpop.f32.mrf.mxu0 }
 0x240   : > { %15150 = vmatprep.mubr.msk.f32.mxu1 %vm15647_vm1, %v17898_v36  ;;  %15170 = vmatpush3.msra.mxu0 %v17208_v54 }
 0x241   : > { %15151 = vmatmul.mubr.f32.vlgmr.msra.gmra.mxu1 %v16537_v16  ;;  %15160 = vmatprep.subr.mxu1 %v17898_v36 }
 0x242   : > { %15171 = vmatprep.mubr.msk.f32.mxu0 %vm15647_vm1, %v17898_v36  ;;  %15181 = vmatprep.subr.mxu0 %v17898_v36  ;;  %v5308_v26 = vpop.f32.mrf.mxu1 }
 0x243   : > { %15161 = vmatpush3.msra.mxu1 %v17158_v46  ;;  %15172 = vmatmul.mubr.f32.vlgmr.msra.gmra.mxu0 %v16572_v12  ;;  %v5309_v35 = vadd.f32 %v5308_v26, %v5227_v3  ;;  %v1836_v46 = vadd.f32 %v17932_v39, %v1721_v1  ;;  %v17942_v1 = vld [vmem:[#allocation41_spill] sm:$0xff] }
 0x244   : > { %15182 = vmatpush3.msra.mxu0 %v8975_v45  ;;  %15162 = vmatprep.subr.mxu1 %v17898_v36  ;;  %v14844_v49 = vpop.f32.mrf.mxu1  ;;  %v5536_v0 = vpop.f32.mrf.mxu0 }
 0x245   : > { %15183 = vmatprep.subr.mxu0 %v17898_v36  ;;  %15163 = vmatpush3.msra.mxu1 %v17162_v40  ;;  %v5385_v20 = vadd.f32 %v5384_v10, %v5309_v35  ;;  %v17270_v13 = vand.u32 4294901760, %v1836_v46  ;;  %v9436_v10 = vsub.f32 %v9434_v21, %v9435_v7  ;;  %v2930_v35 = vadd.f32 %v17942_v1, %v17941_v15 }
 0x246   : > { %15164 = vmatprep.mubr.msk.f32.mxu1 %vm15647_vm1, %v17898_v36  ;;  %15184 = vmatpush3.msra.mxu0 %v8982_v5  ;;  %v5459_v27 = vpop.f32.mrf.mxu1  ;;  %v14865_v32 = vpop.f32.mrf.mxu0  ;;  %v17937_v5 = vld [vmem:[#allocation31_spill] sm:$0xff] }
 0x247   : > { %15165 = vmatmul.mubr.f32.vlgmr.msra.gmra.mxu1 %v16515_v62  ;;  %15174 = vmatprep.subr.mxu1 %v17898_v36  ;;  %v5460_v40 = vadd.f32 %v5459_v27, %v5385_v20  ;;  %v9441_v45 = vsub.f32 %v1836_v46, %v17270_v13  ;;  %v2388_v8 = vadd.f32 %v17937_v5, %v2260_v43  ;;  %v9894_v20 = vand.u32 4294901760, %v9893_v42  ;;  %v17944_v32 = vld [vmem:[#allocation45_spill] sm:$0xff]  ;;  %v17949_v43 = vld [vmem:[#allocation55_spill] sm:$0xff] }
 0x248   : > { %15185 = vmatprep.mubr.msk.f32.mxu0 %vm15647_vm1, %v17898_v36  ;;  %15195 = vmatprep.subr.mxu0 %v17898_v36  ;;  %v14858_v14 = vpop.f32.mrf.mxu1 }
 0x249   : > { %15175 = vmatpush3.msra.mxu1 %v8978_v9  ;;  %15186 = vmatmul.mubr.f32.vlgmr.msra.gmra.mxu0 %v16527_v28  ;;  %v5537_v24 = vadd.f32 %v5536_v0, %v5460_v40  ;;  %v9442_v37 = vand.u32 4294901760, %v9441_v45  ;;  %v17943_v0 = vld [vmem:[#allocation47_spill] sm:$0xff]  ;;  %v9895_v46 = vsub.f32 %v9893_v42, %v9894_v20 }
 0x24a   : > { %15196 = vmatpush3.msra.mxu0 %v8976_v29  ;;  %15176 = vmatprep.subr.mxu1 %v17898_v36  ;;  %v5609_v57 = vpop.f32.mrf.mxu1  ;;  %v17938_v29 = vld [vmem:[#allocation37_spill] sm:$0xff]  ;;  %v3052_v63 = vadd.f32 %v17943_v0, %v2930_v35  ;;  %v17945_v9 = vld [vmem:[#allocation51_spill] sm:$0xff] }
 0x24b   : > { %15197 = vmatprep.subr.mxu0 %v17898_v36  ;;  %15177 = vmatpush3.msra.mxu1 %v8985_v50  ;;  %v17273_v41 = vadd.f32 %v5609_v57, %v5537_v24  ;;  %v2513_v51 = vadd.f32 %v17938_v29, %v2388_v8  ;;  %v17946_v50 = vld [vmem:[#allocation49_spill] sm:$0xff] }
 0x24c   : > { %15178 = vmatprep.mubr.msk.f32.mxu1 %vm15647_vm1, %v17898_v36  ;;  %15198 = vmatpush3.msra.mxu0 %v8983_v58  ;;  %v14872_v38 = vpop.f32.mrf.mxu1  ;;  %v9443_v58 = vsub.f32 %v9441_v45, %v9442_v37  ;;  %v3180_v39 = vadd.f32 %v17944_v32, %v3052_v63 }
 0x24d   : > { %15179 = vmatmul.mubr.f32.vlgmr.msra.gmra.mxu1 %v16515_v62  ;;  %15188 = vmatprep.subr.mxu1 %v17898_v36  ;;  %v6532_v3 = vsub.f32 %v17273_v41, %v17241_v60  ;;  %v2628_v30 = vadd.f32 %v17939_v53, %v2513_v51 }
 0x24e   : > { %15199 = vmatprep.mubr.msk.f32.mxu0 %vm15647_vm1, %v17898_v36  ;;  %15209 = vmatprep.subr.mxu0 %v17898_v36  ;;  %v3305_v40 = vadd.f32 %v17945_v9, %v3180_v39  ;;  %v17442_v39 = vstv %s17410_s16 }
 0x24f   : > { %15189 = vmatpush3.msra.mxu1 %v17204_v52  ;;  %15200 = vmatmul.mubr.f32.vlgmr.msra.gmra.mxu0 %v16515_v62  ;;  %v17328_v26 = vand.u32 4294901760, %v2628_v30 }
 0x250   : > { %15210 = vmatpush3.msra.mxu0 %v17266_v19  ;;  %15190 = vmatprep.subr.mxu1 %v17898_v36  ;;  %v3420_v24 = vadd.f32 %v17946_v50, %v3305_v40 }
 0x251   : > { %15211 = vmatprep.subr.mxu0 %v17898_v36  ;;  %15191 = vmatpush3.msra.mxu1 %v17208_v54  ;;  %v9900_v49 = vsub.f32 %v2628_v30, %v17328_v26 }
 0x252   : > { %15192 = vmatprep.mubr.msk.f32.mxu1 %vm15647_vm1, %v17898_v36  ;;  %15212 = vmatpush3.msra.mxu0 %v17270_v13  ;;  %v17378_v11 = vand.u32 4294901760, %v3420_v24 }
 0x253   : > { %15193 = vmatmul.mubr.f32.vlgmr.msra.gmra.mxu1 %v16537_v16  ;;  %15202 = vmatprep.subr.mxu1 %v17898_v36  ;;  %v9901_v27 = vand.u32 4294901760, %v9900_v49 }
 0x254   : > { %15213 = vmatprep.mubr.msk.f32.mxu0 %vm15647_vm1, %v17898_v36  ;;  %15223 = vmatprep.subr.mxu0 %v17898_v36  ;;  %v17395_v8 = vsub.f32 %v3420_v24, %v17378_v11 }
 0x255   : > { %15203 = vmatpush3.msra.mxu1 %v17204_v52  ;;  %15214 = vmatmul.mubr.f32.vlgmr.msra.gmra.mxu0 %v16572_v12  ;;  %v9437_v52 = vand.u32 4294901760, %v9436_v10  ;;  %v9902_v14 = vsub.f32 %v9900_v49, %v9901_v27 }
 0x256   : > { %15224 = vmatpush3.msra.mxu0 %v9434_v21  ;;  %15204 = vmatprep.subr.mxu1 %v17898_v36 }
 0x257   : > { %15225 = vmatprep.subr.mxu0 %v17898_v36  ;;  %15205 = vmatpush3.msra.mxu1 %v17208_v54  ;;  %v9444_v54 = vand.u32 4294901760, %v9443_v58  ;;  %v9903_v21 = vand.u32 4294901760, %v9902_v14 }
 0x258   : > { %15206 = vmatprep.mubr.msk.f32.mxu1 %vm15647_vm1, %v17898_v36  ;;  %15226 = vmatpush3.msra.mxu0 %v9441_v45 }
 0x259   : > { %15207 = vmatmul.mubr.f32.vlgmr.msra.gmra.mxu1 %v16515_v62  ;;  %15216 = vmatprep.subr.mxu1 %v17898_v36 }
 0x25a   : > { %15227 = vmatprep.mubr.msk.f32.mxu0 %vm15647_vm1, %v17898_v36  ;;  %15237 = vmatprep.subr.mxu0 %v17898_v36 }
 0x25b   : > { %15217 = vmatpush3.msra.mxu1 %v9437_v52  ;;  %15228 = vmatmul.mubr.f32.vlgmr.msra.gmra.mxu0 %v16527_v28  ;;  %v10360_v52 = vand.u32 4294901760, %v17395_v8 }
 0x25c   : > { %15238 = vmatpush3.msra.mxu0 %v9435_v7  ;;  %15218 = vmatprep.subr.mxu1 %v17898_v36  ;;  %v3722_v7 = vadd.f32 %v17949_v43, %v17948_v44 }
 0x25d   : > { %15239 = vmatprep.subr.mxu0 %v17898_v36  ;;  %15219 = vmatpush3.msra.mxu1 %v9444_v54  ;;  %v10361_v63 = vsub.f32 %v17395_v8, %v10360_v52 }
 0x25e   : > { %15220 = vmatprep.mubr.msk.f32.mxu1 %vm15647_vm1, %v17898_v36  ;;  %15240 = vmatpush3.msra.mxu0 %v9442_v37  ;;  %v3844_v10 = vadd.f32 %v16907_v31, %v3722_v7 }
 0x25f   : > { %15221 = vmatmul.mubr.f32.vlgmr.msra.gmra.mxu1 %v16515_v62  ;;  %15230 = vmatprep.subr.mxu1 %v17898_v36 }
 0x260   : > { %15241 = vmatprep.mubr.msk.f32.mxu0 %vm15647_vm1, %v17898_v36  ;;  %15251 = vmatprep.subr.mxu0 %v17898_v36  ;;  %v3972_v54 = vadd.f32 %v17950_v55, %v3844_v10 }
 0x261   : > { %15231 = vmatpush3.msra.mxu1 %v17266_v19  ;;  %15242 = vmatmul.mubr.f32.vlgmr.msra.gmra.mxu0 %v16515_v62 }
 0x262   : > { %15252 = vmatpush3.msra.mxu0 %v17324_v17  ;;  %15232 = vmatprep.subr.mxu1 %v17898_v36  ;;  %v4097_v35 = vadd.f32 %v16931_v6, %v3972_v54 }
 0x263   : > { %15253 = vmatprep.subr.mxu0 %v17898_v36  ;;  %15233 = vmatpush3.msra.mxu1 %v17270_v13 }
 0x264   : > { %15234 = vmatprep.mubr.msk.f32.mxu1 %vm15647_vm1, %v17898_v36  ;;  %15254 = vmatpush3.msra.mxu0 %v17328_v26 }
 0x265   : > { %15235 = vmatmul.mubr.f32.vlgmr.msra.gmra.mxu1 %v16537_v16  ;;  %15244 = vmatprep.subr.mxu1 %v17898_v36 }
 0x266   : > { %15255 = vmatprep.mubr.msk.f32.mxu0 %vm15647_vm1, %v17898_v36  ;;  %15265 = vmatprep.subr.mxu0 %v17898_v36 }
 0x267   : > { %15245 = vmatpush3.msra.mxu1 %v17266_v19  ;;  %15256 = vmatmul.mubr.f32.vlgmr.msra.gmra.mxu0 %v16572_v12  ;;  %v9896_v19 = vand.u32 4294901760, %v9895_v46  ;;  %v17445_v46 = vand.u32 4294901760, %v16939_v34 }
 0x268   : > { %15266 = vmatpush3.msra.mxu0 %v9893_v42  ;;  %15246 = vmatprep.subr.mxu1 %v17898_v36 }
 0x269   : > { %15267 = vmatprep.subr.mxu0 %v17898_v36  ;;  %15247 = vmatpush3.msra.mxu1 %v17270_v13  ;;  %v5686_v33 = vpop.f32.mrf.mxu0  ;;  %v17947_v13 = vld [vmem:[#allocation52_spill] sm:$0xff]  ;;  %v10811_v60 = vsub.f32 %v16939_v34, %v17445_v46 }
 0x26a   : > { %15248 = vmatprep.mubr.msk.f32.mxu1 %vm15647_vm1, %v17898_v36  ;;  %15268 = vmatpush3.msra.mxu0 %v9900_v49  ;;  %v17374_v38 = vand.u32 4294901760, %v17947_v13 }
 0x26b   : > { %15249 = vmatmul.mubr.f32.vlgmr.msra.gmra.mxu1 %v16515_v62  ;;  %15258 = vmatprep.subr.mxu1 %v17898_v36  ;;  %v14879_v57 = vpop.f32.mrf.mxu0  ;;  %v10812_v34 = vand.u32 4294901760, %v10811_v60 }
 0x26c   : > { %15269 = vmatprep.mubr.msk.f32.mxu0 %vm15647_vm1, %v17898_v36  ;;  %15279 = vmatprep.subr.mxu0 %v17898_v36  ;;  %v17385_v45 = vsub.f32 %v17947_v13, %v17374_v38 }
 0x26d   : > { %15259 = vmatpush3.msra.mxu1 %v9896_v19  ;;  %15270 = vmatmul.mubr.f32.vlgmr.msra.gmra.mxu0 %v16527_v28  ;;  %v5843_v59 = vpop.f32.mrf.mxu0  ;;  %v17953_v19 = vld [vmem:[#allocation11_spill] sm:$0xff]  ;;  %v10813_v13 = vsub.f32 %v10811_v60, %v10812_v34 }
 0x26e   : > { %15280 = vmatpush3.msra.mxu0 %v9894_v20  ;;  %15260 = vmatprep.subr.mxu1 %v17898_v36  ;;  %v10353_v53 = vand.u32 4294901760, %v17385_v45 }
 0x26f   : > { %15281 = vmatprep.subr.mxu0 %v17898_v36  ;;  %15261 = vmatpush3.msra.mxu1 %v9903_v21  ;;  %v14893_v23 = vpop.f32.mrf.mxu0 }
 0x270   : > { %15262 = vmatprep.mubr.msk.f32.mxu1 %vm15647_vm1, %v17898_v36  ;;  %15282 = vmatpush3.msra.mxu0 %v9901_v27  ;;  %v10354_v1 = vsub.f32 %v17385_v45, %v10353_v53 }
 0x271   : > { %15263 = vmatmul.mubr.f32.vlgmr.msra.gmra.mxu1 %v16515_v62  ;;  %15272 = vmatprep.subr.mxu1 %v17898_v36  ;;  %v5995_v37 = vpop.f32.mrf.mxu0 }
 0x272   : > { %15283 = vmatprep.mubr.msk.f32.mxu0 %vm15647_vm1, %v17898_v36  ;;  %15293 = vmatprep.subr.mxu0 %v17898_v36  ;;  %v5767_v5 = vpop.f32.mrf.mxu1  ;;  %v10355_v27 = vand.u32 4294901760, %v10354_v1 }
 0x273   : > { %15273 = vmatpush3.msra.mxu1 %v17324_v17  ;;  %15284 = vmatmul.mubr.f32.vlgmr.msra.gmra.mxu0 %v16515_v62  ;;  %v5768_v29 = vadd.f32 %v5767_v5, %v5686_v33  ;;  %v14907_v51 = vpop.f32.mrf.mxu0  ;;  %v17952_v33 = vld [vmem:[#allocation5_spill] sm:$0xff]  ;;  %v17957_v5 = vld [vmem:[#allocation14_spill] sm:$0xff] }
 0x274   : > { %15294 = vmatpush3.msra.mxu0 %v17374_v38  ;;  %15274 = vmatprep.subr.mxu1 %v17898_v36  ;;  %v14886_v58 = vpop.f32.mrf.mxu1 }
 0x275   : > { %15295 = vmatprep.subr.mxu0 %v17898_v36  ;;  %15275 = vmatpush3.msra.mxu1 %v17328_v26  ;;  %v5844_v31 = vadd.f32 %v5843_v59, %v5768_v29  ;;  %v17954_v59 = vld [vmem:[#allocation8_spill] sm:$0xff] }
 0x276   : > { %15276 = vmatprep.mubr.msk.f32.mxu1 %vm15647_vm1, %v17898_v36  ;;  %15296 = vmatpush3.msra.mxu0 %v17378_v11  ;;  %v5918_v30 = vpop.f32.mrf.mxu1  ;;  %v17958_v29 = vld [vmem:[#allocation20_spill] sm:$0xff] }
 0x277   : > { %15277 = vmatmul.mubr.f32.vlgmr.msra.gmra.mxu1 %v16537_v16  ;;  %15286 = vmatprep.subr.mxu1 %v17898_v36  ;;  %v5919_v42 = vadd.f32 %v5918_v30, %v5844_v31  ;;  %v17959_v30 = vld [vmem:[#allocation18_spill] sm:$0xff] }
 0x278   : > { %15297 = vmatprep.mubr.msk.f32.mxu0 %vm15647_vm1, %v17898_v36  ;;  %15307 = vmatprep.subr.mxu0 %v17898_v36  ;;  %v14900_v15 = vpop.f32.mrf.mxu1 }
 0x279   : > { %15287 = vmatpush3.msra.mxu1 %v17324_v17  ;;  %15298 = vmatmul.mubr.f32.vlgmr.msra.gmra.mxu0 %v16572_v12  ;;  %v5996_v49 = vadd.f32 %v5995_v37, %v5919_v42  ;;  %v4212_v17 = vadd.f32 %v16927_v56, %v4097_v35  ;;  %v10362_v56 = vand.u32 4294901760, %v10361_v63  ;;  %v17956_v37 = vld [vmem:[#allocation16_spill] sm:$0xff]  ;;  %v17960_v42 = vld [vmem:[#allocation25_spill] sm:$0xff] }
 0x27a   : > { %15308 = vmatpush3.msra.mxu0 %v17385_v45  ;;  %15288 = vmatprep.subr.mxu1 %v17898_v36  ;;  %v6068_v0 = vpop.f32.mrf.mxu1  ;;  %v17955_v45 = vld [vmem:[#allocation12_spill] sm:$0xff] }
 0x27b   : > { %15309 = vmatprep.subr.mxu0 %v17898_v36  ;;  %15289 = vmatpush3.msra.mxu1 %v17328_v26  ;;  %v6069_v20 = vadd.f32 %v6068_v0, %v5996_v49  ;;  %v17439_v26 = vstv %s17405_s15  ;;  %v17452_v9 = vand.u32 4294901760, %v4212_v17  ;;  %v17501_v44 = vand.u32 4294901760, %v17955_v45  ;;  %v17961_v0 = vld [vmem:[#allocation22_spill] sm:$0xff] }
 0x27c   : > { %15290 = vmatprep.mubr.msk.f32.mxu1 %vm15647_vm1, %v17898_v36  ;;  %15310 = vmatpush3.msra.mxu0 %v17395_v8  ;;  %v14914_v6 = vpop.f32.mrf.mxu1  ;;  %v6546_v40 = vadd.f32 %v17257_v48, %v17439_v26  ;;  %v1358_v8 = vadd.f32 %v17957_v5, %v17956_v37 }
 0x27d   : > { %15291 = vmatmul.mubr.f32.vlgmr.msra.gmra.mxu1 %v16515_v62  ;;  %15300 = vmatprep.subr.mxu1 %v17898_v36  ;;  %v6534_v32 = vsub.f32 %v6069_v20, %v17249_v47  ;;  %v10818_v48 = vsub.f32 %v4212_v17, %v17452_v9  ;;  %v11290_v7 = vsub.f32 %v17955_v45, %v17501_v44  ;;  %v17962_v17 = vld [vmem:[#allocation26_spill] sm:$0xff] }
 0x27e   : > { %15311 = vmatprep.mubr.msk.f32.mxu0 %vm15647_vm1, %v17898_v36  ;;  %15321 = vmatprep.subr.mxu0 %v17898_v36  ;;  %v1482_v51 = vadd.f32 %v17958_v29, %v1358_v8  ;;  %v17967_v8 = vld [vmem:[#allocation39_spill] sm:$0xff] }
 0x27f   : > { %15301 = vmatpush3.msra.mxu1 %v10355_v27  ;;  %15312 = vmatmul.mubr.f32.vlgmr.msra.gmra.mxu0 %v16527_v28  ;;  %v6547_v47 = vadd.f32 %v6534_v32, %v6532_v3  ;;  %v17951_v3 = vld [vmem:[#allocation6_spill] sm:$0xff]  ;;  %v10819_v24 = vand.u32 4294901760, %v10818_v48  ;;  %v11291_v58 = vand.u32 4294901760, %v11290_v7  ;;  %v17551_v27 = vand.u32 4294901760, %v17962_v17 }
 0x280   : > { %15322 = vmatpush3.msra.mxu0 %v10353_v53  ;;  %15302 = vmatprep.subr.mxu1 %v17898_v36  ;;  %v828_v50 = vadd.f32 %v17952_v33, %v17951_v3 }
 0x281   : > { %15323 = vmatprep.subr.mxu0 %v17898_v36  ;;  %15303 = vmatpush3.msra.mxu1 %v10362_v56  ;;  %v6548_v14 = vadd.f32 %v6547_v47, %v17442_v39  ;;  %v10820_v21 = vsub.f32 %v10818_v48, %v10819_v24  ;;  %v11292_v54 = vsub.f32 %v11290_v7, %v11291_v58 }
 0x282   : > { %15304 = vmatprep.mubr.msk.f32.mxu1 %vm15647_vm1, %v17898_v36  ;;  %15324 = vmatpush3.msra.mxu0 %v10360_v52  ;;  %v949_v57 = vadd.f32 %v17953_v19, %v828_v50  ;;  %v1612_v52 = vadd.f32 %v17959_v30, %v1482_v51  ;;  %v17965_v19 = vld [vmem:[#allocation34_spill] sm:$0xff]  ;;  %v17968_v30 = vld [vmem:[#allocation36_spill] sm:$0xff] }
 0x283   : > { %15305 = vmatmul.mubr.f32.vlgmr.msra.gmra.mxu1 %v16515_v62  ;;  %15314 = vmatprep.subr.mxu1 %v17898_v36  ;;  %v17464_v41 = vmul.f32 %v6548_v14, %v6546_v40  ;;  %v11293_v20 = vand.u32 4294901760, %v11292_v54 }
 0x284   : > { %15325 = vmatprep.mubr.msk.f32.mxu0 %vm15647_vm1, %v17898_v36  ;;  %15335 = vmatprep.subr.mxu0 %v17898_v36  ;;  %v1064_v23 = vadd.f32 %v17954_v59, %v949_v57  ;;  %v1733_v15 = vadd.f32 %v17960_v42, %v1612_v52 }
 0x285   : > { %15315 = vmatpush3.msra.mxu1 %v17374_v38  ;;  %15326 = vmatmul.mubr.f32.vlgmr.msra.gmra.mxu0 %v16515_v62  ;;  %15610 = vrcp.f32 %v17464_v41 }
 0x286   : > { %15336 = vmatpush3.msra.mxu0 %v17445_v46  ;;  %15316 = vmatprep.subr.mxu1 %v17898_v36  ;;  %v17505_v43 = vand.u32 4294901760, %v1064_v23  ;;  %v1848_v63 = vadd.f32 %v17961_v0, %v1733_v15  ;;  %v17969_v15 = vld [vmem:[#allocation40_spill] sm:$0xff] }
 0x287   : > { %15337 = vmatprep.subr.mxu0 %v17898_v36  ;;  %15317 = vmatpush3.msra.mxu1 %v17378_v11 }
 0x288   : > { %15318 = vmatprep.mubr.msk.f32.mxu1 %vm15647_vm1, %v17898_v36  ;;  %15338 = vmatpush3.msra.mxu0 %v17452_v9  ;;  %v11297_v10 = vsub.f32 %v1064_v23, %v17505_v43 }
 0x289   : > { %15319 = vmatmul.mubr.f32.vlgmr.msra.gmra.mxu1 %v16537_v16  ;;  %15328 = vmatprep.subr.mxu1 %v17898_v36 }
 0x28a   : > { %15339 = vmatprep.mubr.msk.f32.mxu0 %vm15647_vm1, %v17898_v36  ;;  %15349 = vmatprep.subr.mxu0 %v17898_v36  ;;  %v11298_v31 = vand.u32 4294901760, %v11297_v10 }
 0x28b   : > { %15329 = vmatpush3.msra.mxu1 %v17374_v38  ;;  %15340 = vmatmul.mubr.f32.vlgmr.msra.gmra.mxu0 %v16572_v12  ;;  %v10814_v38 = vand.u32 4294901760, %v10813_v13 }
 0x28c   : > { %15350 = vmatpush3.msra.mxu0 %v10811_v60  ;;  %15330 = vmatprep.subr.mxu1 %v17898_v36  ;;  %v11299_v35 = vsub.f32 %v11297_v10, %v11298_v31  ;;  %v17562_v60 = vsub.f32 %v17962_v17, %v17551_v27 }
 0x28d   : > { %15351 = vmatprep.subr.mxu0 %v17898_v36  ;;  %15331 = vmatpush3.msra.mxu1 %v17378_v11  ;;  %v10821_v11 = vand.u32 4294901760, %v10820_v21 }
 0x28e   : > { %15332 = vmatprep.mubr.msk.f32.mxu1 %vm15647_vm1, %v17898_v36  ;;  %15352 = vmatpush3.msra.mxu0 %v10818_v48  ;;  %v11300_v32 = vand.u32 4294901760, %v11299_v35  ;;  %v17963_v48 = vld [vmem:[#allocation30_spill] sm:$0xff]  ;;  %v11750_v23 = vand.u32 4294901760, %v17562_v60 }
 0x28f   : > { %15333 = vmatmul.mubr.f32.vlgmr.msra.gmra.mxu1 %v16515_v62  ;;  %15342 = vmatprep.subr.mxu1 %v17898_v36 }
 0x290   : > { %15353 = vmatprep.mubr.msk.f32.mxu0 %vm15647_vm1, %v17898_v36  ;;  %15363 = vmatprep.subr.mxu0 %v17898_v36  ;;  %v11751_v5 = vsub.f32 %v17562_v60, %v11750_v23 }
 0x291   : > { %15343 = vmatpush3.msra.mxu1 %v10814_v38  ;;  %15354 = vmatmul.mubr.f32.vlgmr.msra.gmra.mxu0 %v16527_v28 }
 0x292   : > { %15364 = vmatpush3.msra.mxu0 %v10812_v34  ;;  %15344 = vmatprep.subr.mxu1 %v17898_v36  ;;  %v17964_v34 = vld [vmem:[#allocation28_spill] sm:$0xff] }
 0x293   : > { %15365 = vmatprep.subr.mxu0 %v17898_v36  ;;  %15345 = vmatpush3.msra.mxu1 %v10821_v11  ;;  %v2150_v3 = vadd.f32 %v17964_v34, %v17963_v48  ;;  %v17966_v11 = vld [vmem:[#allocation32_spill] sm:$0xff] }
 0x294   : > { %15346 = vmatprep.mubr.msk.f32.mxu1 %vm15647_vm1, %v17898_v36  ;;  %15366 = vmatpush3.msra.mxu0 %v10819_v24  ;;  %v17972_v34 = vld [vmem:[#allocation48_spill] sm:$0xff] }
 0x295   : > { %15347 = vmatmul.mubr.f32.vlgmr.msra.gmra.mxu1 %v16515_v62  ;;  %15356 = vmatprep.subr.mxu1 %v17898_v36  ;;  %v2274_v57 = vadd.f32 %v17965_v19, %v2150_v3 }
 0x296   : > { %15367 = vmatprep.mubr.msk.f32.mxu0 %vm15647_vm1, %v17898_v36  ;;  %15377 = vmatprep.subr.mxu0 %v17898_v36 }
 0x297   : > { %15357 = vmatpush3.msra.mxu1 %v17445_v46  ;;  %15368 = vmatmul.mubr.f32.vlgmr.msra.gmra.mxu0 %v16515_v62 }
 0x298   : > { %15378 = vmatpush3.msra.mxu0 %v17501_v44  ;;  %15358 = vmatprep.subr.mxu1 %v17898_v36 }
 0x299   : > { %15379 = vmatprep.subr.mxu0 %v17898_v36  ;;  %15359 = vmatpush3.msra.mxu1 %v17452_v9  ;;  %v6145_v53 = vpop.f32.mrf.mxu0 }
 0x29a   : > { %15360 = vmatprep.mubr.msk.f32.mxu1 %vm15647_vm1, %v17898_v36  ;;  %15380 = vmatpush3.msra.mxu0 %v17505_v43 }
 0x29b   : > { %15361 = vmatmul.mubr.f32.vlgmr.msra.gmra.mxu1 %v16537_v16  ;;  %15370 = vmatprep.subr.mxu1 %v17898_v36  ;;  %v14921_v55 = vpop.f32.mrf.mxu0 }
 0x29c   : > { %15381 = vmatprep.mubr.msk.f32.mxu0 %vm15647_vm1, %v17898_v36  ;;  %15391 = vmatprep.subr.mxu0 %v17898_v36 }
 0x29d   : > { %15371 = vmatpush3.msra.mxu1 %v17445_v46  ;;  %15382 = vmatmul.mubr.f32.vlgmr.msra.gmra.mxu0 %v16572_v12  ;;  %v6302_v1 = vpop.f32.mrf.mxu0 }
 0x29e   : > { %15392 = vmatpush3.msra.mxu0 %v11290_v7  ;;  %15372 = vmatprep.subr.mxu1 %v17898_v36  ;;  %v2404_v7 = vadd.f32 %v17966_v11, %v2274_v57  ;;  %v17974_v11 = vld [vmem:[#allocation53_spill] sm:$0xff] }
 0x29f   : > { %15393 = vmatprep.subr.mxu0 %v17898_v36  ;;  %15373 = vmatpush3.msra.mxu1 %v17452_v9  ;;  %v14935_v49 = vpop.f32.mrf.mxu0  ;;  %v17555_v9 = vand.u32 4294901760, %v1848_v63 }
 0x2a0   : > { %15374 = vmatprep.mubr.msk.f32.mxu1 %vm15647_vm1, %v17898_v36  ;;  %15394 = vmatpush3.msra.mxu0 %v11297_v10  ;;  %v2525_v10 = vadd.f32 %v17967_v8, %v2404_v7 }
 0x2a1   : > { %15375 = vmatmul.mubr.f32.vlgmr.msra.gmra.mxu1 %v16515_v62  ;;  %15384 = vmatprep.subr.mxu1 %v17898_v36  ;;  %v17572_v24 = vsub.f32 %v1848_v63, %v17555_v9 }
 0x2a2   : > { %15395 = vmatprep.mubr.msk.f32.mxu0 %vm15647_vm1, %v17898_v36  ;;  %15405 = vmatprep.subr.mxu0 %v17898_v36  ;;  %v6226_v6 = vpop.f32.mrf.mxu1  ;;  %v2640_v52 = vadd.f32 %v17968_v30, %v2525_v10  ;;  %v17975_v10 = vld [vmem:[#allocation50_spill] sm:$0xff] }
 0x2a3   : > { %15385 = vmatpush3.msra.mxu1 %v11293_v20  ;;  %15396 = vmatmul.mubr.f32.vlgmr.msra.gmra.mxu0 %v16527_v28  ;;  %v6227_v46 = vadd.f32 %v6226_v6, %v6145_v53  ;;  %v6454_v56 = vpop.f32.mrf.mxu0  ;;  %v11757_v45 = vand.u32 4294901760, %v17572_v24  ;;  %v15611_v20 = vpop.eup %15610 }
 0x2a4   : > { %15406 = vmatpush3.msra.mxu0 %v11291_v58  ;;  %15386 = vmatprep.subr.mxu1 %v17898_v36  ;;  %v14928_v47 = vpop.f32.mrf.mxu1  ;;  %v17620_v6 = vand.u32 4294901760, %v2640_v52 }
 0x2a5   : > { %15407 = vmatprep.subr.mxu0 %v17898_v36  ;;  %15387 = vmatpush3.msra.mxu1 %v11300_v32  ;;  %v6303_v40 = vadd.f32 %v6302_v1, %v6227_v46  ;;  %v14949_v14 = vpop.f32.mrf.mxu0  ;;  %v11758_v53 = vsub.f32 %v17572_v24, %v11757_v45  ;;  %v17616_v1 = vand.u32 4294901760, %v17969_v15  ;;  %v17971_v47 = vld [vmem:[#allocation42_spill] sm:$0xff] }
 0x2a6   : > { %15388 = vmatprep.mubr.msk.f32.mxu1 %vm15647_vm1, %v17898_v36  ;;  %15408 = vmatpush3.msra.mxu0 %v11298_v31  ;;  %v12215_v48 = vsub.f32 %v2640_v52, %v17620_v6 }
 0x2a7   : > { %15389 = vmatmul.mubr.f32.vlgmr.msra.gmra.mxu1 %v16515_v62  ;;  %15398 = vmatprep.subr.mxu1 %v17898_v36  ;;  %v6377_v33 = vpop.f32.mrf.mxu1  ;;  %v11759_v35 = vand.u32 4294901760, %v11758_v53  ;;  %v12208_v46 = vsub.f32 %v17969_v15, %v17616_v1 }
 0x2a8   : > { %15409 = vmatprep.mubr.msk.f32.mxu0 %vm15647_vm1, %v17898_v36  ;;  %15419 = vmatprep.subr.mxu0 %v17898_v36  ;;  %v6378_v50 = vadd.f32 %v6377_v33, %v6303_v40 }
 0x2a9   : > { %15399 = vmatpush3.msra.mxu1 %v17501_v44  ;;  %15410 = vmatmul.mubr.f32.vlgmr.msra.gmra.mxu0 %v16515_v62  ;;  %v14942_v13 = vpop.f32.mrf.mxu1  ;;  %v6626_v21 = vpop.f32.mrf.mxu0  ;;  %v12209_v19 = vand.u32 4294901760, %v12208_v46 }
 0x2aa   : > { %15420 = vmatpush3.msra.mxu0 %v17551_v27  ;;  %15400 = vmatprep.subr.mxu1 %v17898_v36  ;;  %v6455_v59 = vadd.f32 %v6454_v56, %v6378_v50  ;;  %v17970_v56 = vld [vmem:[#allocation44_spill] sm:$0xff]  ;;  %v12216_v13 = vand.u32 4294901760, %v12215_v48 }
 0x2ab   : > { %15421 = vmatprep.subr.mxu0 %v17898_v36  ;;  %15401 = vmatpush3.msra.mxu1 %v17505_v43  ;;  %v14963_v38 = vpop.f32.mrf.mxu0  ;;  %v2942_v40 = vadd.f32 %v17971_v47, %v17970_v56  ;;  %v17979_v47 = vld [vmem:[#allocation60_spill] sm:$0xff] }
 0x2ac   : > { %15402 = vmatprep.mubr.msk.f32.mxu1 %vm15647_vm1, %v17898_v36  ;;  %15422 = vmatpush3.msra.mxu0 %v17555_v9 }
 0x2ad   : > { %15403 = vmatmul.mubr.f32.vlgmr.msra.gmra.mxu1 %v16537_v16  ;;  %15412 = vmatprep.subr.mxu1 %v17898_v36  ;;  %v6527_v41 = vpop.f32.mrf.mxu1  ;;  %v3066_v3 = vadd.f32 %v17972_v34, %v2942_v40 }
 0x2ae   : > { %15423 = vmatprep.mubr.msk.f32.mxu0 %vm15647_vm1, %v17898_v36  ;;  %15433 = vmatprep.subr.mxu0 %v17898_v36  ;;  %v6528_v37 = vadd.f32 %v6527_v41, %v6455_v59 }
 0x2af   : > { %15413 = vmatpush3.msra.mxu1 %v17501_v44  ;;  %15424 = vmatmul.mubr.f32.vlgmr.msra.gmra.mxu0 %v16572_v12  ;;  %v14956_v29 = vpop.f32.mrf.mxu1  ;;  %v6783_v51 = vpop.f32.mrf.mxu0 }
 0x2b0   : > { %15434 = vmatpush3.msra.mxu0 %v17562_v60  ;;  %15414 = vmatprep.subr.mxu1 %v17898_v36  ;;  %v6536_v58 = vsub.f32 %v6528_v37, %v17307_v25  ;;  %v11752_v25 = vand.u32 4294901760, %v11751_v5  ;;  %v12217_v5 = vsub.f32 %v12215_v48, %v12216_v13 }
 0x2b1   : > { %15435 = vmatprep.subr.mxu0 %v17898_v36  ;;  %15415 = vmatpush3.msra.mxu1 %v17505_v43  ;;  %v14977_v31 = vpop.f32.mrf.mxu0  ;;  %v6540_v43 = vadd.f32 %v17439_v26, %v17153_v2 }
 0x2b2   : > { %15416 = vmatprep.mubr.msk.f32.mxu1 %vm15647_vm1, %v17898_v36  ;;  %15436 = vmatpush3.msra.mxu0 %v17572_v24  ;;  %v6541_v44 = vmul.f32 2.0, %v6536_v58  ;;  %v17976_v58 = vld [vmem:[#allocation54_spill] sm:$0xff]  ;;  %v12218_v31 = vand.u32 4294901760, %v12217_v5 }
 0x2b3   : > { %15417 = vmatmul.mubr.f32.vlgmr.msra.gmra.mxu1 %v16515_v62  ;;  %15426 = vmatprep.subr.mxu1 %v17898_v36  ;;  %v6707_v55 = vpop.f32.mrf.mxu1  ;;  %v17670_v53 = vand.u32 4294901760, %v17976_v58 }
 0x2b4   : > { %15437 = vmatprep.mubr.msk.f32.mxu0 %vm15647_vm1, %v17898_v36  ;;  %15447 = vmatprep.subr.mxu0 %v17898_v36  ;;  %v6543_v54 = vadd.f32 %v17442_v39, %v6541_v44  ;;  %v6708_v42 = vadd.f32 %v6707_v55, %v6626_v21  ;;  %v17973_v21 = vld [vmem:[#allocation46_spill] sm:$0xff] }
 0x2b5   : > { %15427 = vmatpush3.msra.mxu1 %v11752_v25  ;;  %15438 = vmatmul.mubr.f32.vlgmr.msra.gmra.mxu0 %v16527_v28  ;;  %v14970_v49 = vpop.f32.mrf.mxu1  ;;  %v6935_v0 = vpop.f32.mrf.mxu0  ;;  %v3196_v59 = vadd.f32 %v17973_v21, %v3066_v3 }
 0x2b6   : > { %15448 = vmatpush3.msra.mxu0 %v11750_v23  ;;  %15428 = vmatprep.subr.mxu1 %v17898_v36  ;;  %v6544_v2 = vmul.f32 %v6543_v54, %v6540_v43  ;;  %v6784_v63 = vadd.f32 %v6783_v51, %v6708_v42  ;;  %v17681_v43 = vsub.f32 %v17976_v58, %v17670_v53  ;;  %v17977_v54 = vld [vmem:[#allocation58_spill] sm:$0xff]  ;;  %v17978_v42 = vld [vmem:[#allocation56_spill] sm:$0xff] }
 0x2b7   : > { %15449 = vmatprep.subr.mxu0 %v17898_v36  ;;  %15429 = vmatpush3.msra.mxu1 %v11759_v35  ;;  %v14991_v17 = vpop.f32.mrf.mxu0  ;;  %v3317_v7 = vadd.f32 %v17974_v11, %v3196_v59  ;;  %v3734_v15 = vadd.f32 %v17978_v42, %v17977_v54 }
 0x2b8   : > { %15430 = vmatprep.mubr.msk.f32.mxu1 %vm15647_vm1, %v17898_v36  ;;  %15450 = vmatpush3.msra.mxu0 %v11757_v45  ;;  %v17625_v32 = vmul.f32 %v15611_v20, %v6544_v2  ;;  %v12210_v45 = vsub.f32 %v12208_v46, %v12209_v19 }
 0x2b9   : > { %15431 = vmatmul.mubr.f32.vlgmr.msra.gmra.mxu1 %v16515_v62  ;;  %15440 = vmatprep.subr.mxu1 %v17898_v36  ;;  %v6858_v14 = vpop.f32.mrf.mxu1  ;;  %v3432_v29 = vadd.f32 %v17975_v10, %v3317_v7  ;;  %v3858_v2 = vadd.f32 %v16910_v22, %v3734_v15 }
 0x2ba   : > { %15451 = vmatprep.mubr.msk.f32.mxu0 %vm15647_vm1, %v17898_v36  ;;  %15461 = vmatprep.subr.mxu0 %v17898_v36  ;;  %v6859_v60 = vadd.f32 %v6858_v14, %v6784_v63 }
 0x2bb   : > { %15441 = vmatpush3.msra.mxu1 %v17551_v27  ;;  %15452 = vmatmul.mubr.f32.vlgmr.msra.gmra.mxu0 %v16515_v62  ;;  %v14984_v33 = vpop.f32.mrf.mxu1  ;;  %v7085_v50 = vpop.f32.mrf.mxu0  ;;  %v17674_v25 = vand.u32 4294901760, %v3432_v29  ;;  %v3988_v40 = vadd.f32 %v17979_v47, %v3858_v2 }
 0x2bc   : > { %15462 = vmatpush3.msra.mxu0 %v17616_v1  ;;  %15442 = vmatprep.subr.mxu1 %v17898_v36  ;;  %v6936_v24 = vadd.f32 %v6935_v0, %v6859_v60 }
 0x2bd   : > { %15463 = vmatprep.subr.mxu0 %v17898_v36  ;;  %15443 = vmatpush3.msra.mxu1 %v17555_v9  ;;  %v15005_v57 = vpop.f32.mrf.mxu0  ;;  %v17691_v0 = vsub.f32 %v3432_v29, %v17674_v25  ;;  %v4109_v3 = vadd.f32 %v17035_v61, %v3988_v40 }
 0x2be   : > { %15444 = vmatprep.mubr.msk.f32.mxu1 %vm15647_vm1, %v17898_v36  ;;  %15464 = vmatpush3.msra.mxu0 %v17620_v6 }
 0x2bf   : > { %15445 = vmatmul.mubr.f32.vlgmr.msra.gmra.mxu1 %v16537_v16  ;;  %15454 = vmatprep.subr.mxu1 %v17898_v36  ;;  %v7008_v23 = vpop.f32.mrf.mxu1  ;;  %v12675_v22 = vand.u32 4294901760, %v17691_v0  ;;  %v4224_v59 = vadd.f32 %v17042_v18, %v4109_v3 }
 0x2c0   : > { %15465 = vmatprep.mubr.msk.f32.mxu0 %vm15647_vm1, %v17898_v36  ;;  %15475 = vmatprep.subr.mxu0 %v17898_v36  ;;  %v17653_v38 = vadd.f32 %v7008_v23, %v6936_v24 }
 0x2c1   : > { %15455 = vmatpush3.msra.mxu1 %v17551_v27  ;;  %15466 = vmatmul.mubr.f32.vlgmr.msra.gmra.mxu0 %v16572_v12  ;;  %v14998_v41 = vpop.f32.mrf.mxu1  ;;  %v7242_v37 = vpop.f32.mrf.mxu0  ;;  %v12211_v27 = vand.u32 4294901760, %v12210_v45  ;;  %v17746_v45 = vand.u32 4294901760, %v16947_v4 }
 0x2c2   : > { %15476 = vmatpush3.msra.mxu0 %v12208_v46  ;;  %15456 = vmatprep.subr.mxu1 %v17898_v36  ;;  %v12668_v46 = vand.u32 4294901760, %v17681_v43  ;;  %v8854_v60 = vmul.f32 2.0, %v17653_v38  ;;  %v17718_v24 = vmul.f32 %v17653_v38, %v17653_v38 }
 0x2c3   : > { %15477 = vmatprep.subr.mxu0 %v17898_v36  ;;  %15457 = vmatpush3.msra.mxu1 %v17555_v9  ;;  %v15019_v8 = vpop.f32.mrf.mxu0 }
 0x2c4   : > { %15458 = vmatprep.mubr.msk.f32.mxu1 %vm15647_vm1, %v17898_v36  ;;  %15478 = vmatpush3.msra.mxu0 %v12215_v48  ;;  %v12669_v34 = vsub.f32 %v17681_v43, %v12668_v46  ;;  %v13126_v8 = vsub.f32 %v16947_v4, %v17746_v45 }
 0x2c5   : > { %15459 = vmatmul.mubr.f32.vlgmr.msra.gmra.mxu1 %v16515_v62  ;;  %15468 = vmatprep.subr.mxu1 %v17898_v36  ;;  %v7166_v51 = vpop.f32.mrf.mxu1 }
 0x2c6   : > { %15479 = vmatprep.mubr.msk.f32.mxu0 %vm15647_vm1, %v17898_v36  ;;  %15489 = vmatprep.subr.mxu0 %v17898_v36  ;;  %v7167_v9 = vadd.f32 %v7166_v51, %v7085_v50  ;;  %v12670_v23 = vand.u32 4294901760, %v12669_v34  ;;  %v13127_v58 = vand.u32 4294901760, %v13126_v8 }
 0x2c7   : > { %15469 = vmatpush3.msra.mxu1 %v12211_v27  ;;  %15480 = vmatmul.mubr.f32.vlgmr.msra.gmra.mxu0 %v16527_v28  ;;  %v15012_v44 = vpop.f32.mrf.mxu1  ;;  %v7394_v30 = vpop.f32.mrf.mxu0 }
 0x2c8   : > { %15490 = vmatpush3.msra.mxu0 %v12209_v19  ;;  %15470 = vmatprep.subr.mxu1 %v17898_v36  ;;  %v7243_v52 = vadd.f32 %v7242_v37, %v7167_v9  ;;  %v17750_v37 = vand.u32 4294901760, %v4224_v59 }
 0x2c9   : > { %15491 = vmatprep.subr.mxu0 %v17898_v36  ;;  %15471 = vmatpush3.msra.mxu1 %v12218_v31  ;;  %v15033_v55 = vpop.f32.mrf.mxu0 }
 0x2ca   : > { %15472 = vmatprep.mubr.msk.f32.mxu1 %vm15647_vm1, %v17898_v36  ;;  %15492 = vmatpush3.msra.mxu0 %v12216_v13  ;;  %v13133_v27 = vsub.f32 %v4224_v59, %v17750_v37  ;;  %v13128_v55 = vsub.f32 %v13126_v8, %v13127_v58 }
 0x2cb   : > { %15473 = vmatmul.mubr.f32.vlgmr.msra.gmra.mxu1 %v16515_v62  ;;  %15482 = vmatprep.subr.mxu1 %v17898_v36  ;;  %v7317_v35 = vpop.f32.mrf.mxu1 }
 0x2cc   : > { %15493 = vmatprep.mubr.msk.f32.mxu0 %vm15647_vm1, %v17898_v36  ;;  %15503 = vmatprep.subr.mxu0 %v17898_v36  ;;  %v7318_v49 = vadd.f32 %v7317_v35, %v7243_v52  ;;  %v13134_v44 = vand.u32 4294901760, %v13133_v27 }
 0x2cd   : > { %15483 = vmatpush3.msra.mxu1 %v17616_v1  ;;  %15494 = vmatmul.mubr.f32.vlgmr.msra.gmra.mxu0 %v16515_v62  ;;  %v15026_v63 = vpop.f32.mrf.mxu1  ;;  %v7544_v20 = vpop.f32.mrf.mxu0 }
 0x2ce   : > { %15504 = vmatpush3.msra.mxu0 %v17670_v53  ;;  %15484 = vmatprep.subr.mxu1 %v17898_v36  ;;  %v7395_v17 = vadd.f32 %v7394_v30, %v7318_v49  ;;  %v13135_v15 = vsub.f32 %v13133_v27, %v13134_v44 }
 0x2cf   : > { %15505 = vmatprep.subr.mxu0 %v17898_v36  ;;  %15485 = vmatpush3.msra.mxu1 %v17620_v6  ;;  %v15047_v56 = vpop.f32.mrf.mxu0 }
 0x2d0   : > { %15486 = vmatprep.mubr.msk.f32.mxu1 %vm15647_vm1, %v17898_v36  ;;  %15506 = vmatpush3.msra.mxu0 %v17674_v25 }
 0x2d1   : > { %15487 = vmatmul.mubr.f32.vlgmr.msra.gmra.mxu1 %v16537_v16  ;;  %15496 = vmatprep.subr.mxu1 %v17898_v36  ;;  %v7467_v14 = vpop.f32.mrf.mxu1 }
 0x2d2   : > { %15507 = vmatprep.mubr.msk.f32.mxu0 %vm15647_vm1, %v17898_v36  ;;  %15517 = vmatprep.subr.mxu0 %v17898_v36  ;;  %v7468_v48 = vadd.f32 %v7467_v14, %v7395_v17 }
 0x2d3   : > { %15497 = vmatpush3.msra.mxu1 %v17616_v1  ;;  %15508 = vmatmul.mubr.f32.vlgmr.msra.gmra.mxu0 %v16572_v12  ;;  %v15040_v33 = vpop.f32.mrf.mxu1  ;;  %v7701_v50 = vpop.f32.mrf.mxu0  ;;  %v12676_v1 = vsub.f32 %v17691_v0, %v12675_v22 }
 0x2d4   : > { %15518 = vmatpush3.msra.mxu0 %v17681_v43  ;;  %15498 = vmatprep.subr.mxu1 %v17898_v36  ;;  %v17722_v19 = vmul.f32 %v8854_v60, %v7468_v48  ;;  %v17724_v57 = vmul.f32 %v7468_v48, %v7468_v48  ;;  %v17727_v61 = vmul.f32 %v7468_v48, %v17653_v38 }
 0x2d5   : > { %15519 = vmatprep.subr.mxu0 %v17898_v36  ;;  %15499 = vmatpush3.msra.mxu1 %v17620_v6  ;;  %v15061_v13 = vpop.f32.mrf.mxu0  ;;  %v12677_v11 = vand.u32 4294901760, %v12676_v1 }
 0x2d6   : > { %15500 = vmatprep.mubr.msk.f32.mxu1 %vm15647_vm1, %v17898_v36  ;;  %15520 = vmatpush3.msra.mxu0 %v17691_v0  ;;  %v17737_v21 = vadd.f32 %v17724_v57, %v17718_v24 }
 0x2d7   : > { %15501 = vmatmul.mubr.f32.vlgmr.msra.gmra.mxu1 %v16515_v62  ;;  %15510 = vmatprep.subr.mxu1 %v17898_v36  ;;  %v7625_v6 = vpop.f32.mrf.mxu1 }
 0x2d8   : > { %15521 = vmatprep.mubr.msk.f32.mxu0 %vm15647_vm1, %v17898_v36  ;;  %15531 = vmatprep.subr.mxu0 %v17898_v36  ;;  %v7626_v38 = vadd.f32 %v7625_v6, %v7544_v20 }
 0x2d9   : > { %15511 = vmatpush3.msra.mxu1 %v12670_v23  ;;  %15522 = vmatmul.mubr.f32.vlgmr.msra.gmra.mxu0 %v16527_v28  ;;  %v15054_v18 = vpop.f32.mrf.mxu1  ;;  %v7853_v7 = vpop.f32.mrf.mxu0 }
 0x2da   : > { %15532 = vmatpush3.msra.mxu0 %v12668_v46  ;;  %15512 = vmatprep.subr.mxu1 %v17898_v36  ;;  %v7702_v41 = vadd.f32 %v7701_v50, %v7626_v38  ;;  %v8861_v50 = vadd.f32 %v17737_v21, %v17439_v26 }
 0x2db   : > { %15533 = vmatprep.subr.mxu0 %v17898_v36  ;;  %15513 = vmatpush3.msra.mxu1 %v12677_v11  ;;  %v15075_v5 = vpop.f32.mrf.mxu0 }
 0x2dc   : > { %15514 = vmatprep.mubr.msk.f32.mxu1 %vm15647_vm1, %v17898_v36  ;;  %15534 = vmatpush3.msra.mxu0 %v12675_v22 }
 0x2dd   : > { %15515 = vmatmul.mubr.f32.vlgmr.msra.gmra.mxu1 %v16515_v62  ;;  %15524 = vmatprep.subr.mxu1 %v17898_v36  ;;  %v7776_v10 = vpop.f32.mrf.mxu1 }
 0x2de   : > { %15535 = vmatprep.mubr.msk.f32.mxu0 %vm15647_vm1, %v17898_v36  ;;  %15545 = vmatprep.subr.mxu0 %v17898_v36  ;;  %v7777_v29 = vadd.f32 %v7776_v10, %v7702_v41 }
 0x2df   : > { %15525 = vmatpush3.msra.mxu1 %v17670_v53  ;;  %15536 = vmatmul.mubr.f32.vlgmr.msra.gmra.mxu0 %v16515_v62  ;;  %v15068_v51 = vpop.f32.mrf.mxu1  ;;  %v8003_v9 = vpop.f32.mrf.mxu0 }
 0x2e0   : > { %15546 = vmatpush3.msra.mxu0 %v17746_v45  ;;  %15526 = vmatprep.subr.mxu1 %v17898_v36  ;;  %v7854_v4 = vadd.f32 %v7853_v7, %v7777_v29 }
 0x2e1   : > { %15547 = vmatprep.subr.mxu0 %v17898_v36  ;;  %15527 = vmatpush3.msra.mxu1 %v17674_v25  ;;  %v15089_v31 = vpop.f32.mrf.mxu0 }
 0x2e2   : > { %15528 = vmatprep.mubr.msk.f32.mxu1 %vm15647_vm1, %v17898_v36  ;;  %15548 = vmatpush3.msra.mxu0 %v17750_v37 }
 0x2e3   : > { %15529 = vmatmul.mubr.f32.vlgmr.msra.gmra.mxu1 %v16537_v16  ;;  %15538 = vmatprep.subr.mxu1 %v17898_v36  ;;  %v7926_v30 = vpop.f32.mrf.mxu1 }
 0x2e4   : > { %15549 = vmatprep.mubr.msk.f32.mxu0 %vm15647_vm1, %v17898_v36  ;;  %15559 = vmatprep.subr.mxu0 %v17898_v36  ;;  %v17777_v52 = vadd.f32 %v7926_v30, %v7854_v4 }
 0x2e5   : > { %15539 = vmatpush3.msra.mxu1 %v17670_v53  ;;  %15550 = vmatmul.mubr.f32.vlgmr.msra.gmra.mxu0 %v16572_v12  ;;  %v15082_v43 = vpop.f32.mrf.mxu1  ;;  %v8160_v54 = vpop.f32.mrf.mxu0  ;;  %v13129_v12 = vand.u32 4294901760, %v13128_v55 }
 0x2e6   : > { %15560 = vmatpush3.msra.mxu0 %v13126_v8  ;;  %15540 = vmatprep.subr.mxu1 %v17898_v36  ;;  %v8849_v42 = vsub.f32 %v17777_v52, %v17718_v24 }
 0x2e7   : > { %15561 = vmatprep.subr.mxu0 %v17898_v36  ;;  %15541 = vmatpush3.msra.mxu1 %v17674_v25  ;;  %v15103_v35 = vpop.f32.mrf.mxu0  ;;  %v13136_v25 = vand.u32 4294901760, %v13135_v15 }
 0x2e8   : > { %15542 = vmatprep.mubr.msk.f32.mxu1 %vm15647_vm1, %v17898_v36  ;;  %15562 = vmatpush3.msra.mxu0 %v13133_v27  ;;  %v8856_v27 = vadd.f32 %v17722_v19, %v17439_v26 }
 0x2e9   : > { %15543 = vmatmul.mubr.f32.vlgmr.msra.gmra.mxu1 %v16515_v62  ;;  %15552 = vmatprep.subr.mxu1 %v17898_v36  ;;  %v8084_v53 = vpop.f32.mrf.mxu1 }
 0x2ea   : > { %15563 = vmatprep.mubr.msk.f32.mxu0 %vm15647_vm1, %v17898_v36  ;;  %15573 = vmatprep.subr.mxu0 %v17898_v36  ;;  %v8085_v49 = vadd.f32 %v8084_v53, %v8003_v9 }
 0x2eb   : > { %15553 = vmatpush3.msra.mxu1 %v13129_v12  ;;  %15564 = vmatmul.mubr.f32.vlgmr.msra.gmra.mxu0 %v16527_v28  ;;  %v15096_v0 = vpop.f32.mrf.mxu1  ;;  %v8312_v2 = vpop.f32.mrf.mxu0 }
 0x2ec   : > { %15574 = vmatpush3.msra.mxu0 %v13127_v58  ;;  %15554 = vmatprep.subr.mxu1 %v17898_v36  ;;  %v8161_v63 = vadd.f32 %v8160_v54, %v8085_v49 }
 0x2ed   : > { %15575 = vmatprep.subr.mxu0 %v17898_v36  ;;  %15555 = vmatpush3.msra.mxu1 %v13136_v25  ;;  %v15117_v20 = vpop.f32.mrf.mxu0 }
 0x2ee   : > { %15556 = vmatprep.mubr.msk.f32.mxu1 %vm15647_vm1, %v17898_v36  ;;  %15576 = vmatpush3.msra.mxu0 %v13134_v44 }
 0x2ef   : > { %15557 = vmatmul.mubr.f32.vlgmr.msra.gmra.mxu1 %v16515_v62  ;;  %15566 = vmatprep.subr.mxu1 %v17898_v36  ;;  %v8235_v28 = vpop.f32.mrf.mxu1 }
 0x2f0   : > { %15567 = vmatpush3.msra.mxu1 %v17746_v45  ;;  %15570 = vmatprep.mubr.msk.f32.mxu1 %vm15647_vm1, %v17898_v36  ;;  %v8236_v17 = vadd.f32 %v8235_v28, %v8161_v63 }
 0x2f1   : > { %15568 = vmatprep.subr.mxu1 %v17898_v36  ;;  %15577 = vmatprep.mubr.msk.f32.mxu0 %vm15647_vm1, %v17898_v36  ;;  %v15110_v46 = vpop.f32.mrf.mxu1  ;;  %v8462_v56 = vpop.f32.mrf.mxu0 }
 0x2f2   : > { %15569 = vmatpush3.msra.mxu1 %v17750_v37  ;;  %15578 = vmatmul.mubr.f32.vlgmr.msra.gmra.mxu0 %v16515_v62  ;;  %v8313_v22 = vadd.f32 %v8312_v2, %v8236_v17 }
 0x2f3   : > { %15571 = vmatmul.mubr.f32.vlgmr.msra.gmra.mxu1 %v16537_v16  ;;  %15580 = vmatprep.subr.mxu1 %v17898_v36  ;;  %v15131_v47 = vpop.f32.mrf.mxu0 }
 0x2f4   : > { %15581 = vmatpush3.msra.mxu1 %v17746_v45  ;;  %15584 = vmatprep.mubr.msk.f32.mxu1 %vm15647_vm1, %v17898_v36 }
 0x2f5   : > { %15582 = vmatprep.subr.mxu1 %v17898_v36  ;;  %v8385_v40 = vpop.f32.mrf.mxu1 }
 0x2f6   : > { %15583 = vmatpush3.msra.mxu1 %v17750_v37  ;;  %v8386_v14 = vadd.f32 %v8385_v40, %v8313_v22 }
 0x2f7   : > { %15585 = vmatmul.mubr.f32.vlgmr.msra.gmra.mxu1 %v16515_v62  ;;  %v15124_v60 = vpop.f32.mrf.mxu1  ;;  %v8619_v48 = vpop.f32.mrf.mxu0 }
 0x2f8   : > { %v8851_v16 = vsub.f32 %v8386_v14, %v17724_v57 }
 0x2f9   : > { %v15145_v34 = vpop.f32.mrf.mxu0 }
 0x2fa   : > { %v8862_v3 = vadd.f32 %v8851_v16, %v8849_v42 }
 0x2fb   : > { %v8543_v33 = vpop.f32.mrf.mxu1 }
 0x2fc   : > { %v8863_v24 = vadd.f32 %v8862_v3, %v17442_v39  ;;  %v8544_v1 = vadd.f32 %v8543_v33, %v8462_v56 }
 0x2fd   : > { %v15138_v36 = vpop.f32.mrf.mxu1  ;;  %v8771_v13 = vpop.f32.mrf.mxu0 }
 0x2fe   : > { %v8864_v59 = vmul.f32 %v8863_v24, %v8861_v50  ;;  %v8620_v23 = vadd.f32 %v8619_v48, %v8544_v1 }
 0x2ff   : > { %v15159_v6 = vpop.f32.mrf.mxu0 }
 0x300   : > { %15612 = vrcp.f32 %v8864_v59 }
 0x301   : > { %v8694_v38 = vpop.f32.mrf.mxu1 }
 0x302   : > { %v8695_v62 = vadd.f32 %v8694_v38, %v8620_v23 }
 0x303   : > { %v15152_v45 = vpop.f32.mrf.mxu1  ;;  %v8941_v11 = vpop.f32.mrf.mxu0 }
 0x304   : > { %v8772_v57 = vadd.f32 %v8771_v13, %v8695_v62 }
 0x305   : > { %v15173_v18 = vpop.f32.mrf.mxu0 }
 0x307   : > { %v8844_v7 = vpop.f32.mrf.mxu1 }
 0x308   : > { %v8845_v41 = vadd.f32 %v8844_v7, %v8772_v57 }
 0x309   : > { %v15166_v37 = vpop.f32.mrf.mxu1  ;;  %v9098_v5 = vpop.f32.mrf.mxu0 }
 0x30a   : > { %v8853_v21 = vsub.f32 %v8845_v41, %v17727_v61 }
 0x30b   : > { %v15187_v8 = vpop.f32.mrf.mxu0 }
 0x30c   : > { %v8857_v10 = vmul.f32 2.0, %v8853_v21 }
 0x30d   : > { %v9022_v29 = vpop.f32.mrf.mxu1  ;;  %v15613_v4 = vpop.eup %15612 }
 0x30e   : > { %v8858_v51 = vadd.f32 %v8857_v10, %v17442_v39  ;;  %v9023_v9 = vadd.f32 %v9022_v29, %v8941_v11 }
 0x30f   : > { %v15180_v58 = vpop.f32.mrf.mxu1  ;;  %v9250_v31 = vpop.f32.mrf.mxu0 }
 0x310   : > { %v8859_v44 = vmul.f32 %v8858_v51, %v8856_v27  ;;  %v9099_v30 = vadd.f32 %v9098_v5, %v9023_v9 }
 0x311   : > { %v15201_v52 = vpop.f32.mrf.mxu0 }
 0x312   : > { %v8866_v55 = vmul.f32 %v15613_v4, %v8859_v44 }
 0x313   : > { %v9173_v43 = vpop.f32.mrf.mxu1 }
 0x314   : > { %v9174_v54 = vadd.f32 %v9173_v43, %v9099_v30  ;;  %v17825_v61 = vadd.f32 %v8866_v55, %v17625_v32 }
 0x315   : > { %v15194_v42 = vpop.f32.mrf.mxu1  ;;  %v9400_v15 = vpop.f32.mrf.mxu0 }
 0x316   : > { %v9251_v35 = vadd.f32 %v9250_v31, %v9174_v54 }
 0x317   : > { %v15215_v12 = vpop.f32.mrf.mxu0 }
 0x319   : > { %v9323_v19 = vpop.f32.mrf.mxu1 }
 0x31a   : > { %v9324_v53 = vadd.f32 %v9323_v19, %v9251_v35 }
 0x31b   : > { %v15208_v49 = vpop.f32.mrf.mxu1  ;;  %v9557_v25 = vpop.f32.mrf.mxu0 }
 0x31c   : > { %v11169_v48 = vmul.f32 2.0, %v9324_v53  ;;  %v11163_v50 = vmul.f32 %v9324_v53, %v9324_v53 }
 0x31d   : > { %v15229_v0 = vpop.f32.mrf.mxu0 }
 0x31f   : > { %v9481_v2 = vpop.f32.mrf.mxu1 }
 0x320   : > { %v9482_v63 = vadd.f32 %v9481_v2, %v9400_v15 }
 0x321   : > { %v15222_v20 = vpop.f32.mrf.mxu1  ;;  %v9709_v28 = vpop.f32.mrf.mxu0 }
 0x322   : > { %v9558_v17 = vadd.f32 %v9557_v25, %v9482_v63 }
 0x323   : > { %v15243_v46 = vpop.f32.mrf.mxu0 }
 0x325   : > { %v9632_v56 = vpop.f32.mrf.mxu1 }
 0x326   : > { %v9633_v22 = vadd.f32 %v9632_v56, %v9558_v17 }
 0x327   : > { %v15236_v47 = vpop.f32.mrf.mxu1  ;;  %v9859_v32 = vpop.f32.mrf.mxu0 }
 0x328   : > { %v9710_v40 = vadd.f32 %v9709_v28, %v9633_v22 }
 0x329   : > { %v15257_v14 = vpop.f32.mrf.mxu0 }
 0x32b   : > { %v9782_v60 = vpop.f32.mrf.mxu1 }
 0x32c   : > { %v9783_v16 = vadd.f32 %v9782_v60, %v9710_v40 }
 0x32d   : > { %v15250_v34 = vpop.f32.mrf.mxu1  ;;  %v10016_v3 = vpop.f32.mrf.mxu0 }
 0x32e   : > { %v17827_v33 = vmul.f32 %v11169_v48, %v9783_v16  ;;  %v11165_v24 = vmul.f32 %v9783_v16, %v9783_v16  ;;  %v11167_v1 = vmul.f32 %v9783_v16, %v9324_v53 }
 0x32f   : > { %v15271_v36 = vpop.f32.mrf.mxu0 }
 0x330   : > { %v11175_v13 = vadd.f32 %v11165_v24, %v11163_v50 }
 0x331   : > { %v9940_v59 = vpop.f32.mrf.mxu1 }
 0x332   : > { %v9941_v23 = vadd.f32 %v9940_v59, %v9859_v32  ;;  %v11176_v2 = vadd.f32 %v11175_v13, %v17439_v26 }
 0x333   : > { %v15264_v6 = vpop.f32.mrf.mxu1  ;;  %v10168_v38 = vpop.f32.mrf.mxu0 }
 0x334   : > { %v10017_v62 = vadd.f32 %v10016_v3, %v9941_v23  ;;  %v11171_v23 = vadd.f32 %v17827_v33, %v17439_v26 }
 0x335   : > { %v15285_v45 = vpop.f32.mrf.mxu0 }
 0x337   : > { %v10091_v11 = vpop.f32.mrf.mxu1 }
 0x338   : > { %v10092_v57 = vadd.f32 %v10091_v11, %v10017_v62 }
 0x339   : > { %v15278_v18 = vpop.f32.mrf.mxu1  ;;  %v10318_v7 = vpop.f32.mrf.mxu0 }
 0x33a   : > { %v10169_v41 = vadd.f32 %v10168_v38, %v10092_v57 }
 0x33b   : > { %v15299_v37 = vpop.f32.mrf.mxu0 }
 0x33d   : > { %v10241_v5 = vpop.f32.mrf.mxu1 }
 0x33e   : > { %v10242_v21 = vadd.f32 %v10241_v5, %v10169_v41 }
 0x33f   : > { %v15292_v8 = vpop.f32.mrf.mxu1  ;;  %v10475_v10 = vpop.f32.mrf.mxu0 }
 0x340   : > { %v11164_v29 = vsub.f32 %v10242_v21, %v11163_v50 }
 0x341   : > { %v15313_v27 = vpop.f32.mrf.mxu0 }
 0x343   : > { %v10399_v51 = vpop.f32.mrf.mxu1 }
 0x344   : > { %v10400_v9 = vadd.f32 %v10399_v51, %v10318_v7 }
 0x345   : > { %v15306_v4 = vpop.f32.mrf.mxu1  ;;  %v10627_v58 = vpop.f32.mrf.mxu0 }
 0x346   : > { %v10476_v31 = vadd.f32 %v10475_v10, %v10400_v9 }
 0x347   : > { %v15327_v44 = vpop.f32.mrf.mxu0 }
 0x349   : > { %v10550_v30 = vpop.f32.mrf.mxu1 }
 0x34a   : > { %v10551_v52 = vadd.f32 %v10550_v30, %v10476_v31 }
 0x34b   : > { %v15320_v55 = vpop.f32.mrf.mxu1  ;;  %v10777_v43 = vpop.f32.mrf.mxu0 }
 0x34c   : > { %v10628_v54 = vadd.f32 %v10627_v58, %v10551_v52 }
 0x34d   : > { %v15341_v42 = vpop.f32.mrf.mxu0 }
 0x34f   : > { %v10700_v15 = vpop.f32.mrf.mxu1 }
 0x350   : > { %v10701_v35 = vadd.f32 %v10700_v15, %v10628_v54 }
 0x351   : > { %v15334_v12 = vpop.f32.mrf.mxu1  ;;  %v10934_v19 = vpop.f32.mrf.mxu0 }
 0x352   : > { %v11166_v53 = vsub.f32 %v10701_v35, %v11165_v24 }
 0x353   : > { %v15355_v49 = vpop.f32.mrf.mxu0 }
 0x354   : > { %v11177_v25 = vadd.f32 %v11166_v53, %v11164_v29 }
 0x355   : > { %v10858_v0 = vpop.f32.mrf.mxu1 }
 0x356   : > { %v11178_v63 = vadd.f32 %v11177_v25, %v17442_v39  ;;  %v10859_v20 = vadd.f32 %v10858_v0, %v10777_v43 }
 0x357   : > { %v15348_v28 = vpop.f32.mrf.mxu1  ;;  %v11086_v17 = vpop.f32.mrf.mxu0 }
 0x358   : > { %v11179_v46 = vmul.f32 %v11178_v63, %v11176_v2  ;;  %v10935_v56 = vadd.f32 %v10934_v19, %v10859_v20 }
 0x359   : > { %v15369_v22 = vpop.f32.mrf.mxu0 }
 0x35a   : > { %15614 = vrcp.f32 %v11179_v46 }
 0x35b   : > { %v11009_v47 = vpop.f32.mrf.mxu1 }
 0x35c   : > { %v11010_v32 = vadd.f32 %v11009_v47, %v10935_v56 }
 0x35d   : > { %v15362_v40 = vpop.f32.mrf.mxu1  ;;  %v11256_v14 = vpop.f32.mrf.mxu0 }
 0x35e   : > { %v11087_v60 = vadd.f32 %v11086_v17, %v11010_v32 }
 0x35f   : > { %v15383_v48 = vpop.f32.mrf.mxu0 }
 0x361   : > { %v11159_v16 = vpop.f32.mrf.mxu1 }
 0x362   : > { %v11160_v34 = vadd.f32 %v11159_v16, %v11087_v60 }
 0x363   : > { %v15376_v3 = vpop.f32.mrf.mxu1  ;;  %v11413_v50 = vpop.f32.mrf.mxu0 }
 0x364   : > { %v11168_v24 = vsub.f32 %v11160_v34, %v11167_v1 }
 0x365   : > { %v15397_v36 = vpop.f32.mrf.mxu0 }
 0x366   : > { %v11172_v13 = vmul.f32 2.0, %v11168_v24 }
 0x367   : > { %v11337_v59 = vpop.f32.mrf.mxu1  ;;  %v15615_v38 = vpop.eup %15614 }
 0x368   : > { %v11173_v6 = vadd.f32 %v11172_v13, %v17442_v39  ;;  %v11338_v25 = vadd.f32 %v11337_v59, %v11256_v14 }
 0x369   : > { %v15390_v62 = vpop.f32.mrf.mxu1  ;;  %v11565_v45 = vpop.f32.mrf.mxu0 }
 0x36a   : > { %v11174_v11 = vmul.f32 %v11173_v6, %v11171_v23  ;;  %v11414_v17 = vadd.f32 %v11413_v50, %v11338_v25 }
 0x36b   : > { %v15411_v57 = vpop.f32.mrf.mxu0 }
 0x36c   : > { %v11181_v18 = vmul.f32 %v15615_v38, %v11174_v11 }
 0x36d   : > { %v11488_v7 = vpop.f32.mrf.mxu1 }
 0x36e   : > { %v17835_v41 = vadd.f32 %v11181_v18, %v17825_v61  ;;  %v11489_v32 = vadd.f32 %v11488_v7, %v11414_v17 }
 0x36f   : > { %v15404_v37 = vpop.f32.mrf.mxu1  ;;  %v11715_v1 = vpop.f32.mrf.mxu0 }
 0x370   : > { %v11566_v36 = vadd.f32 %v11565_v45, %v11489_v32 }
 0x371   : > { %v15425_v5 = vpop.f32.mrf.mxu0 }
 0x373   : > { %v11638_v21 = vpop.f32.mrf.mxu1 }
 0x374   : > { %v11639_v50 = vadd.f32 %v11638_v21, %v11566_v36 }
 0x375   : > { %v15418_v8 = vpop.f32.mrf.mxu1  ;;  %v11872_v10 = vpop.f32.mrf.mxu0 }
 0x376   : > { %v13478_v37 = vmul.f32 %v11639_v50, %v11639_v50 }
 0x377   : > { %v15439_v29 = vpop.f32.mrf.mxu0 }
 0x379   : > { %v11796_v33 = vpop.f32.mrf.mxu1 }
 0x37a   : > { %v11797_v53 = vadd.f32 %v11796_v33, %v11715_v1 }
 0x37b   : > { %v15432_v27 = vpop.f32.mrf.mxu1  ;;  %v12024_v51 = vpop.f32.mrf.mxu0 }
 0x37c   : > { %v11873_v2 = vadd.f32 %v11872_v10, %v11797_v53 }
 0x37d   : > { %v15453_v9 = vpop.f32.mrf.mxu0 }
 0x37f   : > { %v11947_v4 = vpop.f32.mrf.mxu1 }
 0x380   : > { %v11948_v56 = vadd.f32 %v11947_v4, %v11873_v2 }
 0x381   : > { %v15446_v58 = vpop.f32.mrf.mxu1  ;;  %v12174_v31 = vpop.f32.mrf.mxu0 }
 0x382   : > { %v12025_v16 = vadd.f32 %v12024_v51, %v11948_v56 }
 0x383   : > { %v15467_v44 = vpop.f32.mrf.mxu0 }
 0x385   : > { %v12097_v30 = vpop.f32.mrf.mxu1 }
 0x386   : > { %v12098_v13 = vadd.f32 %v12097_v30, %v12025_v16 }
 0x387   : > { %v15460_v52 = vpop.f32.mrf.mxu1  ;;  %v12331_v55 = vpop.f32.mrf.mxu0 }
 0x388   : > { %v13480_v18 = vmul.f32 %v12098_v13, %v12098_v13 }
 0x389   : > { %v15481_v61 = vpop.f32.mrf.mxu0 }
 0x38a   : > { %v13490_v33 = vadd.f32 %v13480_v18, %v13478_v37 }
 0x38b   : > { %v12255_v43 = vpop.f32.mrf.mxu1 }
 0x38c   : > { %v12256_v63 = vadd.f32 %v12255_v43, %v12174_v31  ;;  %v13491_v9 = vadd.f32 %v13490_v33, %v17439_v26 }
 0x38d   : > { %v15474_v54 = vpop.f32.mrf.mxu1  ;;  %v12483_v42 = vpop.f32.mrf.mxu0 }
 0x38e   : > { %v12332_v22 = vadd.f32 %v12331_v55, %v12256_v63 }
 0x38f   : > { %v15495_v15 = vpop.f32.mrf.mxu0 }
 0x390   : > { %v13484_v15 = vmul.f32 2.0, %v11639_v50 }
 0x391   : > { %v12406_v35 = vpop.f32.mrf.mxu1 }
 0x392   : > { %v12407_v34 = vadd.f32 %v12406_v35, %v12332_v22  ;;  %v13485_v53 = vmul.f32 %v13484_v15, %v12098_v13 }
 0x393   : > { %v15488_v12 = vpop.f32.mrf.mxu1  ;;  %v12633_v19 = vpop.f32.mrf.mxu0 }
 0x394   : > { %v12484_v59 = vadd.f32 %v12483_v42, %v12407_v34  ;;  %v13482_v12 = vmul.f32 %v12098_v13, %v11639_v50 }
 0x395   : > { %v15509_v49 = vpop.f32.mrf.mxu0 }
 0x397   : > { %v12556_v0 = vpop.f32.mrf.mxu1 }
 0x398   : > { %v12557_v57 = vadd.f32 %v12556_v0, %v12484_v59  ;;  %v13486_v0 = vadd.f32 %v13485_v53, %v17439_v26 }
 0x399   : > { %v15502_v20 = vpop.f32.mrf.mxu1  ;;  %v12790_v28 = vpop.f32.mrf.mxu0 }
 0x39a   : > { %v13479_v10 = vsub.f32 %v12557_v57, %v13478_v37 }
 0x39b   : > { %v15523_v46 = vpop.f32.mrf.mxu0 }
 0x39d   : > { %v12714_v47 = vpop.f32.mrf.mxu1 }
 0x39e   : > { %v12715_v40 = vadd.f32 %v12714_v47, %v12633_v19 }
 0x39f   : > { %v15516_v60 = vpop.f32.mrf.mxu1  ;;  %v12942_v48 = vpop.f32.mrf.mxu0 }
 0x3a0   : > { %v12791_v3 = vadd.f32 %v12790_v28, %v12715_v40 }
 0x3a1   : > { %v15537_v24 = vpop.f32.mrf.mxu0 }
 0x3a3   : > { %v12865_v14 = vpop.f32.mrf.mxu1 }
 0x3a4   : > { %v12866_v23 = vadd.f32 %v12865_v14, %v12791_v3 }
 0x3a5   : > { %v15530_v6 = vpop.f32.mrf.mxu1  ;;  %v13092_v38 = vpop.f32.mrf.mxu0 }
 0x3a6   : > { %v12943_v62 = vadd.f32 %v12942_v48, %v12866_v23 }
 0x3a7   : > { %v15551_v11 = vpop.f32.mrf.mxu0 }
 0x3a9   : > { %v13015_v7 = vpop.f32.mrf.mxu1 }
 0x3aa   : > { %v13016_v1 = vadd.f32 %v13015_v7, %v12943_v62 }
 0x3ab   : > { %v15544_v5 = vpop.f32.mrf.mxu1  ;;  %v13249_v8 = vpop.f32.mrf.mxu0 }
 0x3ac   : > { %v13481_v29 = vsub.f32 %v13016_v1, %v13480_v18 }
 0x3ad   : > { %v15565_v45 = vpop.f32.mrf.mxu0 }
 0x3ae   : > { %v13492_v27 = vadd.f32 %v13481_v29, %v13479_v10 }
 0x3af   : > { %v13173_v51 = vpop.f32.mrf.mxu1 }
 0x3b0   : > { %v13493_v4 = vadd.f32 %v13492_v27, %v17442_v39  ;;  %v13174_v21 = vadd.f32 %v13173_v51, %v13092_v38 }
 0x3b1   : > { %v15558_v58 = vpop.f32.mrf.mxu1 }
 0x3b2   : > { %v13494_v31 = vmul.f32 %v13493_v4, %v13491_v9  ;;  %v13250_v44 = vadd.f32 %v13249_v8, %v13174_v21  ;;  %v13401_v30 = vpop.f32.mrf.mxu0 }
 0x3b3   : > { %v13324_v52 = vpop.f32.mrf.mxu1 }
 0x3b4   : > { %15616 = vrcp.f32 %v13494_v31  ;;  %v13325_v55 = vadd.f32 %v13324_v52, %v13250_v44  ;;  %v15579_v61 = vpop.f32.mrf.mxu0 }
 0x3b5   : > { %v15572_v43 = vpop.f32.mrf.mxu1 }
 0x3b6   : > { %v13402_v54 = vadd.f32 %v13401_v30, %v13325_v55 }
 0x3b7   : > { %v13474_v42 = vpop.f32.mrf.mxu1 }
 0x3b8   : > { %v13475_v35 = vadd.f32 %v13474_v42, %v13402_v54 }
 0x3b9   : > { %v15586_v19 = vpop.f32.mrf.mxu1 }
 0x3ba   : > { %v13483_v49 = vsub.f32 %v13475_v35, %v13482_v12 }
 0x3bc   : > { %v13487_v25 = vmul.f32 2.0, %v13483_v49 }
 0x3be   : > { %v13488_v2 = vadd.f32 %v13487_v25, %v17442_v39 }
 0x3c0   : > { %v13489_v63 = vmul.f32 %v13488_v2, %v13486_v0 }
 0x3c1   : > { %v15617_v20 = vpop.eup %15616 }
 0x3c2   : > { %v13496_v28 = vmul.f32 %v15617_v20, %v13489_v63 }
 0x3c4   : > { %v13497_v17 = vadd.f32 %v13496_v28, %v17835_v41 }
 0x3c6   : > { %v13499_v46 = vsel %vm13498_vm2, %v13497_v17, 0.0 }
 0x3c7   : > { %13500 = vadd.xlane.f32.xlu0 %v13499_v46 }
 0x450   : > { %v13501_v56 = vpop.xlane.xlu0 %13500 }
 0x451   : > { %v13502_v22 = vrot.slane %v13501_v56, 4 }
 0x453   : > { %v13503_v47 = vadd.f32 %v13502_v22, %v13501_v56 }
 0x455   : > { %v13504_v32 = vrot.slane %v13503_v47, 2 }
 0x457   : > { %v13505_v40 = vadd.f32 %v13504_v32, %v13503_v47 }
 0x459   : > { %v13506_v60 = vrot.slane %v13505_v40, 1 }
 0x45b   : > { %v13507_v48 = vadd.f32 %v13506_v60, %v13505_v40 }
 0x45d   : > { %15587 = vpush %v13507_v48 }
 0x48e   : > { %s15588_s23 = spop %15587 }
 0x48f   : > { %v13509_v26 = vstv %s15588_s23 }
 0x490   : > { %13510 = vst [vmem:[%s266_s22] sm:$0xff] %v13509_v26 }
 0x491 PF: > { %s16_s18 = sadd.s32 1, %s15643_s18  }
 0x492   : > { %p13_p2 = scmp.ge.s32.totalorder %s16_s18, 4  }
 0x494   :  { %15 = sbr.rel (!%p13_p2) target bundleno = 1 (0x1), region = 78 }
 0x499   :  { %13530 = vsyncpa [#allocation3], 1 }
 0x49a   :  { %13532 = vsyncpa [#allocation3 + $0x1], 1 }

</bundles_post_ra>
